<compile_context>
chip_gen: v7x
topology: tpu7x:2x2x1
jax: 0.10.0
libtpu: 0.0.40
codegen_flags: <defaults>
</compile_context>

<pallas_src>
import functools

import jax
import jax.numpy as jnp
from jax.experimental import pallas as pl
from jax.experimental.pallas import tpu as pltpu


HIDDEN_DIM = 384        # ChemBERTa-77M-MLM hidden size (lm_head = Identity)
MLP_HIDDEN = 256
NUM_TASKS = 8
OUT_LANES = 128         # fc2 output padded to a full lane tile (lane-dense vst)

TASKS = ("bbbp", "bace", "ctox", "fda", "esol",
         "freesolv", "lipophilicity", "qm7")


def _round_up(x, m):
    return (x + m - 1) // m * m


def _chmlm_heads_kernel(x_ref, w1_ref, b1_ref, w2_ref, b2_ref, out_ref,
                        acc_ref, *, inv_seq_len):
    """Accumulate the sequence sum; at the last S tile run the fused MLP heads.

    x_ref  : (bm, bs, D)          bf16/f32  hidden-state tile
    w1_ref : (D, NT*H)            f32       stacked fc1 weights (transposed)
    b1_ref : (1, NT*H)            f32
    w2_ref : (NT*H, OUT_LANES)    f32       block-diagonal fc2 (lane-padded)
    b2_ref : (1, OUT_LANES)       f32
    out_ref: (bm, OUT_LANES)      f32
    acc_ref: (bm, D)              f32       running sum over the sequence axis
    """
    j = pl.program_id(1)

    @pl.when(j == 0)
    def _init():
        acc_ref[...] = jnp.zeros_like(acc_ref)

    # Sublane reduce of this sequence chunk (cheap; hides under the x DMA).
    acc_ref[...] += jnp.sum(x_ref[...].astype(jnp.float32), axis=1)

    @pl.when(j == pl.num_programs(1) - 1)
    def _finalize():
        ebd = acc_ref[...] * inv_seq_len                     # mean over true S
        # fc1 (all 8 heads at once) + ReLU
        h = jnp.dot(ebd, w1_ref[...],
                    preferred_element_type=jnp.float32) + b1_ref[...]
        h = jnp.maximum(h, 0.0)
        # fc2 as a block-diagonal matmul -> one column per task (padded to 128)
        o = jnp.dot(h, w2_ref[...],
                    preferred_element_type=jnp.float32) + b2_ref[...]
        out_ref[...] = jax.nn.sigmoid(o).astype(out_ref.dtype)


@functools.partial(jax.jit, static_argnames=("block_b", "block_s"))
def chmlm_heads_fused(x, w1s, b1s, w2bd, b2s, *, block_b=128, block_s=64):
    """All 8 task heads on [B, S, D] hidden states -> (B, NUM_TASKS) sigmoids.

    Pass x in bfloat16 if the backbone can emit it: the kernel is HBM-bound on
    the x stream and accumulates in f32 regardless of input dtype.
    """
    B, S, D = x.shape
    NTH = w1s.shape[1]

    bm = min(block_b, _round_up(B, 8))
    bs = min(block_s, _round_up(S, 8))
    Bp, Sp = _round_up(B, bm), _round_up(S, bs)
    if (Bp, Sp) != (B, S):
        # Zero padding is exact for the sum; the mean divides by the true S.
        x = jnp.pad(x, ((0, Bp - B), (0, Sp - S), (0, 0)))

    grid = (Bp // bm, Sp // bs)
    kernel = functools.partial(_chmlm_heads_kernel, inv_seq_len=1.0 / S)

    out = pl.pallas_call(
        kernel,
        out_shape=jax.ShapeDtypeStruct((Bp, OUT_LANES), jnp.float32),
        grid_spec=pltpu.PrefetchScalarGridSpec(
            num_scalar_prefetch=0,
            grid=grid,
            in_specs=[
                pl.BlockSpec((bm, bs, D), lambda i, j: (i, j, 0)),   # x stream
                pl.BlockSpec((D, NTH), lambda i, j: (0, 0)),         # w1 stacked
                pl.BlockSpec((1, NTH), lambda i, j: (0, 0)),         # b1 stacked
                pl.BlockSpec((NTH, OUT_LANES), lambda i, j: (0, 0)), # w2 blockdiag
                pl.BlockSpec((1, OUT_LANES), lambda i, j: (0, 0)),   # b2 padded
            ],
            out_specs=pl.BlockSpec((bm, OUT_LANES), lambda i, j: (i, 0)),
            scratch_shapes=[pltpu.VMEM((bm, D), jnp.float32)],
        ),
        compiler_params=pltpu.CompilerParams(
            dimension_semantics=("parallel", "arbitrary"),
            vmem_limit_bytes=32 * 1024 * 1024,
        ),
    )(x, w1s, b1s, w2bd, b2s)
    return out[:B, :NUM_TASKS]


def init_feedforward_params(key, input_dim, hidden_dim, output_dim):
    """Deterministic init mimicking nn.Linear shapes (stored transposed)."""
    k1, k2, k3, k4 = jax.random.split(key, 4)
    bound1 = 1.0 / (input_dim ** 0.5)
    bound2 = 1.0 / (hidden_dim ** 0.5)
    w1 = jax.random.uniform(k1, (input_dim, hidden_dim), jnp.float32,
                            -bound1, bound1)
    b1 = jax.random.uniform(k2, (hidden_dim,), jnp.float32, -bound1, bound1)
    w2 = jax.random.uniform(k3, (hidden_dim, output_dim), jnp.float32,
                            -bound2, bound2)
    b2 = jax.random.uniform(k4, (output_dim,), jnp.float32, -bound2, bound2)
    return w1, b1, w2, b2


def stack_task_params(params_by_task):
    """Fuse the 8 per-task feedForward heads into one set of kernel weights."""
    w1s = jnp.concatenate([params_by_task[t][0] for t in TASKS], axis=1)
    b1s = jnp.concatenate([params_by_task[t][1] for t in TASKS], axis=0)[None, :]
    w2bd = jnp.zeros((NUM_TASKS * MLP_HIDDEN, OUT_LANES), jnp.float32)
    for idx, t in enumerate(TASKS):
        w2 = params_by_task[t][2]                         # (MLP_HIDDEN, 1)
        w2bd = w2bd.at[idx * MLP_HIDDEN:(idx + 1) * MLP_HIDDEN, idx].set(w2[:, 0])
    b2s = jnp.zeros((1, OUT_LANES), jnp.float32)
    b2s = b2s.at[0, :NUM_TASKS].set(
        jnp.stack([params_by_task[t][3][0] for t in TASKS]))
    return w1s, b1s, w2bd, b2s


def chmlm_forward(hidden_states, task, fused_params):
    """Equivalent of CHMLM.forward for one task, taking base-model hidden
    states directly. All 8 heads are computed in a single pass over x (x is
    HBM-bandwidth bound, so this is essentially free) and the requested task's
    column is returned as (B, 1) to match the PyTorch output."""
    out_all = chmlm_heads_fused(hidden_states, *fused_params)
    t = TASKS.index(task)
    return out_all[:, t:t + 1]


if __name__ == "__main__":
    key = jax.random.PRNGKey(0)

    # Deterministic per-task head parameters (8 feedForward heads), fused.
    params_by_task = {}
    pkey = key
    for task in TASKS:
        pkey, sub = jax.random.split(pkey)
        params_by_task[task] = init_feedforward_params(
            sub, HIDDEN_DIM, MLP_HIDDEN, 1)
    fused_params = stack_task_params(params_by_task)

    # Synthetic "base model" output hidden states: [B, S, 384], streamed bf16.
    B, S = 2, 8
    xkey, _ = jax.random.split(key)
    hidden_states = jax.random.normal(
        xkey, (B, S, HIDDEN_DIM), jnp.float32).astype(jnp.bfloat16)

    out_all = chmlm_heads_fused(hidden_states, *fused_params)
    out_bbbp = chmlm_forward(hidden_states, "bbbp", fused_params)
    out_all, out_bbbp = jax.block_until_ready((out_all, out_bbbp))

    # Pure-JAX reference (per-task, un-fused) on the same bf16 hidden states.
    ebd = hidden_states.astype(jnp.float32).mean(axis=1)
    refs = []
    for task in TASKS:
        w1, b1, w2, b2 = params_by_task[task]
        refs.append(jax.nn.sigmoid(jnp.maximum(ebd @ w1 + b1, 0.0) @ w2 + b2))
    ref = jnp.concatenate(refs, axis=1)                    # (B, 8)

    assert out_all.shape == (B, NUM_TASKS)
    assert out_bbbp.shape == (B, 1)
    assert jnp.allclose(out_all, ref, atol=1e-4, rtol=1e-4)
    assert jnp.allclose(out_bbbp, ref[:, :1], atol=1e-4, rtol=1e-4)

    print("KERNEL_OK")
</pallas_src>

<mosaic_0001>
module attributes {stable_mosaic.version = 11 : i64} {
  func.func @_chmlm_heads_kernel(%arg0: i32, %arg1: i32, %arg2: memref<8x8x384xbf16, #tpu.memory_space<vmem>>, %arg3: memref<384x2048xf32, #tpu.memory_space<vmem>>, %arg4: memref<1x2048xf32, #tpu.memory_space<vmem>>, %arg5: memref<2048x128xf32, #tpu.memory_space<vmem>>, %arg6: memref<1x128xf32, #tpu.memory_space<vmem>>, %arg7: memref<8x128xf32, #tpu.memory_space<vmem>>, %arg8: memref<8x384xf32, #tpu.memory_space<vmem>>) attributes {dimension_semantics = [#tpu.dimension_semantics<parallel>, #tpu.dimension_semantics<arbitrary>], iteration_bounds = array<i64: 1, 1>, scalar_prefetch = 0 : i64, scratch_operands = 1 : i64, tpu.core_type = #tpu.core_type<tc>, window_params = [{transform_indices = @transform_0, window_bounds = array<i64: 8, 8, 384>}, {pipeline_mode = #tpu.pipeline_mode<synchronous>, transform_indices = @transform_1, window_bounds = array<i64: 384, 2048>}, {pipeline_mode = #tpu.pipeline_mode<synchronous>, transform_indices = @transform_2, window_bounds = array<i64: 1, 2048>}, {pipeline_mode = #tpu.pipeline_mode<synchronous>, transform_indices = @transform_3, window_bounds = array<i64: 2048, 128>}, {pipeline_mode = #tpu.pipeline_mode<synchronous>, transform_indices = @transform_4, window_bounds = array<i64: 1, 128>}, {transform_indices = @transform_5, window_bounds = array<i64: 8, 128>}]} {
    %c0_i32 = arith.constant 0 : i32
    %0 = arith.cmpi eq, %arg1, %c0_i32 : i32
    %1 = arith.extui %0 : i1 to i32
    %c0_i32_0 = arith.constant 0 : i32
    %2 = arith.cmpi ne, %1, %c0_i32_0 : i32
    scf.if %2 {
      %cst_9 = arith.constant 0.000000e+00 : f32
      %12 = vector.broadcast %cst_9 : f32 to vector<8x384xf32>
      %c0_10 = arith.constant 0 : index
      %c0_11 = arith.constant 0 : index
      %13 = vector.load %arg8[%c0_10, %c0_11] : memref<8x384xf32, #tpu.memory_space<vmem>>, vector<8x384xf32>
      tpu.vector_store %arg8[%c0_10, %c0_11], %12 {strides = array<i32>} : memref<8x384xf32, #tpu.memory_space<vmem>>, vector<8x384xf32>,
    } else {
    }
    %c0 = arith.constant 0 : index
    %c0_1 = arith.constant 0 : index
    %3 = vector.load %arg8[%c0, %c0_1] : memref<8x384xf32, #tpu.memory_space<vmem>>, vector<8x384xf32>
    %c0_2 = arith.constant 0 : index
    %c0_3 = arith.constant 0 : index
    %c0_4 = arith.constant 0 : index
    %4 = vector.load %arg2[%c0_2, %c0_3, %c0_4] : memref<8x8x384xbf16, #tpu.memory_space<vmem>>, vector<8x8x384xbf16>
    %5 = arith.extf %4 : vector<8x8x384xbf16> to vector<8x8x384xf32>
    %cst = arith.constant dense<0.000000e+00> : vector<8x384xf32>
    %6 = vector.multi_reduction <add>, %5, %cst [1] : vector<8x8x384xf32> to vector<8x384xf32>
    %7 = arith.addf %3, %6 : vector<8x384xf32>
    %c0_5 = arith.constant 0 : index
    %c0_6 = arith.constant 0 : index
    %8 = vector.load %arg8[%c0_5, %c0_6] : memref<8x384xf32, #tpu.memory_space<vmem>>, vector<8x384xf32>
    tpu.vector_store %arg8[%c0_5, %c0_6], %7 {strides = array<i32>} : memref<8x384xf32, #tpu.memory_space<vmem>>, vector<8x384xf32>,
    %c0_i32_7 = arith.constant 0 : i32
    %9 = arith.cmpi eq, %arg1, %c0_i32_7 : i32
    %10 = arith.extui %9 : i1 to i32
    %c0_i32_8 = arith.constant 0 : i32
    %11 = arith.cmpi ne, %10, %c0_i32_8 : i32
    scf.if %11 {
      %c0_9 = arith.constant 0 : index
      %c0_10 = arith.constant 0 : index
      %12 = vector.load %arg8[%c0_9, %c0_10] : memref<8x384xf32, #tpu.memory_space<vmem>>, vector<8x384xf32>
      %cst_11 = arith.constant 1.250000e-01 : f32
      %13 = vector.broadcast %cst_11 : f32 to vector<8x384xf32>
      %14 = arith.mulf %12, %13 : vector<8x384xf32>
      %c0_12 = arith.constant 0 : index
      %c0_13 = arith.constant 0 : index
      %15 = vector.load %arg3[%c0_12, %c0_13] : memref<384x2048xf32, #tpu.memory_space<vmem>>, vector<384x2048xf32>
      %cst_14 = arith.constant dense<0.000000e+00> : vector<8x2048xf32>
      %16 = tpu.matmul %14, %15, %cst_14 {dimension_numbers = #tpu.dot_dimension_numbers<[1], [0], [0], [1], [0, 0, 1, 1], [], []>} : vector<8x384xf32>, vector<384x2048xf32>, vector<8x2048xf32> -> vector<8x2048xf32>
      %c0_15 = arith.constant 0 : index
      %c0_16 = arith.constant 0 : index
      %17 = vector.load %arg4[%c0_15, %c0_16] : memref<1x2048xf32, #tpu.memory_space<vmem>>, vector<1x2048xf32>
      %18 = vector.broadcast %17 : vector<1x2048xf32> to vector<8x2048xf32>
      %19 = arith.addf %16, %18 : vector<8x2048xf32>
      %cst_17 = arith.constant 0.000000e+00 : f32
      %20 = vector.broadcast %cst_17 : f32 to vector<8x2048xf32>
      %21 = arith.maximumf %19, %20 : vector<8x2048xf32>
      %c0_18 = arith.constant 0 : index
      %c0_19 = arith.constant 0 : index
      %22 = vector.load %arg5[%c0_18, %c0_19] : memref<2048x128xf32, #tpu.memory_space<vmem>>, vector<2048x128xf32>
      %cst_20 = arith.constant dense<0.000000e+00> : vector<8x128xf32>
      %23 = tpu.matmul %21, %22, %cst_20 {dimension_numbers = #tpu.dot_dimension_numbers<[1], [0], [0], [1], [0, 0, 1, 1], [], []>} : vector<8x2048xf32>, vector<2048x128xf32>, vector<8x128xf32> -> vector<8x128xf32>
      %c0_21 = arith.constant 0 : index
      %c0_22 = arith.constant 0 : index
      %24 = vector.load %arg6[%c0_21, %c0_22] : memref<1x128xf32, #tpu.memory_space<vmem>>, vector<1x128xf32>
      %25 = vector.broadcast %24 : vector<1x128xf32> to vector<8x128xf32>
      %26 = arith.addf %23, %25 : vector<8x128xf32>
      %27 = arith.negf %26 : vector<8x128xf32>
      %28 = math.exp %27 : vector<8x128xf32>
      %cst_23 = arith.constant 1.000000e+00 : f32
      %29 = vector.broadcast %cst_23 : f32 to vector<8x128xf32>
      %30 = arith.addf %29, %28 : vector<8x128xf32>
      %31 = arith.divf %29, %30 : vector<8x128xf32>
      %c0_24 = arith.constant 0 : index
      %c0_25 = arith.constant 0 : index
      %32 = vector.load %arg7[%c0_24, %c0_25] : memref<8x128xf32, #tpu.memory_space<vmem>>, vector<8x128xf32>
      tpu.vector_store %arg7[%c0_24, %c0_25], %31 {strides = array<i32>} : memref<8x128xf32, #tpu.memory_space<vmem>>, vector<8x128xf32>,
    } else {
    }
    return
  }
  func.func @transform_0(%arg0: i32, %arg1: i32) -> (i32, i32, i32) {
    %c0_i32 = arith.constant 0 : i32
    %c0_i32_0 = arith.constant 0 : i32
    return %arg0, %arg1, %c0_i32 : i32, i32, i32
  }
  func.func @transform_1(%arg0: i32, %arg1: i32) -> (i32, i32) {
    %c0_i32 = arith.constant 0 : i32
    %c0_i32_0 = arith.constant 0 : i32
    %c0_i32_1 = arith.constant 0 : i32
    return %c0_i32, %c0_i32_0 : i32, i32
  }
  func.func @transform_2(%arg0: i32, %arg1: i32) -> (i32, i32) {
    %c0_i32 = arith.constant 0 : i32
    %c0_i32_0 = arith.constant 0 : i32
    %c0_i32_1 = arith.constant 0 : i32
    return %c0_i32, %c0_i32_0 : i32, i32
  }
  func.func @transform_3(%arg0: i32, %arg1: i32) -> (i32, i32) {
    %c0_i32 = arith.constant 0 : i32
    %c0_i32_0 = arith.constant 0 : i32
    %c0_i32_1 = arith.constant 0 : i32
    return %c0_i32, %c0_i32_0 : i32, i32
  }
  func.func @transform_4(%arg0: i32, %arg1: i32) -> (i32, i32) {
    %c0_i32 = arith.constant 0 : i32
    %c0_i32_0 = arith.constant 0 : i32
    %c0_i32_1 = arith.constant 0 : i32
    return %c0_i32, %c0_i32_0 : i32, i32
  }
  func.func @transform_5(%arg0: i32, %arg1: i32) -> (i32, i32) {
    %c0_i32 = arith.constant 0 : i32
    %c0_i32_0 = arith.constant 0 : i32
    return %arg0, %c0_i32 : i32, i32
  }
}

</mosaic_0001>

<bundles_post_ra>
// kernel: chmlm_heads_fused.1
= control target key start
LH: loop header
LB: loop body
LE: loop exit
PB: predicated region body
PF: predicated region fallthrough
CT: control target
= control target key end

     0   :  { %10 = vsyncpa [#allocation4], 0  ;;  %s5276_s0 = inlined_call_operand.vmem [shape: bf16[8,8,384], index: 0, kind: input, shape index: {}]   ;;  %s5277_s1 = inlined_call_operand.hbm [shape: f32[384,2048], index: 1, kind: input, shape index: {}]   ;;  %s5278_s2 = inlined_call_operand.hbm [shape: f32[1,2048], index: 2, kind: input, shape index: {}]   ;;  %s5279_s3 = inlined_call_operand.hbm [shape: f32[2048,128], index: 3, kind: input, shape index: {}]   ;;  %s5280_s4 = inlined_call_operand.hbm [shape: f32[1,128], index: 4, kind: input, shape index: {}]   ;;  %s5281_s5 = inlined_call_operand.vmem [shape: f32[8,128], index: 5, kind: output, shape index: {}]  }
   0x1   :  { %11 = vsyncpa [#allocation6], 0 }
   0x2   :  { %12 = vsyncpa [#allocation9], 0  ;;  %s4620_s18 = smov [#allocation5]   ;;  %s4621_s20 = smov [#allocation3]  }
   0x3   :  { %s33_s19 = sshll.u32 %s4620_s18, 4  ;;  %s20_s21 = sshll.u32 %s4621_s20, 4  ;;  %s34_s19 = int_to_ptr.vmem [resolvable:$true] %s33_s19  ;;  %s4658_s21 = int_to_ptr.vmem [resolvable:$true] %s20_s21 }
   0x4   :  { %s4526_s24 = scalar_lea.hbm %s5278_s2, 256 }
   0x5   :  { %p4527_p0 = scmp.ne.s32.totalorder %s5278_s2, %s4526_s24  ;;  %p4530_p1 = scmp.lt.u32.totalorder %s4526_s24, %s5278_s2 }
   0x7   :  { %p4532_p2 = pnand %p4530_p1, %p4527_p0 }
   0x9   :  { %4535 = shalt.err (!%p4532_p2)
}
   0xa   :  { %s4536_s29 = scalar_lea.vmem %s34_s19, 256  ;;  %p4541_p4 = scmp.lt.s32.totalorder %s34_s19, %s34_s19 }
   0xb   :  { %p4537_p3 = scmp.ne.s32.totalorder %s34_s19, %s4536_s29  ;;  %p4542_p5 = scmp.lt.s32.totalorder %s4536_s29, %s4536_s29 }
   0xd   :  { %p4543_p6 = por %p4542_p5, %p4541_p4 }
   0xf   :  { %p4544_p7 = pnand %p4543_p6, %p4537_p3 }
  0x11   :  { %4547 = shalt.err (!%p4544_p7)
}
  0x12   :  { %36 = dma.hbm_to_vmem [thread:$0]  %s5278_s2, 256, %s34_s19, [#allocation6]  }
  0x13   :  { %s4548_s9 = scalar_lea.hbm %s5277_s1, 98304 }
  0x14   :  { %p4549_p8 = scmp.ne.s32.totalorder %s5277_s1, %s4548_s9  ;;  %p4552_p9 = scmp.lt.u32.totalorder %s4548_s9, %s5277_s1 }
  0x16   :  { %p4554_p10 = pnand %p4552_p9, %p4549_p8 }
  0x18   :  { %4557 = shalt.err (!%p4554_p10)
}
  0x19   :  { %s4558_s14 = scalar_lea.vmem %s4658_s21, 98304  ;;  %p4563_p12 = scmp.lt.s32.totalorder %s4658_s21, %s4658_s21 }
  0x1a   :  { %p4559_p11 = scmp.ne.s32.totalorder %s4658_s21, %s4558_s14  ;;  %p4564_p13 = scmp.lt.s32.totalorder %s4558_s14, %s4558_s14 }
  0x1c   :  { %p4565_p0 = por %p4564_p13, %p4563_p12 }
  0x1e   :  { %p4566_p1 = pnand %p4565_p0, %p4559_p11 }
  0x20   :  { %4569 = shalt.err (!%p4566_p1)
}
  0x21   :  { %s4622_s2 = smov 2048   ;;  %s4623_s15 = smov 128  }
  0x22   :  { %26 = dma.hbm_to_vmem [thread:$0]  %s5277_s1, 98304, %s4658_s21, [#allocation4], %s4622_s2, %s4622_s2, %s4623_s15  }
  0x23   :  { %s4624_s18 = smov [#allocation7]   ;;  %s4625_s20 = smov [#allocation8]  }
  0x24   :  { %s42_s19 = sshll.u32 %s4624_s18, 4  ;;  %s55_s22 = sshll.u32 %s4625_s20, 4  ;;  %s43_s19 = int_to_ptr.vmem [resolvable:$true] %s42_s19  ;;  %s56_s22 = int_to_ptr.vmem [resolvable:$true] %s55_s22 }
  0x25   :  { %s4570_s25 = scalar_lea.hbm %s5279_s3, 32768 }
  0x26   :  { %p4571_p2 = scmp.ne.s32.totalorder %s5279_s3, %s4570_s25  ;;  %p4574_p3 = scmp.lt.u32.totalorder %s4570_s25, %s5279_s3 }
  0x28   :  { %p4576_p4 = pnand %p4574_p3, %p4571_p2 }
  0x2a   :  { %4579 = shalt.err (!%p4576_p4)
}
  0x2b   :  { %s4580_s1 = scalar_lea.vmem %s43_s19, 32768  ;;  %p4585_p6 = scmp.lt.s32.totalorder %s43_s19, %s43_s19 }
  0x2c   :  { %p4581_p5 = scmp.ne.s32.totalorder %s43_s19, %s4580_s1  ;;  %p4586_p7 = scmp.lt.s32.totalorder %s4580_s1, %s4580_s1 }
  0x2e   :  { %p4587_p8 = por %p4586_p7, %p4585_p6 }
  0x30   :  { %p4588_p9 = pnand %p4587_p8, %p4581_p5 }
  0x32   :  { %4591 = shalt.err (!%p4588_p9)
}
  0x33   :  { %s4626_s21 = smov 8   ;;  %s4592_s9 = scalar_lea.hbm %s5280_s4, 16 }
  0x34   :  { %48 = dma.hbm_to_vmem [thread:$0]  %s5279_s3, 32768, %s43_s19, [#allocation6], %s4623_s15, %s4623_s15, %s4626_s21  }
  0x35   :  { %p4593_p10 = scmp.ne.s32.totalorder %s5280_s4, %s4592_s9  ;;  %p4596_p11 = scmp.lt.u32.totalorder %s4592_s9, %s5280_s4 }
  0x37   :  { %p4598_p12 = pnand %p4596_p11, %p4593_p10 }
  0x39   :  { %4601 = shalt.err (!%p4598_p12)
}
  0x3a   :  { %s4602_s14 = scalar_lea.vmem %s56_s22, 16  ;;  %s4606_s2 = scalar_lea.vmem %s56_s22, 32 }
  0x3b   :  { %p4603_p13 = scmp.ne.s32.totalorder %s56_s22, %s4602_s14  ;;  %p4607_p0 = scmp.lt.s32.totalorder %s56_s22, %s56_s22 }
  0x3c   :  { %p4608_p1 = scmp.lt.s32.totalorder %s4606_s2, %s4602_s14 }
  0x3e   :  { %p4609_p2 = por %p4608_p1, %p4607_p0 }
  0x40   :  { %p4610_p3 = pnand %p4609_p2, %p4603_p13 }
  0x42   :  { %4613 = shalt.err (!%p4610_p3)
}
  0x43   :  { %58 = dma.hbm_to_vmem [thread:$0]  %s5280_s4, 16, %s56_s22, [#allocation9]  }
  0x44   :  { %4614 = dma.done.wait [#allocation4], 98304  }
  0x45   :  { %4615 = vsyncadd [#allocation4], 4294868992 }
  0x46   :  { %4616 = dma.done.wait [#allocation6], 33024  }
  0x47   :  { %4617 = vsyncadd [#allocation6], 4294934272 }
  0x48   :  { %4618 = dma.done.wait [#allocation9], 16  }
  0x49   :  { %4619 = vsyncadd [#allocation9], 4294967280  ;;  %v336_v0 = vld [vmem:[#allocation3 + $0x8] sm:$0xff]  ;;  %v338_v2 = vld [vmem:[#allocation3 + $0x18] sm:$0xff]  ;;  %vm289_vm0 = vcmask 1041409   ;;  %vm291_vm1 = vcmask 1042434  }
  0x4a   :  { %v352_v1 = vld [vmem:[#allocation3 + $0x88] sm:$0xff]  ;;  %v354_v4 = vld [vmem:[#allocation3 + $0x98] sm:$0xff]  ;;  %v335_v5 = vld [vmem:[#allocation3] sm:$0xff]  ;;  %vm293_vm2 = vcmask 1043459   ;;  %vm295_vm3 = vcmask 1044484   ;;  %vm297_vm4 = vcmask 1045509  }
  0x4b   :  { %v3458_v3 = vpack.c.bf16 %v352_v1, %v336_v0  ;;  %v351_v6 = vld [vmem:[#allocation3 + $0x80] sm:$0xff]  ;;  %v3554_v7 = vpack.c.bf16 %v354_v4, %v338_v2  ;;  %v337_v9 = vld [vmem:[#allocation3 + $0x10] sm:$0xff]  ;;  %v368_v11 = vld [vmem:[#allocation3 + $0x108] sm:$0xff]  ;;  %vm299_vm5 = vcmask 1046534   ;;  %vm301_vm6 = vcmask 1047559  }
  0x4c   :  { %v3460_v8 = vpack.c.bf16 %v351_v6, %v335_v5  ;;  %v353_v10 = vld [vmem:[#allocation3 + $0x90] sm:$0xff]  ;;  %v384_v13 = vld [vmem:[#allocation3 + $0x188] sm:$0xff]  ;;  %v370_v14 = vld [vmem:[#allocation3 + $0x118] sm:$0xff] }
  0x4d   :  { %3459 = vmatprep.subr.bf16.mxu0 %v3458_v3  ;;  %v3556_v12 = vpack.c.bf16 %v353_v10, %v337_v9  ;;  %v386_v15 = vld [vmem:[#allocation3 + $0x198] sm:$0xff]  ;;  %3555 = vmatprep.subr.bf16.mxu1 %v3554_v7  ;;  %v3462_v16 = vpack.c.bf16 %v384_v13, %v368_v11  ;;  %v367_v18 = vld [vmem:[#allocation3 + $0x100] sm:$0xff]  ;;  %v369_v20 = vld [vmem:[#allocation3 + $0x110] sm:$0xff] }
  0x4e   :  { %3461 = vmatpush1.bf16.msra.mxu0 %v3460_v8  ;;  %v3558_v17 = vpack.c.bf16 %v386_v15, %v370_v14  ;;  %v383_v19 = vld [vmem:[#allocation3 + $0x180] sm:$0xff]  ;;  %v385_v22 = vld [vmem:[#allocation3 + $0x190] sm:$0xff]  ;;  %v400_v23 = vld [vmem:[#allocation3 + $0x208] sm:$0xff] }
  0x4f   :  { %3557 = vmatpush1.bf16.msra.mxu1 %v3556_v12  ;;  %v3464_v21 = vpack.c.bf16 %v383_v19, %v367_v18  ;;  %v416_v24 = vld [vmem:[#allocation3 + $0x288] sm:$0xff]  ;;  %3463 = vmatprep.subr.bf16.mxu0 %v3462_v16  ;;  %v3560_v25 = vpack.c.bf16 %v385_v22, %v369_v20  ;;  %v402_v27 = vld [vmem:[#allocation3 + $0x218] sm:$0xff]  ;;  %v399_v29 = vld [vmem:[#allocation3 + $0x200] sm:$0xff] }
  0x50   :  { %3559 = vmatprep.subr.bf16.mxu1 %v3558_v17  ;;  %v3466_v26 = vpack.c.bf16 %v416_v24, %v400_v23  ;;  %v418_v28 = vld [vmem:[#allocation3 + $0x298] sm:$0xff]  ;;  %v415_v31 = vld [vmem:[#allocation3 + $0x280] sm:$0xff]  ;;  %v401_v32 = vld [vmem:[#allocation3 + $0x210] sm:$0xff] }
  0x51   :  { %v3562_v30 = vpack.c.bf16 %v418_v28, %v402_v27  ;;  %v417_v33 = vld [vmem:[#allocation3 + $0x290] sm:$0xff]  ;;  %v3468_v34 = vpack.c.bf16 %v415_v31, %v399_v29  ;;  %v432_v35 = vld [vmem:[#allocation3 + $0x308] sm:$0xff]  ;;  %v434_v37 = vld [vmem:[#allocation3 + $0x318] sm:$0xff] }
  0x52   :  { %3465 = vmatpush1.bf16.msra.mxu0 %v3464_v21  ;;  %v448_v36 = vld [vmem:[#allocation3 + $0x388] sm:$0xff]  ;;  %v3564_v38 = vpack.c.bf16 %v417_v33, %v401_v32  ;;  %v450_v40 = vld [vmem:[#allocation3 + $0x398] sm:$0xff]  ;;  %v431_v41 = vld [vmem:[#allocation3 + $0x300] sm:$0xff] }
  0x53   :  { %3561 = vmatpush1.bf16.msra.mxu1 %v3560_v25  ;;  %3467 = vmatprep.subr.bf16.mxu0 %v3466_v26  ;;  %v3470_v39 = vpack.c.bf16 %v448_v36, %v432_v35  ;;  %v447_v42 = vld [vmem:[#allocation3 + $0x380] sm:$0xff]  ;;  %v3566_v43 = vpack.c.bf16 %v450_v40, %v434_v37  ;;  %v433_v44 = vld [vmem:[#allocation3 + $0x310] sm:$0xff]  ;;  %v464_v46 = vld [vmem:[#allocation3 + $0x408] sm:$0xff] }
  0x54   :  { %3563 = vmatprep.subr.bf16.mxu1 %v3562_v30  ;;  %v449_v45 = vld [vmem:[#allocation3 + $0x390] sm:$0xff]  ;;  %v480_v47 = vld [vmem:[#allocation3 + $0x488] sm:$0xff]  ;;  %v466_v48 = vld [vmem:[#allocation3 + $0x418] sm:$0xff]  ;;  %v3472_v50 = vpack.c.bf16 %v447_v42, %v431_v41 }
  0x55   :  { %v482_v49 = vld [vmem:[#allocation3 + $0x498] sm:$0xff]  ;;  %v3568_v51 = vpack.c.bf16 %v449_v45, %v433_v44  ;;  %v3474_v52 = vpack.c.bf16 %v480_v47, %v464_v46  ;;  %v463_v53 = vld [vmem:[#allocation3 + $0x400] sm:$0xff]  ;;  %v465_v55 = vld [vmem:[#allocation3 + $0x410] sm:$0xff] }
  0x56   :  { %3469 = vmatpush1.bf16.msra.mxu0 %v3468_v34  ;;  %v479_v54 = vld [vmem:[#allocation3 + $0x480] sm:$0xff]  ;;  %v3570_v56 = vpack.c.bf16 %v482_v49, %v466_v48  ;;  %v481_v57 = vld [vmem:[#allocation3 + $0x490] sm:$0xff]  ;;  %v496_v58 = vld [vmem:[#allocation3 + $0x508] sm:$0xff] }
  0x57   :  { %3565 = vmatpush1.bf16.msra.mxu1 %v3564_v38  ;;  %3471 = vmatprep.subr.bf16.mxu0 %v3470_v39  ;;  %v512_v59 = vld [vmem:[#allocation3 + $0x588] sm:$0xff]  ;;  %v498_v60 = vld [vmem:[#allocation3 + $0x518] sm:$0xff]  ;;  %v3476_v62 = vpack.c.bf16 %v479_v54, %v463_v53  ;;  %v3572_v63 = vpack.c.bf16 %v481_v57, %v465_v55  ;;  %v495_v1 = vld [vmem:[#allocation3 + $0x500] sm:$0xff] }
  0x58   :  { %3567 = vmatprep.subr.bf16.mxu1 %v3566_v43  ;;  %v514_v61 = vld [vmem:[#allocation3 + $0x598] sm:$0xff]  ;;  %v3478_v0 = vpack.c.bf16 %v512_v59, %v496_v58  ;;  %v511_v2 = vld [vmem:[#allocation3 + $0x580] sm:$0xff]  ;;  %v497_v3 = vld [vmem:[#allocation3 + $0x510] sm:$0xff] }
  0x59   :  { %v3574_v4 = vpack.c.bf16 %v514_v61, %v498_v60  ;;  %v513_v5 = vld [vmem:[#allocation3 + $0x590] sm:$0xff]  ;;  %v528_v6 = vld [vmem:[#allocation3 + $0x608] sm:$0xff]  ;;  %v530_v8 = vld [vmem:[#allocation3 + $0x618] sm:$0xff]  ;;  %v3480_v10 = vpack.c.bf16 %v511_v2, %v495_v1 }
  0x5a   :  { %3473 = vmatpush1.bf16.msra.mxu0 %v3472_v50  ;;  %v544_v7 = vld [vmem:[#allocation3 + $0x688] sm:$0xff]  ;;  %v546_v9 = vld [vmem:[#allocation3 + $0x698] sm:$0xff]  ;;  %v3576_v11 = vpack.c.bf16 %v513_v5, %v497_v3  ;;  %v527_v13 = vld [vmem:[#allocation3 + $0x600] sm:$0xff] }
  0x5b   :  { %3569 = vmatpush1.bf16.msra.mxu1 %v3568_v51  ;;  %3475 = vmatprep.subr.bf16.mxu0 %v3474_v52  ;;  %v3482_v12 = vpack.c.bf16 %v544_v7, %v528_v6  ;;  %v543_v14 = vld [vmem:[#allocation3 + $0x680] sm:$0xff]  ;;  %v529_v15 = vld [vmem:[#allocation3 + $0x610] sm:$0xff]  ;;  %v3578_v16 = vpack.c.bf16 %v546_v9, %v530_v8  ;;  %v560_v18 = vld [vmem:[#allocation3 + $0x708] sm:$0xff] }
  0x5c   :  { %3571 = vmatprep.subr.bf16.mxu1 %v3570_v56  ;;  %v545_v17 = vld [vmem:[#allocation3 + $0x690] sm:$0xff]  ;;  %v576_v19 = vld [vmem:[#allocation3 + $0x788] sm:$0xff]  ;;  %v562_v20 = vld [vmem:[#allocation3 + $0x718] sm:$0xff]  ;;  %v3484_v22 = vpack.c.bf16 %v543_v14, %v527_v13 }
  0x5d   :  { %v578_v21 = vld [vmem:[#allocation3 + $0x798] sm:$0xff]  ;;  %v3580_v23 = vpack.c.bf16 %v545_v17, %v529_v15  ;;  %v3486_v24 = vpack.c.bf16 %v576_v19, %v560_v18  ;;  %v559_v25 = vld [vmem:[#allocation3 + $0x700] sm:$0xff]  ;;  %v561_v27 = vld [vmem:[#allocation3 + $0x710] sm:$0xff] }
  0x5e   :  { %3477 = vmatpush1.bf16.msra.mxu0 %v3476_v62  ;;  %v575_v26 = vld [vmem:[#allocation3 + $0x780] sm:$0xff]  ;;  %v3582_v28 = vpack.c.bf16 %v578_v21, %v562_v20  ;;  %v577_v29 = vld [vmem:[#allocation3 + $0x790] sm:$0xff]  ;;  %v592_v30 = vld [vmem:[#allocation3 + $0x808] sm:$0xff] }
  0x5f   :  { %3573 = vmatpush1.bf16.msra.mxu1 %v3572_v63  ;;  %3479 = vmatprep.subr.bf16.mxu0 %v3478_v0  ;;  %v608_v31 = vld [vmem:[#allocation3 + $0x888] sm:$0xff]  ;;  %v594_v32 = vld [vmem:[#allocation3 + $0x818] sm:$0xff]  ;;  %v3488_v34 = vpack.c.bf16 %v575_v26, %v559_v25  ;;  %v591_v35 = vld [vmem:[#allocation3 + $0x800] sm:$0xff]  ;;  %v3584_v37 = vpack.c.bf16 %v577_v29, %v561_v27 }
  0x60   :  { %3575 = vmatprep.subr.bf16.mxu1 %v3574_v4  ;;  %v610_v33 = vld [vmem:[#allocation3 + $0x898] sm:$0xff]  ;;  %v607_v36 = vld [vmem:[#allocation3 + $0x880] sm:$0xff]  ;;  %v3490_v38 = vpack.c.bf16 %v608_v31, %v592_v30  ;;  %v593_v39 = vld [vmem:[#allocation3 + $0x810] sm:$0xff] }
  0x61   :  { %v609_v40 = vld [vmem:[#allocation3 + $0x890] sm:$0xff]  ;;  %v624_v41 = vld [vmem:[#allocation3 + $0x908] sm:$0xff]  ;;  %v3586_v42 = vpack.c.bf16 %v610_v33, %v594_v32  ;;  %v626_v44 = vld [vmem:[#allocation3 + $0x918] sm:$0xff]  ;;  %v3492_v50 = vpack.c.bf16 %v607_v36, %v591_v35 }
  0x62   :  { %3481 = vmatpush1.bf16.msra.mxu0 %v3480_v10  ;;  %v640_v43 = vld [vmem:[#allocation3 + $0x988] sm:$0xff]  ;;  %v642_v45 = vld [vmem:[#allocation3 + $0x998] sm:$0xff]  ;;  %v4713_v46 = vld [vmem:[#allocation3 + $0x900] sm:$0xff]  ;;  %v3588_v57 = vpack.c.bf16 %v609_v40, %v593_v39 }
  0x63   :  { %3577 = vmatpush1.bf16.msra.mxu1 %v3576_v11  ;;  %3483 = vmatprep.subr.bf16.mxu0 %v3482_v12  ;;  %v4715_v47 = vld [vmem:[#allocation3 + $0x980] sm:$0xff]  ;;  %v4717_v48 = vld [vmem:[#allocation3 + $0x910] sm:$0xff]  ;;  %v4721_v51 = vld [vmem:[#allocation3 + $0xa08] sm:$0xff]  ;;  %v3494_v58 = vpack.c.bf16 %v640_v43, %v624_v41  ;;  %v3590_v3 = vpack.c.bf16 %v642_v45, %v626_v44 }
  0x64   :  { %3579 = vmatprep.subr.bf16.mxu1 %v3578_v16  ;;  %v4719_v49 = vld [vmem:[#allocation3 + $0x990] sm:$0xff]  ;;  %v4723_v52 = vld [vmem:[#allocation3 + $0xa88] sm:$0xff]  ;;  %v4725_v53 = vld [vmem:[#allocation3 + $0xa18] sm:$0xff]  ;;  %v3496_v18 = vpack.c.bf16 %v4715_v47, %v4713_v46 }
  0x65   :  { %v4727_v54 = vld [vmem:[#allocation3 + $0xa98] sm:$0xff]  ;;  %v4729_v55 = vld [vmem:[#allocation3 + $0xa00] sm:$0xff]  ;;  %v4733_v59 = vld [vmem:[#allocation3 + $0xa10] sm:$0xff]  ;;  %v3592_v19 = vpack.c.bf16 %v4719_v49, %v4717_v48 }
  0x66   :  { %3485 = vmatpush1.bf16.msra.mxu0 %v3484_v22  ;;  %v4731_v56 = vld [vmem:[#allocation3 + $0xa80] sm:$0xff]  ;;  %v4735_v60 = vld [vmem:[#allocation3 + $0xa90] sm:$0xff]  ;;  %v4737_v61 = vld [vmem:[#allocation3 + $0xb08] sm:$0xff] }
  0x67   :  { %3581 = vmatpush1.bf16.msra.mxu1 %v3580_v23  ;;  %3487 = vmatprep.subr.bf16.mxu0 %v3486_v24  ;;  %v4739_v62 = vld [vmem:[#allocation3 + $0xb88] sm:$0xff]  ;;  %v4741_v63 = vld [vmem:[#allocation3 + $0xb18] sm:$0xff]  ;;  %v4745_v1 = vld [vmem:[#allocation3 + $0xb00] sm:$0xff]  ;;  %v3498_v23 = vpack.c.bf16 %v4723_v52, %v4721_v51  ;;  %v3594_v24 = vpack.c.bf16 %v4727_v54, %v4725_v53  ;;  %v3500_v25 = vpack.c.bf16 %v4731_v56, %v4729_v55 }
  0x68   :  { %3583 = vmatprep.subr.bf16.mxu1 %v3582_v28  ;;  %v4743_v0 = vld [vmem:[#allocation3 + $0xb98] sm:$0xff]  ;;  %v4747_v2 = vld [vmem:[#allocation3 + $0xb80] sm:$0xff]  ;;  %v4749_v4 = vld [vmem:[#allocation3 + $0xb10] sm:$0xff]  ;;  %v3596_v29 = vpack.c.bf16 %v4735_v60, %v4733_v59  ;;  %v3502_v30 = vpack.c.bf16 %v4739_v62, %v4737_v61 }
  0x69   :  { %v4751_v5 = vld [vmem:[#allocation3 + $0xb90] sm:$0xff]  ;;  %v4753_v6 = vld [vmem:[#allocation3 + $0xc08] sm:$0xff]  ;;  %v4757_v8 = vld [vmem:[#allocation3 + $0xc18] sm:$0xff]  ;;  %v3598_v31 = vpack.c.bf16 %v4743_v0, %v4741_v63  ;;  %v3504_v32 = vpack.c.bf16 %v4747_v2, %v4745_v1 }
  0x6a   :  { %3489 = vmatpush1.bf16.msra.mxu0 %v3488_v34  ;;  %v4755_v7 = vld [vmem:[#allocation3 + $0xc88] sm:$0xff]  ;;  %v4759_v9 = vld [vmem:[#allocation3 + $0xc98] sm:$0xff]  ;;  %v4761_v10 = vld [vmem:[#allocation3 + $0xc00] sm:$0xff] }
  0x6b   :  { %3585 = vmatpush1.bf16.msra.mxu1 %v3584_v37  ;;  %3491 = vmatprep.subr.bf16.mxu0 %v3490_v38  ;;  %v4763_v11 = vld [vmem:[#allocation3 + $0xc80] sm:$0xff]  ;;  %v4765_v12 = vld [vmem:[#allocation3 + $0xc10] sm:$0xff]  ;;  %v4769_v14 = vld [vmem:[#allocation3 + $0xd08] sm:$0xff]  ;;  %v5294_v1 = vpack.c.bf16 %v4759_v9, %v4757_v8 }
  0x6c   :  { %3587 = vmatprep.subr.bf16.mxu1 %v3586_v42  ;;  %v4767_v13 = vld [vmem:[#allocation3 + $0xc90] sm:$0xff]  ;;  %v4771_v15 = vld [vmem:[#allocation3 + $0xd88] sm:$0xff]  ;;  %v4773_v16 = vld [vmem:[#allocation3 + $0xd18] sm:$0xff] }
  0x6d   :  { %v4775_v17 = vld [vmem:[#allocation3 + $0xd98] sm:$0xff]  ;;  %v4781_v20 = vld [vmem:[#allocation3 + $0xd00] sm:$0xff]  ;;  %v4785_v22 = vld [vmem:[#allocation3 + $0xd10] sm:$0xff]  ;;  %v5296_v8 = vpack.c.bf16 %v4767_v13, %v4765_v12  ;;  %v5297_v9 = vpack.c.bf16 %v4771_v15, %v4769_v14 }
  0x6e   :  { %3493 = vmatpush1.bf16.msra.mxu0 %v3492_v50  ;;  %v4783_v21 = vld [vmem:[#allocation3 + $0xd80] sm:$0xff]  ;;  %v4793_v26 = vld [vmem:[#allocation3 + $0xd90] sm:$0xff]  ;;  %v4795_v27 = vld [vmem:[#allocation3 + $0xe08] sm:$0xff] }
  0x6f   :  { %3589 = vmatpush1.bf16.msra.mxu1 %v3588_v57  ;;  %3495 = vmatprep.subr.bf16.mxu0 %v3494_v58  ;;  %v4797_v28 = vld [vmem:[#allocation3 + $0xe88] sm:$0xff]  ;;  %v4807_v33 = vld [vmem:[#allocation3 + $0xe18] sm:$0xff]  ;;  %v4811_v35 = vld [vmem:[#allocation3 + $0xe00] sm:$0xff] }
  0x70   :  { %3591 = vmatprep.subr.bf16.mxu1 %v3590_v3  ;;  %v4809_v34 = vld [vmem:[#allocation3 + $0xe98] sm:$0xff]  ;;  %v4821_v40 = vld [vmem:[#allocation3 + $0xe80] sm:$0xff]  ;;  %v4823_v41 = vld [vmem:[#allocation3 + $0xe10] sm:$0xff] }
  0x71   :  { %v4825_v42 = vld [vmem:[#allocation3 + $0xe90] sm:$0xff]  ;;  %v4835_v47 = vld [vmem:[#allocation3 + $0xf08] sm:$0xff]  ;;  %v4839_v49 = vld [vmem:[#allocation3 + $0xf18] sm:$0xff] }
  0x72   :  { %3497 = vmatpush1.bf16.msra.mxu0 %v3496_v18  ;;  %v4837_v48 = vld [vmem:[#allocation3 + $0xf88] sm:$0xff]  ;;  %5287 = vst [vmem:[#allocation13_spill] sm:$0xff] %v4839_v49  ;;  %v4847_v53 = vld [vmem:[#allocation3 + $0xf98] sm:$0xff]  ;;  %v4849_v54 = vld [vmem:[#allocation3 + $0xf00] sm:$0xff] }
  0x73   :  { %3593 = vmatpush1.bf16.msra.mxu1 %v3592_v19  ;;  %3499 = vmatprep.subr.bf16.mxu0 %v3498_v23  ;;  %5288 = vst [vmem:[#allocation14_spill] sm:$0xff] %v4849_v54  ;;  %v4851_v55 = vld [vmem:[#allocation3 + $0xf80] sm:$0xff]  ;;  %v4861_v60 = vld [vmem:[#allocation3 + $0xf10] sm:$0xff]  ;;  %v4882_v18 = vld [vmem:[%s5276_s0 + $0x18] sm:$0xff] }
  0x74   :  { %5289 = vst [vmem:[#allocation15_spill] sm:$0xff] %v4851_v55  ;;  %3595 = vmatprep.subr.bf16.mxu1 %v3594_v24  ;;  %5290 = vst [vmem:[#allocation16_spill] sm:$0xff] %v4861_v60  ;;  %v4863_v61 = vld [vmem:[#allocation3 + $0xf90] sm:$0xff]  ;;  %v4868_v62 = vld [vmem:[%s5276_s0] sm:$0xff]  ;;  %v104_v57 = vunpack.c.h.bf16 %v4882_v18 }
  0x75   :  { %5291 = vst [vmem:[#allocation17_spill] sm:$0xff] %v4863_v61  ;;  %v4877_v3 = vld [vmem:[%s5276_s0 + $0xc] sm:$0xff]  ;;  %v4887_v19 = vld [vmem:[%s5276_s0 + $0x24] sm:$0xff]  ;;  %v98_v23 = vunpack.c.h.bf16 %v4868_v62  ;;  %v4899_v63 = vld [vmem:[%s5276_s0 + $0x3c] sm:$0xff] }
  0x76   :  { %3501 = vmatpush1.bf16.msra.mxu0 %v3500_v25  ;;  %v4894_v0 = vld [vmem:[%s5276_s0 + $0x30] sm:$0xff]  ;;  %v4904_v59 = vld [vmem:[%s5276_s0 + $0x48] sm:$0xff]  ;;  %v101_v58 = vunpack.c.h.bf16 %v4877_v3  ;;  %v107_v25 = vunpack.c.h.bf16 %v4887_v19  ;;  %v113_v51 = vunpack.c.h.bf16 %v4899_v63  ;;  %v163_v43 = vrot.slane %v104_v57, 4  ;;  %v850_v15 = vld [vmem:[#allocation3 + $0x1018] sm:$0xff] }
  0x77   :  { %3597 = vmatpush1.bf16.msra.mxu1 %v3596_v29  ;;  %3503 = vmatprep.subr.bf16.mxu0 %v3502_v30  ;;  %v4913_v56 = vld [vmem:[%s5276_s0 + $0x54] sm:$0xff]  ;;  %v110_v52 = vunpack.c.h.bf16 %v4894_v0  ;;  %v116_v50 = vunpack.c.h.bf16 %v4904_v59  ;;  %v127_v46 = vrot.slane %v98_v23, 4  ;;  %v864_v14 = vld [vmem:[#allocation3 + $0x1088] sm:$0xff] }
  0x78   :  { %3599 = vmatprep.subr.bf16.mxu1 %v3598_v31  ;;  %v119_v45 = vunpack.c.h.bf16 %v4913_v56  ;;  %v145_v44 = vrot.slane %v101_v58, 4  ;;  %v181_v24 = vrot.slane %v107_v25, 4  ;;  %v217_v39 = vrot.slane %v113_v51, 4 }
  0x79   :  { %v128_v29 = vadd.f32 %v127_v46, %v98_v23  ;;  %v199_v30 = vrot.slane %v110_v52, 4  ;;  %v235_v38 = vrot.slane %v116_v50, 4  ;;  %v164_v36 = vadd.f32 %v163_v43, %v104_v57 }
  0x7a   :  { %3505 = vmatpush1.bf16.msra.mxu0 %v3504_v32  ;;  %v146_v37 = vadd.f32 %v145_v44, %v101_v58  ;;  %v182_v60 = vadd.f32 %v181_v24, %v107_v25  ;;  %v253_v61 = vrot.slane %v119_v45, 4  ;;  %v5292_v31 = vpack.c.bf16 %v4751_v5, %v4749_v4  ;;  %v848_v24 = vld [vmem:[#allocation3 + $0x1008] sm:$0xff] }
  0x7b   :  { %v5293_v46 = vpack.c.bf16 %v4755_v7, %v4753_v6  ;;  %v129_v23 = vrot.slane %v128_v29, 2  ;;  %v200_v54 = vadd.f32 %v199_v30, %v110_v52  ;;  %v218_v55 = vadd.f32 %v217_v39, %v113_v51  ;;  %v866_v30 = vld [vmem:[#allocation3 + $0x1098] sm:$0xff] }
  0x7c   :  { %3601 = vmatpush1.bf16.msra.mxu1 %v5292_v31  ;;  %v236_v49 = vadd.f32 %v235_v38, %v116_v50  ;;  %v147_v2 = vrot.slane %v146_v37, 2  ;;  %v165_v32 = vrot.slane %v164_v36, 2  ;;  %v183_v43 = vrot.slane %v182_v60, 2 }
  0x7d   :  { %3507 = vmatprep.subr.bf16.mxu0 %v5293_v46  ;;  %3603 = vmatprep.subr.bf16.mxu1 %v5294_v1  ;;  %v254_v44 = vadd.f32 %v253_v61, %v119_v45  ;;  %v130_v4 = vadd.f32 %v129_v23, %v128_v29  ;;  %v201_v5 = vrot.slane %v200_v54, 2  ;;  %v219_v57 = vrot.slane %v218_v55, 2 }
  0x7e   :  { %v237_v58 = vrot.slane %v236_v49, 2  ;;  %v5295_v6 = vpack.c.bf16 %v4763_v11, %v4761_v10  ;;  %v148_v7 = vadd.f32 %v147_v2, %v146_v37  ;;  %v166_v38 = vadd.f32 %v165_v32, %v164_v36 }
  0x7f   :  { %v184_v39 = vadd.f32 %v183_v43, %v182_v60  ;;  %v255_v50 = vrot.slane %v254_v44, 2  ;;  %v131_v45 = vrot.slane %v130_v4, 1  ;;  %v202_v51 = vadd.f32 %v201_v5, %v200_v54 }
  0x80   :  { %3509 = vmatpush1.bf16.msra.mxu0 %v5295_v6  ;;  %3605 = vmatpush1.bf16.msra.mxu1 %v5296_v8  ;;  %v220_v52 = vadd.f32 %v219_v57, %v218_v55  ;;  %v238_v61 = vadd.f32 %v237_v58, %v236_v49  ;;  %v5298_v10 = vpack.c.bf16 %v4775_v17, %v4773_v16  ;;  %v149_v11 = vrot.slane %v148_v7, 1 }
  0x81   :  { %3511 = vmatprep.subr.bf16.mxu0 %v5297_v9  ;;  %v167_v36 = vrot.slane %v166_v38, 1  ;;  %v185_v37 = vrot.slane %v184_v39, 1  ;;  %v256_v60 = vadd.f32 %v255_v50, %v254_v44  ;;  %v132_v12 = vadd.f32 %v131_v45, %v130_v4 }
  0x82   :  { %3607 = vmatprep.subr.bf16.mxu1 %v5298_v10  ;;  %v203_v13 = vrot.slane %v202_v51, 1  ;;  %v221_v25 = vrot.slane %v220_v52, 1  ;;  %v239_v29 = vrot.slane %v238_v61, 1  ;;  %v5299_v49 = vpack.c.bf16 %v4783_v21, %v4781_v20 }
  0x83   :  { %v150_v54 = vadd.f32 %v149_v11, %v148_v7  ;;  %v168_v55 = vadd.f32 %v167_v36, %v166_v38  ;;  %v186_v16 = vadd.f32 %v185_v37, %v184_v39  ;;  %v257_v17 = vrot.slane %v256_v60, 1  ;;  %v5316_v37 = vld [vmem:[#allocation16_spill] sm:$0xff] }
  0x84   :  { %3513 = vmatpush1.bf16.msra.mxu0 %v5299_v49  ;;  %v5300_v31 = vpack.c.bf16 %v4793_v26, %v4785_v22  ;;  %v5301_v46 = vpack.c.bf16 %v4797_v28, %v4795_v27  ;;  %v204_v23 = vadd.f32 %v203_v13, %v202_v51  ;;  %v222_v1 = vadd.f32 %v221_v25, %v220_v52  ;;  %v5312_v51 = vld [vmem:[#allocation15_spill] sm:$0xff]  ;;  %v5313_v52 = vld [vmem:[#allocation14_spill] sm:$0xff] }
  0x85   :  { %v240_v2 = vadd.f32 %v239_v29, %v238_v61  ;;  %v103_v32 = vunpack.c.l.bf16 %v4882_v18  ;;  %v5302_v20 = vpack.c.bf16 %v4809_v34, %v4807_v33  ;;  %v258_v21 = vadd.f32 %v257_v17, %v256_v60 }
  0x86   :  { %3609 = vmatpush1.bf16.msra.mxu1 %v5300_v31  ;;  %3515 = vmatprep.subr.bf16.mxu0 %v5301_v46  ;;  %v303_v43 = vsel %vm289_vm0, %v150_v54, %v132_v12  ;;  %v3522_v44 = vpack.c.bf16 %v864_v14, %v848_v24  ;;  %v3618_v4 = vpack.c.bf16 %v866_v30, %v850_v15  ;;  %v106_v26 = vunpack.c.l.bf16 %v4887_v19 }
  0x87   :  { %3611 = vmatprep.subr.bf16.mxu1 %v5302_v20  ;;  %v304_v22 = vsel %vm291_vm1, %v168_v55, %v303_v43  ;;  %v109_v27 = vunpack.c.l.bf16 %v4894_v0  ;;  %v112_v28 = vunpack.c.l.bf16 %v4899_v63  ;;  %v5303_v18 = vpack.c.bf16 %v4821_v40, %v4811_v35 }
  0x88   :  { %v305_v33 = vsel %vm293_vm2, %v186_v16, %v304_v22  ;;  %v115_v34 = vunpack.c.l.bf16 %v4904_v59  ;;  %v118_v5 = vunpack.c.l.bf16 %v4913_v56  ;;  %v5304_v57 = vunpack.c.l.bf16 %v4868_v62  ;;  %v5308_v56 = vld [vmem:[#allocation13_spill] sm:$0xff] }
  0x89   :  { %3517 = vmatpush1.bf16.msra.mxu0 %v5303_v18  ;;  %v5305_v19 = vpack.c.bf16 %v4825_v42, %v4823_v41  ;;  %v5306_v63 = vpack.c.bf16 %v4837_v48, %v4835_v47  ;;  %v306_v35 = vsel %vm295_vm3, %v204_v23, %v305_v33  ;;  %v5307_v40 = vunpack.c.l.bf16 %v4877_v3  ;;  %v5315_v62 = vld [vmem:[#allocation17_spill] sm:$0xff] }
  0x8a   :  { %v121_v58 = vrot.slane %v5304_v57, 4  ;;  %v157_v6 = vrot.slane %v103_v32, 4  ;;  %v175_v59 = vrot.slane %v106_v26, 4  ;;  %v5309_v7 = vpack.c.bf16 %v4847_v53, %v5308_v56  ;;  %v5014_v56 = vld [vmem:[#allocation3 + $0x1198] sm:$0xff] }
  0x8b   :  { %3613 = vmatpush1.bf16.msra.mxu1 %v5305_v19  ;;  %3519 = vmatprep.subr.bf16.mxu0 %v5306_v63  ;;  %v139_v0 = vrot.slane %v5307_v40, 4  ;;  %v307_v38 = vsel %vm297_vm4, %v222_v1, %v306_v35  ;;  %v5310_v41 = vmov %v5304_v57  ;;  %v193_v39 = vrot.slane %v109_v27, 4  ;;  %v4999_v19 = vld [vmem:[#allocation3 + $0x1000] sm:$0xff]  ;;  %v5003_v63 = vld [vmem:[#allocation3 + $0x1010] sm:$0xff]  ;;  %v5007_v35 = vld [vmem:[#allocation3 + $0x1108] sm:$0xff] }
  0x8c   :  { %3615 = vmatprep.subr.bf16.mxu1 %v5309_v7  ;;  %v122_v42 = vadd.f32 %v121_v58, %v5310_v41  ;;  %v211_v50 = vrot.slane %v112_v28, 4  ;;  %v308_v47 = vsel %vm299_vm5, %v240_v2, %v307_v38  ;;  %v5311_v48 = vmov %v5307_v40  ;;  %v5009_v40 = vld [vmem:[#allocation3 + $0x1188] sm:$0xff]  ;;  %v5016_v7 = vld [vmem:[#allocation3 + $0x1100] sm:$0xff]  ;;  %v5020_v41 = vld [vmem:[#allocation3 + $0x1110] sm:$0xff] }
  0x8d   :  { %v140_v8 = vadd.f32 %v139_v0, %v5311_v48  ;;  %v158_v9 = vadd.f32 %v157_v6, %v103_v32  ;;  %v176_v45 = vadd.f32 %v175_v59, %v106_v26  ;;  %v5314_v61 = vpack.c.bf16 %v5312_v51, %v5313_v52  ;;  %v5012_v59 = vld [vmem:[#allocation3 + $0x1118] sm:$0xff]  ;;  %v5018_v38 = vld [vmem:[#allocation3 + $0x1180] sm:$0xff]  ;;  %v5027_v48 = vld [vmem:[#allocation3 + $0x1288] sm:$0xff] }
  0x8e   :  { %v309_v53 = vsel %vm301_vm6, %v258_v21, %v308_v47  ;;  %v123_v10 = vrot.slane %v122_v42, 2  ;;  %v194_v11 = vadd.f32 %v193_v39, %v109_v27  ;;  %v212_v36 = vadd.f32 %v211_v50, %v112_v28  ;;  %v5025_v47 = vld [vmem:[#allocation3 + $0x1208] sm:$0xff]  ;;  %v5035_v51 = vld [vmem:[#allocation3 + $0x1280] sm:$0xff] }
  0x8f   :  { %3521 = vmatpush1.bf16.msra.mxu0 %v5314_v61  ;;  %v5317_v60 = vpack.c.bf16 %v5315_v62, %v5316_v37  ;;  %v4994_v24 = vmul.f32 0.125, %v309_v53  ;;  %v141_v3 = vrot.slane %v140_v8, 2  ;;  %v159_v12 = vrot.slane %v158_v9, 2  ;;  %v5038_v53 = vld [vmem:[#allocation3 + $0x1210] sm:$0xff]  ;;  %v5046_v62 = vld [vmem:[#allocation3 + $0x1318] sm:$0xff] }
  0x90   :  { %3523 = vmatprep.subr.bf16.mxu0 %v3522_v44  ;;  %v177_v13 = vrot.slane %v176_v45, 2  ;;  %v124_v25 = vadd.f32 %v123_v10, %v122_v42  ;;  %v195_v29 = vrot.slane %v194_v11, 2  ;;  %v213_v14 = vrot.slane %v212_v36, 2  ;;  %v5022_v42 = vld [vmem:[#allocation3 + $0x1190] sm:$0xff]  ;;  %v5048_v37 = vld [vmem:[#allocation3 + $0x1398] sm:$0xff] }
  0x91   :  { %3617 = vmatpush1.bf16.msra.mxu1 %v5317_v60  ;;  %v229_v15 = vrot.slane %v115_v34, 4  ;;  %1251 = vmatprep.mubr.f32.mxu0 %v4994_v24  ;;  %v142_v30 = vadd.f32 %v141_v3, %v140_v8  ;;  %v160_v49 = vadd.f32 %v159_v12, %v158_v9  ;;  %v247_v55 = vrot.slane %v118_v5, 4  ;;  %v5029_v8 = vld [vmem:[#allocation3 + $0x1218] sm:$0xff]  ;;  %v5040_v10 = vld [vmem:[#allocation3 + $0x1290] sm:$0xff]  ;;  %v5050_v60 = vld [vmem:[#allocation3 + $0x1300] sm:$0xff] }
  0x92   :  { %3619 = vmatprep.subr.bf16.mxu1 %v3618_v4  ;;  %1393 = vmatprep.mubr.f32.mxu1 %v4994_v24  ;;  %v178_v54 = vadd.f32 %v177_v13, %v176_v45  ;;  %v125_v16 = vrot.slane %v124_v25, 1  ;;  %v196_v17 = vadd.f32 %v195_v29, %v194_v11  ;;  %v214_v31 = vadd.f32 %v213_v14, %v212_v36  ;;  %v5031_v9 = vld [vmem:[#allocation3 + $0x1298] sm:$0xff]  ;;  %v5033_v45 = vld [vmem:[#allocation3 + $0x1200] sm:$0xff]  ;;  %v5042_v11 = vld [vmem:[#allocation3 + $0x1308] sm:$0xff] }
  0x93   :  { %v230_v46 = vadd.f32 %v229_v15, %v115_v34  ;;  %v143_v23 = vrot.slane %v142_v30, 1  ;;  %v161_v1 = vrot.slane %v160_v49, 1  ;;  %v248_v32 = vadd.f32 %v247_v55, %v118_v5  ;;  %v5001_v34 = vld [vmem:[#allocation3 + $0x1080] sm:$0xff]  ;;  %v5005_v5 = vld [vmem:[#allocation3 + $0x1090] sm:$0xff]  ;;  %v5044_v36 = vld [vmem:[#allocation3 + $0x1388] sm:$0xff] }
  0x94   :  { %v179_v2 = vrot.slane %v178_v54, 1  ;;  %v126_v20 = vadd.f32 %v125_v16, %v124_v25  ;;  %v197_v21 = vrot.slane %v196_v17, 1  ;;  %v215_v43 = vrot.slane %v214_v31, 1  ;;  %v5052_v3 = vld [vmem:[#allocation3 + $0x1380] sm:$0xff]  ;;  %v5055_v25 = vld [vmem:[#allocation3 + $0x1310] sm:$0xff]  ;;  %v5059_v14 = vld [vmem:[#allocation3 + $0x1408] sm:$0xff] }
  0x95   :  { %v231_v44 = vrot.slane %v230_v46, 2  ;;  %v144_v4 = vadd.f32 %v143_v23, %v142_v30  ;;  %v162_v22 = vadd.f32 %v161_v1, %v160_v49  ;;  %v249_v27 = vrot.slane %v248_v32, 2  ;;  %v5057_v29 = vld [vmem:[#allocation3 + $0x1390] sm:$0xff]  ;;  %v5061_v15 = vld [vmem:[#allocation3 + $0x1488] sm:$0xff]  ;;  %v5070_v16 = vld [vmem:[#allocation3 + $0x1418] sm:$0xff] }
  0x96   :  { %v180_v26 = vadd.f32 %v179_v2, %v178_v54  ;;  %v198_v28 = vadd.f32 %v197_v21, %v196_v17  ;;  %v216_v33 = vadd.f32 %v215_v43, %v214_v31  ;;  %v3524_v49 = vpack.c.bf16 %v5001_v34, %v4999_v19  ;;  %v5072_v17 = vld [vmem:[#allocation3 + $0x1498] sm:$0xff]  ;;  %v5074_v31 = vld [vmem:[#allocation3 + $0x1400] sm:$0xff]  ;;  %v82_v21 = vld [vmem:[%s5276_s0 + $0x8] ss:$12 sps:$4 sm:$0xff]  }
  0x97   :  { %v232_v18 = vadd.f32 %v231_v44, %v230_v46  ;;  %v250_v57 = vadd.f32 %v249_v27, %v248_v32  ;;  %v290_v58 = vsel %vm289_vm0, %v144_v4, %v126_v20  ;;  %v3620_v54 = vpack.c.bf16 %v5005_v5, %v5003_v63  ;;  %v5083_v32 = vld [vmem:[#allocation3 + $0x1480] sm:$0xff]  ;;  %v5085_v20 = vld [vmem:[#allocation3 + $0x1410] sm:$0xff]  ;;  %v5100_v27 = vld [vmem:[#allocation3 + $0x1508] sm:$0xff] }
  0x98   :  { %v292_v6 = vsel %vm291_vm1, %v162_v22, %v290_v58  ;;  %v3526_v55 = vpack.c.bf16 %v5009_v40, %v5007_v35  ;;  %v3622_v23 = vpack.c.bf16 %v5014_v56, %v5012_v59  ;;  %v3528_v1 = vpack.c.bf16 %v5018_v38, %v5016_v7  ;;  %v86_v19 = vld [vmem:[%s5276_s0 + $0x20] ss:$12 sps:$4 sm:$0xff]   ;;  %v90_v34 = vld [vmem:[%s5276_s0 + $0x38] ss:$12 sps:$4 sm:$0xff]   ;;  %v94_v40 = vld [vmem:[%s5276_s0 + $0x50] ss:$12 sps:$4 sm:$0xff]  }
  0x99   :  { %v233_v0 = vrot.slane %v232_v18, 1  ;;  %v251_v39 = vrot.slane %v250_v57, 1  ;;  %v294_v50 = vsel %vm293_vm2, %v180_v26, %v292_v6  ;;  %v3624_v2 = vpack.c.bf16 %v5022_v42, %v5020_v41  ;;  %v5098_v26 = vld [vmem:[#allocation3 + $0x1490] sm:$0xff] }
  0x9a   :  { %v296_v61 = vsel %vm295_vm3, %v198_v28, %v294_v50  ;;  %v3530_v44 = vpack.c.bf16 %v5027_v48, %v5025_v47  ;;  %v3626_v4 = vpack.c.bf16 %v5031_v9, %v5029_v8  ;;  %v3532_v22 = vpack.c.bf16 %v5035_v51, %v5033_v45  ;;  %v5102_v28 = vld [vmem:[#allocation3 + $0x1588] sm:$0xff] }
  0x9b   :  { %v234_v52 = vadd.f32 %v233_v0, %v232_v18  ;;  %v252_v12 = vadd.f32 %v251_v39, %v250_v57  ;;  %v298_v13 = vsel %vm297_vm4, %v216_v33, %v296_v61  ;;  %v3628_v18 = vpack.c.bf16 %v5040_v10, %v5038_v53 }
  0x9c   :  { %v3534_v33 = vpack.c.bf16 %v5044_v36, %v5042_v11  ;;  %v3630_v57 = vpack.c.bf16 %v5048_v37, %v5046_v62  ;;  %v3536_v58 = vpack.c.bf16 %v5052_v3, %v5050_v60  ;;  %v3632_v63 = vpack.c.bf16 %v5057_v29, %v5055_v25  ;;  %v1025_v60 = vld [vmem:[#allocation3 + $0x1590] sm:$0xff]  ;;  %v1040_v3 = vld [vmem:[#allocation3 + $0x1608] sm:$0xff] }
  0x9d   :  { %v300_v30 = vsel %vm299_vm5, %v234_v52, %v298_v13  ;;  %v3538_v5 = vpack.c.bf16 %v5061_v15, %v5059_v14  ;;  %v3634_v35 = vpack.c.bf16 %v5072_v17, %v5070_v16  ;;  %v99_v0 = vunpack.c.l.bf16 %v82_v21  ;;  %v1039_v17 = vld [vmem:[#allocation3 + $0x1600] sm:$0xff] }
  0x9e   :  { %v302_v46 = vsel %vm301_vm6, %v252_v12, %v300_v30  ;;  %v3540_v6 = vpack.c.bf16 %v5083_v32, %v5074_v31  ;;  %v3636_v59 = vpack.c.bf16 %v5098_v26, %v5085_v20  ;;  %v3542_v56 = vpack.c.bf16 %v5102_v28, %v5100_v27  ;;  %v1057_v31 = vld [vmem:[#allocation3 + $0x1690] sm:$0xff]  ;;  %v1072_v32 = vld [vmem:[#allocation3 + $0x1708] sm:$0xff]  ;;  %v1087_v27 = vld [vmem:[#allocation3 + $0x1780] sm:$0xff] }
  0x9f   :  { %v5090_v43 = vmul.f32 0.125, %v302_v46  ;;  %v102_v7 = vunpack.c.h.bf16 %v82_v21  ;;  %v105_v38 = vunpack.c.l.bf16 %v86_v19  ;;  %v108_v41 = vunpack.c.h.bf16 %v86_v19  ;;  %v1088_v26 = vld [vmem:[#allocation3 + $0x1788] sm:$0xff] }
  0xa0   :  { %v111_v42 = vunpack.c.l.bf16 %v90_v34  ;;  %v114_v39 = vunpack.c.h.bf16 %v90_v34  ;;  %v4627_v50 = vmov 0.0   ;;  %v117_v47 = vunpack.c.l.bf16 %v94_v40 }
  0xa1   :  { %1252 = vmatmul.mubr.f32.vlgmr.msra.gmra.mrb[0].mxu0 %v5090_v43  ;;  %1394 = vmatmul.mubr.f32.vlgmr.msra.gmra.mrb[0].mxu1 %v5090_v43  ;;  %v120_v48 = vunpack.c.h.bf16 %v94_v40  ;;  %v133_v8 = vrot.slane %v99_v0, 4  ;;  %v151_v9 = vrot.slane %v102_v7, 4  ;;  %v169_v45 = vrot.slane %v105_v38, 4 }
  0xa2   :  { %3525 = vmatpush1.bf16.msra.mxu0 %v3524_v49  ;;  %3621 = vmatpush1.bf16.msra.mxu1 %v3620_v54  ;;  %v187_v51 = vrot.slane %v108_v41, 4  ;;  %v205_v52 = vrot.slane %v111_v42, 4  ;;  %v223_v61 = vrot.slane %v114_v39, 4  ;;  %v241_v11 = vrot.slane %v117_v47, 4 }
  0xa3   :  { %3527 = vmatprep.subr.bf16.mxu0 %v3526_v55  ;;  %3623 = vmatprep.subr.bf16.mxu1 %v3622_v23  ;;  %v134_v53 = vadd.f32 %v133_v8, %v99_v0  ;;  %v152_v10 = vadd.f32 %v151_v9, %v102_v7  ;;  %v259_v36 = vrot.slane %v120_v48, 4  ;;  %v170_v62 = vadd.f32 %v169_v45, %v105_v38  ;;  %v1009_v9 = vld [vmem:[#allocation3 + $0x1510] sm:$0xff] }
  0xa4   :  { %1322 = vmatprep.mubr.f32.mxu0 %v4627_v50  ;;  %1464 = vmatprep.mubr.f32.mxu1 %v4627_v50  ;;  %v188_v37 = vadd.f32 %v187_v51, %v108_v41  ;;  %v206_v12 = vadd.f32 %v205_v52, %v111_v42  ;;  %v224_v49 = vadd.f32 %v223_v61, %v114_v39 }
  0xa5   :  { %v135_v13 = vrot.slane %v134_v53, 2  ;;  %v153_v30 = vrot.slane %v152_v10, 2  ;;  %v242_v54 = vadd.f32 %v241_v11, %v117_v47  ;;  %v171_v55 = vrot.slane %v170_v62, 2  ;;  %v1058_v11 = vld [vmem:[#allocation3 + $0x1698] sm:$0xff] }
  0xa6   :  { %3529 = vmatpush1.bf16.msra.mxu0 %v3528_v1  ;;  %3625 = vmatpush1.bf16.msra.mxu1 %v3624_v2  ;;  %v189_v46 = vrot.slane %v188_v37, 2  ;;  %v207_v23 = vrot.slane %v206_v12, 2  ;;  %v260_v21 = vadd.f32 %v259_v36, %v120_v48  ;;  %v1010_v1 = vld [vmem:[#allocation3 + $0x1518] sm:$0xff]  ;;  %v225_v40 = vrot.slane %v224_v49, 2 }
  0xa7   :  { %3531 = vmatprep.subr.bf16.mxu0 %v3530_v44  ;;  %3627 = vmatprep.subr.bf16.mxu1 %v3626_v4  ;;  %v1026_v2 = vld [vmem:[#allocation3 + $0x1598] sm:$0xff]  ;;  %v136_v19 = vadd.f32 %v135_v13, %v134_v53  ;;  %v154_v34 = vadd.f32 %v153_v30, %v152_v10  ;;  %v243_v44 = vrot.slane %v242_v54, 2  ;;  %v172_v4 = vadd.f32 %v171_v55, %v170_v62  ;;  %v1041_v30 = vld [vmem:[#allocation3 + $0x1610] sm:$0xff] }
  0xa8   :  { %v190_v0 = vadd.f32 %v189_v46, %v188_v37  ;;  %v208_v7 = vadd.f32 %v207_v23, %v206_v12  ;;  %v261_v38 = vrot.slane %v260_v21, 2  ;;  %v226_v39 = vadd.f32 %v225_v40, %v224_v49  ;;  %v1042_v10 = vld [vmem:[#allocation3 + $0x1618] sm:$0xff]  ;;  %v1071_v23 = vld [vmem:[#allocation3 + $0x1700] sm:$0xff]  ;;  %v356_v40 = vld [vmem:[#allocation3 + $0xa8] sm:$0xff] }
  0xa9   :  { %v137_v41 = vrot.slane %v136_v19, 1  ;;  %v155_v42 = vrot.slane %v154_v34, 1  ;;  %v244_v47 = vadd.f32 %v243_v44, %v242_v54  ;;  %v3638_v8 = vpack.c.bf16 %v1026_v2, %v1010_v1  ;;  %v1090_v49 = vld [vmem:[#allocation3 + $0x1798] sm:$0xff]  ;;  %v1073_v1 = vld [vmem:[#allocation3 + $0x1710] sm:$0xff] }
  0xaa   :  { %3533 = vmatpush1.bf16.msra.mxu0 %v3532_v22  ;;  %3629 = vmatpush1.bf16.msra.mxu1 %v3628_v18  ;;  %v173_v48 = vrot.slane %v172_v4, 1  ;;  %v191_v22 = vrot.slane %v190_v0, 1  ;;  %v209_v18 = vrot.slane %v208_v7, 1  ;;  %v227_v52 = vrot.slane %v226_v39, 1  ;;  %v1089_v2 = vld [vmem:[#allocation3 + $0x1790] sm:$0xff]  ;;  %v342_v44 = vld [vmem:[#allocation3 + $0x38] sm:$0xff] }
  0xab   :  { %3535 = vmatprep.subr.bf16.mxu0 %v3534_v33  ;;  %3631 = vmatprep.subr.bf16.mxu1 %v3630_v57  ;;  %v1007_v33 = vld [vmem:[#allocation3 + $0x1500] sm:$0xff]  ;;  %v138_v45 = vadd.f32 %v137_v41, %v136_v19  ;;  %v156_v51 = vadd.f32 %v155_v42, %v154_v34  ;;  %v262_v61 = vadd.f32 %v261_v38, %v260_v21  ;;  %v245_v53 = vrot.slane %v244_v47, 1  ;;  %v340_v34 = vld [vmem:[#allocation3 + $0x28] sm:$0xff] }
  0xac   :  { %v1023_v57 = vld [vmem:[#allocation3 + $0x1580] sm:$0xff]  ;;  %v174_v25 = vadd.f32 %v173_v48, %v172_v4  ;;  %v192_v29 = vadd.f32 %v191_v22, %v190_v0  ;;  %v228_v36 = vadd.f32 %v227_v52, %v226_v39  ;;  %v3640_v15 = vpack.c.bf16 %v1025_v60, %v1009_v9  ;;  %v358_v4 = vld [vmem:[#allocation3 + $0xb8] sm:$0xff]  ;;  %v357_v48 = vld [vmem:[#allocation3 + $0xb0] sm:$0xff] }
  0xad   :  { %v310_v62 = vsel %vm289_vm0, %v156_v51, %v138_v45  ;;  %v3544_v37 = vpack.c.bf16 %v1023_v57, %v1007_v33  ;;  %v3642_v13 = vpack.c.bf16 %v1058_v11, %v1042_v10  ;;  %v3644_v46 = vpack.c.bf16 %v1057_v31, %v1041_v30  ;;  %v339_v41 = vld [vmem:[#allocation3 + $0x20] sm:$0xff]  ;;  %v372_v22 = vld [vmem:[#allocation3 + $0x128] sm:$0xff]  ;;  %v374_v33 = vld [vmem:[#allocation3 + $0x138] sm:$0xff] }
  0xae   :  { %3537 = vmatpush1.bf16.msra.mxu0 %v3536_v58  ;;  %3633 = vmatpush1.bf16.msra.mxu1 %v3632_v63  ;;  %v1056_v58 = vld [vmem:[#allocation3 + $0x1688] sm:$0xff]  ;;  %v210_v63 = vadd.f32 %v209_v18, %v208_v7  ;;  %v311_v14 = vsel %vm291_vm1, %v174_v25, %v310_v62  ;;  %v3552_v0 = vpack.c.bf16 %v1087_v27, %v1071_v23  ;;  %v355_v42 = vld [vmem:[#allocation3 + $0xa0] sm:$0xff]  ;;  %v390_v57 = vld [vmem:[#allocation3 + $0x1b8] sm:$0xff] }
  0xaf   :  { %3539 = vmatprep.subr.bf16.mxu0 %v3538_v5  ;;  %3635 = vmatprep.subr.bf16.mxu1 %v3634_v35  ;;  %v3546_v16 = vpack.c.bf16 %v1056_v58, %v1040_v3  ;;  %v1055_v5 = vld [vmem:[#allocation3 + $0x1680] sm:$0xff]  ;;  %v263_v35 = vrot.slane %v262_v61, 1  ;;  %v312_v12 = vsel %vm293_vm2, %v192_v29, %v311_v14  ;;  %v3648_v7 = vpack.c.bf16 %v1089_v2, %v1073_v1  ;;  %v388_v18 = vld [vmem:[#allocation3 + $0x1a8] sm:$0xff]  ;;  %v373_v58 = vld [vmem:[#allocation3 + $0x130] sm:$0xff] }
  0xb0   :  { %v313_v20 = vsel %vm295_vm3, %v210_v63, %v312_v12  ;;  %v3548_v55 = vpack.c.bf16 %v1055_v5, %v1039_v17  ;;  %v3650_v39 = vpack.c.bf16 %v356_v40, %v340_v34  ;;  %v3652_v45 = vpack.c.bf16 %v355_v42, %v339_v41  ;;  %v371_v52 = vld [vmem:[#allocation3 + $0x120] sm:$0xff]  ;;  %v389_v25 = vld [vmem:[#allocation3 + $0x1b0] sm:$0xff]  ;;  %v404_v29 = vld [vmem:[#allocation3 + $0x228] sm:$0xff] }
  0xb1   :  { %v314_v54 = vsel %vm297_vm4, %v228_v36, %v313_v20  ;;  %v264_v28 = vadd.f32 %v263_v35, %v262_v61  ;;  %v387_v61 = vld [vmem:[#allocation3 + $0x1a0] sm:$0xff]  ;;  %v3654_v60 = vpack.c.bf16 %v388_v18, %v372_v22  ;;  %v3750_v3 = vpack.c.bf16 %v390_v57, %v374_v33  ;;  %v420_v63 = vld [vmem:[#allocation3 + $0x2a8] sm:$0xff]  ;;  %v422_v10 = vld [vmem:[#allocation3 + $0x2b8] sm:$0xff] }
  0xb2   :  { %3541 = vmatpush1.bf16.msra.mxu0 %v3540_v6  ;;  %3637 = vmatpush1.bf16.msra.mxu1 %v3636_v59  ;;  %v246_v6 = vadd.f32 %v245_v53, %v244_v47  ;;  %v1074_v59 = vld [vmem:[#allocation3 + $0x1718] sm:$0xff]  ;;  %v3746_v47 = vpack.c.bf16 %v358_v4, %v342_v44  ;;  %v3656_v11 = vpack.c.bf16 %v387_v61, %v371_v52  ;;  %v403_v62 = vld [vmem:[#allocation3 + $0x220] sm:$0xff]  ;;  %v421_v17 = vld [vmem:[#allocation3 + $0x2b0] sm:$0xff] }
  0xb3   :  { %3543 = vmatprep.subr.bf16.mxu0 %v3542_v56  ;;  %3639 = vmatprep.subr.bf16.mxu1 %v3638_v8  ;;  %v3550_v56 = vpack.c.bf16 %v1088_v26, %v1072_v32  ;;  %v3646_v21 = vpack.c.bf16 %v1090_v49, %v1074_v59  ;;  %v341_v8 = vld [vmem:[#allocation3 + $0x30] sm:$0xff]  ;;  %v406_v53 = vld [vmem:[#allocation3 + $0x238] sm:$0xff]  ;;  %v3752_v36 = vpack.c.bf16 %v389_v25, %v373_v58  ;;  %v436_v5 = vld [vmem:[#allocation3 + $0x328] sm:$0xff] }
  0xb4   :  { %v315_v19 = vsel %vm299_vm5, %v246_v6, %v314_v54  ;;  %v3748_v51 = vpack.c.bf16 %v357_v48, %v341_v8  ;;  %v3658_v14 = vpack.c.bf16 %v420_v63, %v404_v29  ;;  %v452_v35 = vld [vmem:[#allocation3 + $0x3a8] sm:$0xff]  ;;  %v438_v12 = vld [vmem:[#allocation3 + $0x338] sm:$0xff]  ;;  %v435_v32 = vld [vmem:[#allocation3 + $0x320] sm:$0xff] }
  0xb5   :  { %v316_v38 = vsel %vm301_vm6, %v264_v28, %v315_v19  ;;  %v451_v6 = vld [vmem:[#allocation3 + $0x3a0] sm:$0xff]  ;;  %v3662_v20 = vpack.c.bf16 %v452_v35, %v436_v5  ;;  %v437_v59 = vld [vmem:[#allocation3 + $0x330] sm:$0xff]  ;;  %v468_v54 = vld [vmem:[#allocation3 + $0x428] sm:$0xff] }
  0xb6   :  { %3545 = vmatpush1.bf16.msra.mxu0 %v3544_v37  ;;  %3641 = vmatpush1.bf16.msra.mxu1 %v3640_v15  ;;  %v5165_v9 = vmul.f32 0.125, %v316_v38  ;;  %v419_v37 = vld [vmem:[#allocation3 + $0x2a0] sm:$0xff]  ;;  %v3754_v15 = vpack.c.bf16 %v422_v10, %v406_v53  ;;  %v453_v49 = vld [vmem:[#allocation3 + $0x3b0] sm:$0xff]  ;;  %v486_v23 = vld [vmem:[#allocation3 + $0x4b8] sm:$0xff]  ;;  %v3664_v27 = vpack.c.bf16 %v451_v6, %v435_v32 }
  0xb7   :  { %3547 = vmatprep.subr.bf16.mxu0 %v3546_v16  ;;  %3643 = vmatprep.subr.bf16.mxu1 %v3642_v13  ;;  %v405_v16 = vld [vmem:[#allocation3 + $0x230] sm:$0xff]  ;;  %v454_v13 = vld [vmem:[#allocation3 + $0x3b8] sm:$0xff]  ;;  %v3660_v30 = vpack.c.bf16 %v419_v37, %v403_v62  ;;  %v3760_v28 = vpack.c.bf16 %v453_v49, %v437_v59  ;;  %v500_v40 = vld [vmem:[#allocation3 + $0x528] sm:$0xff] }
  0xb8   :  { %v3756_v31 = vpack.c.bf16 %v421_v17, %v405_v16  ;;  %v3758_v26 = vpack.c.bf16 %v454_v13, %v438_v12  ;;  %v469_v19 = vld [vmem:[#allocation3 + $0x430] sm:$0xff]  ;;  %v516_v44 = vld [vmem:[#allocation3 + $0x5a8] sm:$0xff]  ;;  %v502_v4 = vld [vmem:[#allocation3 + $0x538] sm:$0xff] }
  0xb9   :  { %v485_v34 = vld [vmem:[#allocation3 + $0x4b0] sm:$0xff]  ;;  %v499_v41 = vld [vmem:[#allocation3 + $0x520] sm:$0xff]  ;;  %v532_v22 = vld [vmem:[#allocation3 + $0x628] sm:$0xff] }
  0xba   :  { %3549 = vmatpush1.bf16.msra.mxu0 %v3548_v55  ;;  %3645 = vmatpush1.bf16.msra.mxu1 %v3644_v46  ;;  %v484_v55 = vld [vmem:[#allocation3 + $0x4a8] sm:$0xff]  ;;  %v470_v46 = vld [vmem:[#allocation3 + $0x438] sm:$0xff]  ;;  %v3764_v38 = vpack.c.bf16 %v485_v34, %v469_v19  ;;  %v515_v42 = vld [vmem:[#allocation3 + $0x5a0] sm:$0xff] }
  0xbb   :  { %3551 = vmatprep.subr.bf16.mxu0 %v3550_v56  ;;  %3647 = vmatprep.subr.bf16.mxu1 %v3646_v21  ;;  %v467_v56 = vld [vmem:[#allocation3 + $0x420] sm:$0xff]  ;;  %v3666_v1 = vpack.c.bf16 %v484_v55, %v468_v54  ;;  %v3762_v2 = vpack.c.bf16 %v486_v23, %v470_v46  ;;  %v501_v8 = vld [vmem:[#allocation3 + $0x530] sm:$0xff]  ;;  %v548_v18 = vld [vmem:[#allocation3 + $0x6a8] sm:$0xff] }
  0xbc   :  { %v483_v21 = vld [vmem:[#allocation3 + $0x4a0] sm:$0xff]  ;;  %v517_v48 = vld [vmem:[#allocation3 + $0x5b0] sm:$0xff]  ;;  %v534_v33 = vld [vmem:[#allocation3 + $0x638] sm:$0xff] }
  0xbd   :  { %v550_v57 = vld [vmem:[#allocation3 + $0x6b8] sm:$0xff]  ;;  %v531_v52 = vld [vmem:[#allocation3 + $0x620] sm:$0xff]  ;;  %v533_v58 = vld [vmem:[#allocation3 + $0x630] sm:$0xff] }
  0xbe   :  { %3553 = vmatpush1.bf16.msra.mxu0 %v3552_v0  ;;  %3649 = vmatpush1.bf16.msra.mxu1 %v3648_v7  ;;  %v518_v0 = vld [vmem:[#allocation3 + $0x5b8] sm:$0xff]  ;;  %v3668_v7 = vpack.c.bf16 %v483_v21, %v467_v56  ;;  %v547_v61 = vld [vmem:[#allocation3 + $0x6a0] sm:$0xff]  ;;  %v549_v25 = vld [vmem:[#allocation3 + $0x6b0] sm:$0xff] }
  0xbf   :  { %3651 = vmatprep.subr.bf16.mxu0 %v3650_v39  ;;  %3747 = vmatprep.subr.bf16.mxu1 %v3746_v47  ;;  %v3670_v39 = vpack.c.bf16 %v516_v44, %v500_v40  ;;  %v3766_v47 = vpack.c.bf16 %v518_v0, %v502_v4  ;;  %v564_v29 = vld [vmem:[#allocation3 + $0x728] sm:$0xff]  ;;  %v566_v53 = vld [vmem:[#allocation3 + $0x738] sm:$0xff]  ;;  %v563_v62 = vld [vmem:[#allocation3 + $0x720] sm:$0xff] }
  0xc0   :  { %v580_v63 = vld [vmem:[#allocation3 + $0x7a8] sm:$0xff]  ;;  %v582_v10 = vld [vmem:[#allocation3 + $0x7b8] sm:$0xff]  ;;  %v579_v37 = vld [vmem:[#allocation3 + $0x7a0] sm:$0xff] }
  0xc1   :  { %1323 = vmatmul.mubr.f32.vlgmr.msra.gmra.mrb[0].mxu0 %v5165_v9  ;;  %1465 = vmatmul.mubr.f32.vlgmr.msra.gmra.mrb[0].mxu1 %v5165_v9  ;;  %v565_v16 = vld [vmem:[#allocation3 + $0x730] sm:$0xff]  ;;  %v596_v5 = vld [vmem:[#allocation3 + $0x828] sm:$0xff]  ;;  %v598_v12 = vld [vmem:[#allocation3 + $0x838] sm:$0xff] }
  0xc2   :  { %3653 = vmatpush1.bf16.msra.mxu0 %v3652_v45  ;;  %3749 = vmatpush1.bf16.msra.mxu1 %v3748_v51  ;;  %v3672_v45 = vpack.c.bf16 %v515_v42, %v499_v41  ;;  %v3768_v51 = vpack.c.bf16 %v517_v48, %v501_v8  ;;  %v581_v17 = vld [vmem:[#allocation3 + $0x7b0] sm:$0xff]  ;;  %v612_v35 = vld [vmem:[#allocation3 + $0x8a8] sm:$0xff]  ;;  %v614_v13 = vld [vmem:[#allocation3 + $0x8b8] sm:$0xff] }
  0xc3   :  { %3655 = vmatprep.subr.bf16.mxu0 %v3654_v60  ;;  %3751 = vmatprep.subr.bf16.mxu1 %v3750_v3  ;;  %v3674_v60 = vpack.c.bf16 %v548_v18, %v532_v22  ;;  %v3770_v3 = vpack.c.bf16 %v550_v57, %v534_v33  ;;  %v595_v32 = vld [vmem:[#allocation3 + $0x820] sm:$0xff]  ;;  %v597_v59 = vld [vmem:[#allocation3 + $0x830] sm:$0xff]  ;;  %v628_v54 = vld [vmem:[#allocation3 + $0x928] sm:$0xff] }
  0xc4   :  { %1535 = vmatprep.mubr.f32.mxu0 %v4994_v24  ;;  %1677 = vmatprep.mubr.f32.mxu1 %v4994_v24  ;;  %v611_v6 = vld [vmem:[#allocation3 + $0x8a0] sm:$0xff]  ;;  %v613_v49 = vld [vmem:[#allocation3 + $0x8b0] sm:$0xff]  ;;  %v644_v55 = vld [vmem:[#allocation3 + $0x9a8] sm:$0xff] }
  0xc5   :  { %v630_v46 = vld [vmem:[#allocation3 + $0x938] sm:$0xff]  ;;  %v627_v56 = vld [vmem:[#allocation3 + $0x920] sm:$0xff]  ;;  %v629_v19 = vld [vmem:[#allocation3 + $0x930] sm:$0xff] }
  0xc6   :  { %3657 = vmatpush1.bf16.msra.mxu0 %v3656_v11  ;;  %3753 = vmatpush1.bf16.msra.mxu1 %v3752_v36  ;;  %v3676_v11 = vpack.c.bf16 %v547_v61, %v531_v52  ;;  %v3772_v36 = vpack.c.bf16 %v549_v25, %v533_v58  ;;  %v646_v23 = vld [vmem:[#allocation3 + $0x9b8] sm:$0xff]  ;;  %v643_v21 = vld [vmem:[#allocation3 + $0x9a0] sm:$0xff]  ;;  %v645_v34 = vld [vmem:[#allocation3 + $0x9b0] sm:$0xff] }
  0xc7   :  { %3659 = vmatprep.subr.bf16.mxu0 %v3658_v14  ;;  %3755 = vmatprep.subr.bf16.mxu1 %v3754_v15  ;;  %v3678_v14 = vpack.c.bf16 %v580_v63, %v564_v29  ;;  %v3774_v15 = vpack.c.bf16 %v582_v10, %v566_v53  ;;  %v660_v40 = vld [vmem:[#allocation3 + $0xa28] sm:$0xff]  ;;  %v662_v4 = vld [vmem:[#allocation3 + $0xa38] sm:$0xff]  ;;  %v659_v41 = vld [vmem:[#allocation3 + $0xa20] sm:$0xff] }
  0xc8   :  { %v676_v44 = vld [vmem:[#allocation3 + $0xaa8] sm:$0xff]  ;;  %v678_v0 = vld [vmem:[#allocation3 + $0xab8] sm:$0xff]  ;;  %v675_v42 = vld [vmem:[#allocation3 + $0xaa0] sm:$0xff] }
  0xc9   :  { %v661_v8 = vld [vmem:[#allocation3 + $0xa30] sm:$0xff]  ;;  %v692_v22 = vld [vmem:[#allocation3 + $0xb28] sm:$0xff]  ;;  %v694_v33 = vld [vmem:[#allocation3 + $0xb38] sm:$0xff] }
  0xca   :  { %3661 = vmatpush1.bf16.msra.mxu0 %v3660_v30  ;;  %3757 = vmatpush1.bf16.msra.mxu1 %v3756_v31  ;;  %v3680_v30 = vpack.c.bf16 %v579_v37, %v563_v62  ;;  %v3776_v31 = vpack.c.bf16 %v581_v17, %v565_v16  ;;  %v677_v48 = vld [vmem:[#allocation3 + $0xab0] sm:$0xff]  ;;  %v708_v18 = vld [vmem:[#allocation3 + $0xba8] sm:$0xff]  ;;  %v710_v57 = vld [vmem:[#allocation3 + $0xbb8] sm:$0xff] }
  0xcb   :  { %3663 = vmatprep.subr.bf16.mxu0 %v3662_v20  ;;  %3759 = vmatprep.subr.bf16.mxu1 %v3758_v26  ;;  %v3682_v20 = vpack.c.bf16 %v612_v35, %v596_v5  ;;  %v3778_v26 = vpack.c.bf16 %v614_v13, %v598_v12  ;;  %v691_v52 = vld [vmem:[#allocation3 + $0xb20] sm:$0xff]  ;;  %v693_v58 = vld [vmem:[#allocation3 + $0xb30] sm:$0xff]  ;;  %v724_v29 = vld [vmem:[#allocation3 + $0xc28] sm:$0xff] }
  0xcc   :  { %v707_v61 = vld [vmem:[#allocation3 + $0xba0] sm:$0xff]  ;;  %v709_v25 = vld [vmem:[#allocation3 + $0xbb0] sm:$0xff]  ;;  %v740_v63 = vld [vmem:[#allocation3 + $0xca8] sm:$0xff] }
  0xcd   :  { %v726_v53 = vld [vmem:[#allocation3 + $0xc38] sm:$0xff]  ;;  %v723_v62 = vld [vmem:[#allocation3 + $0xc20] sm:$0xff]  ;;  %v725_v16 = vld [vmem:[#allocation3 + $0xc30] sm:$0xff] }
  0xce   :  { %3665 = vmatpush1.bf16.msra.mxu0 %v3664_v27  ;;  %3761 = vmatpush1.bf16.msra.mxu1 %v3760_v28  ;;  %v3684_v27 = vpack.c.bf16 %v611_v6, %v595_v32  ;;  %v3780_v28 = vpack.c.bf16 %v613_v49, %v597_v59  ;;  %v742_v10 = vld [vmem:[#allocation3 + $0xcb8] sm:$0xff]  ;;  %v739_v37 = vld [vmem:[#allocation3 + $0xca0] sm:$0xff]  ;;  %v741_v17 = vld [vmem:[#allocation3 + $0xcb0] sm:$0xff] }
  0xcf   :  { %3667 = vmatprep.subr.bf16.mxu0 %v3666_v1  ;;  %3763 = vmatprep.subr.bf16.mxu1 %v3762_v2  ;;  %v3686_v1 = vpack.c.bf16 %v644_v55, %v628_v54  ;;  %v3782_v2 = vpack.c.bf16 %v646_v23, %v630_v46  ;;  %v756_v5 = vld [vmem:[#allocation3 + $0xd28] sm:$0xff]  ;;  %v758_v12 = vld [vmem:[#allocation3 + $0xd38] sm:$0xff]  ;;  %v755_v32 = vld [vmem:[#allocation3 + $0xd20] sm:$0xff] }
  0xd0   :  { %v772_v35 = vld [vmem:[#allocation3 + $0xda8] sm:$0xff]  ;;  %v774_v13 = vld [vmem:[#allocation3 + $0xdb8] sm:$0xff]  ;;  %v771_v6 = vld [vmem:[#allocation3 + $0xda0] sm:$0xff] }
  0xd1   :  { %v757_v59 = vld [vmem:[#allocation3 + $0xd30] sm:$0xff]  ;;  %v788_v54 = vld [vmem:[#allocation3 + $0xe28] sm:$0xff]  ;;  %v790_v46 = vld [vmem:[#allocation3 + $0xe38] sm:$0xff] }
  0xd2   :  { %3669 = vmatpush1.bf16.msra.mxu0 %v3668_v7  ;;  %3765 = vmatpush1.bf16.msra.mxu1 %v3764_v38  ;;  %v3688_v7 = vpack.c.bf16 %v643_v21, %v627_v56  ;;  %v3784_v38 = vpack.c.bf16 %v645_v34, %v629_v19  ;;  %v773_v49 = vld [vmem:[#allocation3 + $0xdb0] sm:$0xff]  ;;  %v804_v55 = vld [vmem:[#allocation3 + $0xea8] sm:$0xff]  ;;  %v806_v23 = vld [vmem:[#allocation3 + $0xeb8] sm:$0xff] }
  0xd3   :  { %3671 = vmatprep.subr.bf16.mxu0 %v3670_v39  ;;  %3767 = vmatprep.subr.bf16.mxu1 %v3766_v47  ;;  %v3690_v39 = vpack.c.bf16 %v676_v44, %v660_v40  ;;  %v3786_v47 = vpack.c.bf16 %v678_v0, %v662_v4  ;;  %v787_v56 = vld [vmem:[#allocation3 + $0xe20] sm:$0xff]  ;;  %v789_v19 = vld [vmem:[#allocation3 + $0xe30] sm:$0xff]  ;;  %v820_v40 = vld [vmem:[#allocation3 + $0xf28] sm:$0xff] }
  0xd4   :  { %v803_v21 = vld [vmem:[#allocation3 + $0xea0] sm:$0xff]  ;;  %v805_v34 = vld [vmem:[#allocation3 + $0xeb0] sm:$0xff]  ;;  %v836_v44 = vld [vmem:[#allocation3 + $0xfa8] sm:$0xff] }
  0xd5   :  { %v822_v4 = vld [vmem:[#allocation3 + $0xf38] sm:$0xff] }
  0xd6   :  { %3673 = vmatpush1.bf16.msra.mxu0 %v3672_v45  ;;  %3769 = vmatpush1.bf16.msra.mxu1 %v3768_v51  ;;  %v3692_v45 = vpack.c.bf16 %v675_v42, %v659_v41  ;;  %v3788_v51 = vpack.c.bf16 %v677_v48, %v661_v8  ;;  %v838_v0 = vld [vmem:[#allocation3 + $0xfb8] sm:$0xff]  ;;  %v819_v41 = vld [vmem:[#allocation3 + $0xf20] sm:$0xff]  ;;  %v821_v8 = vld [vmem:[#allocation3 + $0xf30] sm:$0xff] }
  0xd7   :  { %3675 = vmatprep.subr.bf16.mxu0 %v3674_v60  ;;  %3771 = vmatprep.subr.bf16.mxu1 %v3770_v3  ;;  %v3694_v60 = vpack.c.bf16 %v708_v18, %v692_v22  ;;  %v3790_v3 = vpack.c.bf16 %v710_v57, %v694_v33  ;;  %v835_v42 = vld [vmem:[#allocation3 + $0xfa0] sm:$0xff]  ;;  %v837_v48 = vld [vmem:[#allocation3 + $0xfb0] sm:$0xff]  ;;  %v852_v22 = vld [vmem:[#allocation3 + $0x1028] sm:$0xff] }
  0xd8   :  { %v868_v18 = vld [vmem:[#allocation3 + $0x10a8] sm:$0xff]  ;;  %v854_v33 = vld [vmem:[#allocation3 + $0x1038] sm:$0xff] }
  0xd9   :  { %v870_v57 = vld [vmem:[#allocation3 + $0x10b8] sm:$0xff] }
  0xda   :  { %3677 = vmatpush1.bf16.msra.mxu0 %v3676_v11  ;;  %3773 = vmatpush1.bf16.msra.mxu1 %v3772_v36  ;;  %v3696_v11 = vpack.c.bf16 %v707_v61, %v691_v52  ;;  %v3792_v36 = vpack.c.bf16 %v709_v25, %v693_v58  ;;  %v851_v52 = vld [vmem:[#allocation3 + $0x1020] sm:$0xff]  ;;  %v853_v58 = vld [vmem:[#allocation3 + $0x1030] sm:$0xff] }
  0xdb   :  { %3679 = vmatprep.subr.bf16.mxu0 %v3678_v14  ;;  %3775 = vmatprep.subr.bf16.mxu1 %v3774_v15  ;;  %v3698_v14 = vpack.c.bf16 %v740_v63, %v724_v29  ;;  %v3794_v15 = vpack.c.bf16 %v742_v10, %v726_v53  ;;  %v867_v61 = vld [vmem:[#allocation3 + $0x10a0] sm:$0xff]  ;;  %v869_v25 = vld [vmem:[#allocation3 + $0x10b0] sm:$0xff]  ;;  %v884_v29 = vld [vmem:[#allocation3 + $0x1128] sm:$0xff] }
  0xdc   :  { %v900_v63 = vld [vmem:[#allocation3 + $0x11a8] sm:$0xff]  ;;  %v886_v53 = vld [vmem:[#allocation3 + $0x1138] sm:$0xff] }
  0xdd   :  { %v902_v10 = vld [vmem:[#allocation3 + $0x11b8] sm:$0xff] }
  0xde   :  { %3681 = vmatpush1.bf16.msra.mxu0 %v3680_v30  ;;  %3777 = vmatpush1.bf16.msra.mxu1 %v3776_v31  ;;  %v3700_v30 = vpack.c.bf16 %v739_v37, %v723_v62  ;;  %v3796_v31 = vpack.c.bf16 %v741_v17, %v725_v16  ;;  %v883_v62 = vld [vmem:[#allocation3 + $0x1120] sm:$0xff]  ;;  %v885_v16 = vld [vmem:[#allocation3 + $0x1130] sm:$0xff] }
  0xdf   :  { %3683 = vmatprep.subr.bf16.mxu0 %v3682_v20  ;;  %3779 = vmatprep.subr.bf16.mxu1 %v3778_v26  ;;  %v3702_v20 = vpack.c.bf16 %v772_v35, %v756_v5  ;;  %v3798_v26 = vpack.c.bf16 %v774_v13, %v758_v12  ;;  %v899_v37 = vld [vmem:[#allocation3 + $0x11a0] sm:$0xff]  ;;  %v901_v17 = vld [vmem:[#allocation3 + $0x11b0] sm:$0xff]  ;;  %v916_v5 = vld [vmem:[#allocation3 + $0x1228] sm:$0xff] }
  0xe0   :  { %v932_v35 = vld [vmem:[#allocation3 + $0x12a8] sm:$0xff]  ;;  %v918_v12 = vld [vmem:[#allocation3 + $0x1238] sm:$0xff] }
  0xe1   :  { %v934_v13 = vld [vmem:[#allocation3 + $0x12b8] sm:$0xff] }
  0xe2   :  { %3685 = vmatpush1.bf16.msra.mxu0 %v3684_v27  ;;  %3781 = vmatpush1.bf16.msra.mxu1 %v3780_v28  ;;  %v3704_v27 = vpack.c.bf16 %v771_v6, %v755_v32  ;;  %v3800_v28 = vpack.c.bf16 %v773_v49, %v757_v59  ;;  %v915_v32 = vld [vmem:[#allocation3 + $0x1220] sm:$0xff]  ;;  %v917_v59 = vld [vmem:[#allocation3 + $0x1230] sm:$0xff] }
  0xe3   :  { %3687 = vmatprep.subr.bf16.mxu0 %v3686_v1  ;;  %3783 = vmatprep.subr.bf16.mxu1 %v3782_v2  ;;  %v3706_v1 = vpack.c.bf16 %v804_v55, %v788_v54  ;;  %v3802_v2 = vpack.c.bf16 %v806_v23, %v790_v46  ;;  %v931_v6 = vld [vmem:[#allocation3 + $0x12a0] sm:$0xff]  ;;  %v933_v49 = vld [vmem:[#allocation3 + $0x12b0] sm:$0xff]  ;;  %v948_v54 = vld [vmem:[#allocation3 + $0x1328] sm:$0xff] }
  0xe4   :  { %v964_v55 = vld [vmem:[#allocation3 + $0x13a8] sm:$0xff]  ;;  %v950_v46 = vld [vmem:[#allocation3 + $0x1338] sm:$0xff] }
  0xe5   :  { %v966_v23 = vld [vmem:[#allocation3 + $0x13b8] sm:$0xff] }
  0xe6   :  { %3689 = vmatpush1.bf16.msra.mxu0 %v3688_v7  ;;  %3785 = vmatpush1.bf16.msra.mxu1 %v3784_v38  ;;  %v3708_v7 = vpack.c.bf16 %v803_v21, %v787_v56  ;;  %v3804_v38 = vpack.c.bf16 %v805_v34, %v789_v19  ;;  %v947_v56 = vld [vmem:[#allocation3 + $0x1320] sm:$0xff]  ;;  %v949_v19 = vld [vmem:[#allocation3 + $0x1330] sm:$0xff] }
  0xe7   :  { %3691 = vmatprep.subr.bf16.mxu0 %v3690_v39  ;;  %3787 = vmatprep.subr.bf16.mxu1 %v3786_v47  ;;  %v3710_v39 = vpack.c.bf16 %v836_v44, %v820_v40  ;;  %v3806_v47 = vpack.c.bf16 %v838_v0, %v822_v4  ;;  %v963_v21 = vld [vmem:[#allocation3 + $0x13a0] sm:$0xff]  ;;  %v965_v34 = vld [vmem:[#allocation3 + $0x13b0] sm:$0xff]  ;;  %v980_v40 = vld [vmem:[#allocation3 + $0x1428] sm:$0xff] }
  0xe8   :  { %v996_v44 = vld [vmem:[#allocation3 + $0x14a8] sm:$0xff]  ;;  %v982_v4 = vld [vmem:[#allocation3 + $0x1438] sm:$0xff] }
  0xe9   :  { %v998_v0 = vld [vmem:[#allocation3 + $0x14b8] sm:$0xff] }
  0xea   :  { %3693 = vmatpush1.bf16.msra.mxu0 %v3692_v45  ;;  %3789 = vmatpush1.bf16.msra.mxu1 %v3788_v51  ;;  %v3712_v45 = vpack.c.bf16 %v835_v42, %v819_v41  ;;  %v3808_v51 = vpack.c.bf16 %v837_v48, %v821_v8  ;;  %v979_v41 = vld [vmem:[#allocation3 + $0x1420] sm:$0xff]  ;;  %v981_v8 = vld [vmem:[#allocation3 + $0x1430] sm:$0xff] }
  0xeb   :  { %3695 = vmatprep.subr.bf16.mxu0 %v3694_v60  ;;  %3791 = vmatprep.subr.bf16.mxu1 %v3790_v3  ;;  %v3714_v60 = vpack.c.bf16 %v868_v18, %v852_v22  ;;  %v3810_v3 = vpack.c.bf16 %v870_v57, %v854_v33  ;;  %v995_v42 = vld [vmem:[#allocation3 + $0x14a0] sm:$0xff]  ;;  %v997_v48 = vld [vmem:[#allocation3 + $0x14b0] sm:$0xff]  ;;  %v1012_v22 = vld [vmem:[#allocation3 + $0x1528] sm:$0xff] }
  0xec   :  { %v1028_v18 = vld [vmem:[#allocation3 + $0x15a8] sm:$0xff]  ;;  %v1014_v33 = vld [vmem:[#allocation3 + $0x1538] sm:$0xff] }
  0xed   :  { %v1030_v57 = vld [vmem:[#allocation3 + $0x15b8] sm:$0xff] }
  0xee   :  { %3697 = vmatpush1.bf16.msra.mxu0 %v3696_v11  ;;  %3793 = vmatpush1.bf16.msra.mxu1 %v3792_v36  ;;  %v3716_v11 = vpack.c.bf16 %v867_v61, %v851_v52  ;;  %v3812_v36 = vpack.c.bf16 %v869_v25, %v853_v58  ;;  %v1011_v52 = vld [vmem:[#allocation3 + $0x1520] sm:$0xff]  ;;  %v1013_v58 = vld [vmem:[#allocation3 + $0x1530] sm:$0xff] }
  0xef   :  { %3699 = vmatprep.subr.bf16.mxu0 %v3698_v14  ;;  %3795 = vmatprep.subr.bf16.mxu1 %v3794_v15  ;;  %v3718_v14 = vpack.c.bf16 %v900_v63, %v884_v29  ;;  %v3814_v15 = vpack.c.bf16 %v902_v10, %v886_v53  ;;  %v1027_v61 = vld [vmem:[#allocation3 + $0x15a0] sm:$0xff]  ;;  %v1029_v25 = vld [vmem:[#allocation3 + $0x15b0] sm:$0xff]  ;;  %v1044_v29 = vld [vmem:[#allocation3 + $0x1628] sm:$0xff] }
  0xf0   :  { %v1060_v63 = vld [vmem:[#allocation3 + $0x16a8] sm:$0xff]  ;;  %v1046_v53 = vld [vmem:[#allocation3 + $0x1638] sm:$0xff] }
  0xf1   :  { %v1062_v10 = vld [vmem:[#allocation3 + $0x16b8] sm:$0xff] }
  0xf2   :  { %3701 = vmatpush1.bf16.msra.mxu0 %v3700_v30  ;;  %3797 = vmatpush1.bf16.msra.mxu1 %v3796_v31  ;;  %v3720_v30 = vpack.c.bf16 %v899_v37, %v883_v62  ;;  %v3816_v31 = vpack.c.bf16 %v901_v17, %v885_v16  ;;  %v1043_v62 = vld [vmem:[#allocation3 + $0x1620] sm:$0xff]  ;;  %v1045_v16 = vld [vmem:[#allocation3 + $0x1630] sm:$0xff] }
  0xf3   :  { %3703 = vmatprep.subr.bf16.mxu0 %v3702_v20  ;;  %3799 = vmatprep.subr.bf16.mxu1 %v3798_v26  ;;  %v3722_v20 = vpack.c.bf16 %v932_v35, %v916_v5  ;;  %v3818_v26 = vpack.c.bf16 %v934_v13, %v918_v12  ;;  %v1059_v37 = vld [vmem:[#allocation3 + $0x16a0] sm:$0xff]  ;;  %v1061_v17 = vld [vmem:[#allocation3 + $0x16b0] sm:$0xff]  ;;  %v1076_v5 = vld [vmem:[#allocation3 + $0x1728] sm:$0xff] }
  0xf4   :  { %v1092_v35 = vld [vmem:[#allocation3 + $0x17a8] sm:$0xff]  ;;  %v1078_v12 = vld [vmem:[#allocation3 + $0x1738] sm:$0xff] }
  0xf5   :  { %v1094_v13 = vld [vmem:[#allocation3 + $0x17b8] sm:$0xff] }
  0xf6   :  { %3705 = vmatpush1.bf16.msra.mxu0 %v3704_v27  ;;  %3801 = vmatpush1.bf16.msra.mxu1 %v3800_v28  ;;  %v3724_v27 = vpack.c.bf16 %v931_v6, %v915_v32  ;;  %v3820_v28 = vpack.c.bf16 %v933_v49, %v917_v59  ;;  %v1075_v32 = vld [vmem:[#allocation3 + $0x1720] sm:$0xff]  ;;  %v1077_v59 = vld [vmem:[#allocation3 + $0x1730] sm:$0xff] }
  0xf7   :  { %3707 = vmatprep.subr.bf16.mxu0 %v3706_v1  ;;  %3803 = vmatprep.subr.bf16.mxu1 %v3802_v2  ;;  %v3726_v1 = vpack.c.bf16 %v964_v55, %v948_v54  ;;  %v3822_v2 = vpack.c.bf16 %v966_v23, %v950_v46  ;;  %v1091_v6 = vld [vmem:[#allocation3 + $0x17a0] sm:$0xff]  ;;  %v1093_v49 = vld [vmem:[#allocation3 + $0x17b0] sm:$0xff]  ;;  %v344_v54 = vld [vmem:[#allocation3 + $0x48] sm:$0xff] }
  0xf8   :  { %v360_v55 = vld [vmem:[#allocation3 + $0xc8] sm:$0xff]  ;;  %v346_v46 = vld [vmem:[#allocation3 + $0x58] sm:$0xff] }
  0xf9   :  { %v362_v23 = vld [vmem:[#allocation3 + $0xd8] sm:$0xff] }
  0xfa   :  { %3709 = vmatpush1.bf16.msra.mxu0 %v3708_v7  ;;  %3805 = vmatpush1.bf16.msra.mxu1 %v3804_v38  ;;  %v3728_v7 = vpack.c.bf16 %v963_v21, %v947_v56  ;;  %v3824_v38 = vpack.c.bf16 %v965_v34, %v949_v19  ;;  %v343_v56 = vld [vmem:[#allocation3 + $0x40] sm:$0xff]  ;;  %v345_v19 = vld [vmem:[#allocation3 + $0x50] sm:$0xff] }
  0xfb   :  { %3711 = vmatprep.subr.bf16.mxu0 %v3710_v39  ;;  %3807 = vmatprep.subr.bf16.mxu1 %v3806_v47  ;;  %v3730_v39 = vpack.c.bf16 %v996_v44, %v980_v40  ;;  %v3826_v47 = vpack.c.bf16 %v998_v0, %v982_v4  ;;  %v359_v21 = vld [vmem:[#allocation3 + $0xc0] sm:$0xff]  ;;  %v361_v34 = vld [vmem:[#allocation3 + $0xd0] sm:$0xff]  ;;  %v376_v40 = vld [vmem:[#allocation3 + $0x148] sm:$0xff] }
  0xfc   :  { %v392_v44 = vld [vmem:[#allocation3 + $0x1c8] sm:$0xff]  ;;  %v378_v4 = vld [vmem:[#allocation3 + $0x158] sm:$0xff] }
  0xfd   :  { %v394_v0 = vld [vmem:[#allocation3 + $0x1d8] sm:$0xff] }
  0xfe   :  { %3713 = vmatpush1.bf16.msra.mxu0 %v3712_v45  ;;  %3809 = vmatpush1.bf16.msra.mxu1 %v3808_v51  ;;  %v3732_v45 = vpack.c.bf16 %v995_v42, %v979_v41  ;;  %v3828_v51 = vpack.c.bf16 %v997_v48, %v981_v8  ;;  %v375_v41 = vld [vmem:[#allocation3 + $0x140] sm:$0xff]  ;;  %v377_v8 = vld [vmem:[#allocation3 + $0x150] sm:$0xff] }
  0xff   :  { %3715 = vmatprep.subr.bf16.mxu0 %v3714_v60  ;;  %3811 = vmatprep.subr.bf16.mxu1 %v3810_v3  ;;  %v3734_v60 = vpack.c.bf16 %v1028_v18, %v1012_v22  ;;  %v3830_v3 = vpack.c.bf16 %v1030_v57, %v1014_v33  ;;  %v391_v42 = vld [vmem:[#allocation3 + $0x1c0] sm:$0xff]  ;;  %v393_v48 = vld [vmem:[#allocation3 + $0x1d0] sm:$0xff]  ;;  %v408_v22 = vld [vmem:[#allocation3 + $0x248] sm:$0xff] }
 0x100   :  { %v424_v18 = vld [vmem:[#allocation3 + $0x2c8] sm:$0xff]  ;;  %v410_v33 = vld [vmem:[#allocation3 + $0x258] sm:$0xff] }
 0x101   :  { %1536 = vmatmul.mubr.f32.vlgmr.msra.gmra.mrb[2].mxu0 %v5090_v43  ;;  %1678 = vmatmul.mubr.f32.vlgmr.msra.gmra.mrb[2].mxu1 %v5090_v43  ;;  %v426_v57 = vld [vmem:[#allocation3 + $0x2d8] sm:$0xff] }
 0x102   :  { %3717 = vmatpush1.bf16.msra.mxu0 %v3716_v11  ;;  %3813 = vmatpush1.bf16.msra.mxu1 %v3812_v36  ;;  %v3736_v11 = vpack.c.bf16 %v1027_v61, %v1011_v52  ;;  %v3832_v36 = vpack.c.bf16 %v1029_v25, %v1013_v58  ;;  %v407_v52 = vld [vmem:[#allocation3 + $0x240] sm:$0xff]  ;;  %v409_v58 = vld [vmem:[#allocation3 + $0x250] sm:$0xff] }
 0x103   :  { %3719 = vmatprep.subr.bf16.mxu0 %v3718_v14  ;;  %3815 = vmatprep.subr.bf16.mxu1 %v3814_v15  ;;  %v3738_v14 = vpack.c.bf16 %v1060_v63, %v1044_v29  ;;  %v3834_v15 = vpack.c.bf16 %v1062_v10, %v1046_v53  ;;  %v423_v61 = vld [vmem:[#allocation3 + $0x2c0] sm:$0xff]  ;;  %v425_v25 = vld [vmem:[#allocation3 + $0x2d0] sm:$0xff]  ;;  %v440_v29 = vld [vmem:[#allocation3 + $0x348] sm:$0xff] }
 0x104   :  { %1606 = vmatprep.mubr.f32.mxu0 %v4627_v50  ;;  %1748 = vmatprep.mubr.f32.mxu1 %v4627_v50  ;;  %v456_v63 = vld [vmem:[#allocation3 + $0x3c8] sm:$0xff]  ;;  %v442_v53 = vld [vmem:[#allocation3 + $0x358] sm:$0xff] }
 0x105   :  { %v458_v10 = vld [vmem:[#allocation3 + $0x3d8] sm:$0xff] }
 0x106   :  { %3721 = vmatpush1.bf16.msra.mxu0 %v3720_v30  ;;  %3817 = vmatpush1.bf16.msra.mxu1 %v3816_v31  ;;  %v3740_v30 = vpack.c.bf16 %v1059_v37, %v1043_v62  ;;  %v3836_v31 = vpack.c.bf16 %v1061_v17, %v1045_v16  ;;  %v439_v62 = vld [vmem:[#allocation3 + $0x340] sm:$0xff]  ;;  %v441_v16 = vld [vmem:[#allocation3 + $0x350] sm:$0xff] }
 0x107   :  { %3723 = vmatprep.subr.bf16.mxu0 %v3722_v20  ;;  %3819 = vmatprep.subr.bf16.mxu1 %v3818_v26  ;;  %v3742_v20 = vpack.c.bf16 %v1092_v35, %v1076_v5  ;;  %v3838_v26 = vpack.c.bf16 %v1094_v13, %v1078_v12  ;;  %v455_v37 = vld [vmem:[#allocation3 + $0x3c0] sm:$0xff]  ;;  %v457_v17 = vld [vmem:[#allocation3 + $0x3d0] sm:$0xff]  ;;  %v472_v5 = vld [vmem:[#allocation3 + $0x448] sm:$0xff] }
 0x108   :  { %v488_v35 = vld [vmem:[#allocation3 + $0x4c8] sm:$0xff]  ;;  %v474_v12 = vld [vmem:[#allocation3 + $0x458] sm:$0xff] }
 0x109   :  { %v490_v13 = vld [vmem:[#allocation3 + $0x4d8] sm:$0xff] }
 0x10a   :  { %3725 = vmatpush1.bf16.msra.mxu0 %v3724_v27  ;;  %3821 = vmatpush1.bf16.msra.mxu1 %v3820_v28  ;;  %v3744_v27 = vpack.c.bf16 %v1091_v6, %v1075_v32  ;;  %v3840_v28 = vpack.c.bf16 %v1093_v49, %v1077_v59  ;;  %v471_v32 = vld [vmem:[#allocation3 + $0x440] sm:$0xff]  ;;  %v473_v59 = vld [vmem:[#allocation3 + $0x450] sm:$0xff] }
 0x10b   :  { %3727 = vmatprep.subr.bf16.mxu0 %v3726_v1  ;;  %3823 = vmatprep.subr.bf16.mxu1 %v3822_v2  ;;  %v3842_v1 = vpack.c.bf16 %v360_v55, %v344_v54  ;;  %v3938_v2 = vpack.c.bf16 %v362_v23, %v346_v46  ;;  %v487_v6 = vld [vmem:[#allocation3 + $0x4c0] sm:$0xff]  ;;  %v489_v49 = vld [vmem:[#allocation3 + $0x4d0] sm:$0xff]  ;;  %v504_v54 = vld [vmem:[#allocation3 + $0x548] sm:$0xff] }
 0x10c   :  { %v520_v55 = vld [vmem:[#allocation3 + $0x5c8] sm:$0xff]  ;;  %v506_v46 = vld [vmem:[#allocation3 + $0x558] sm:$0xff] }
 0x10d   :  { %v522_v23 = vld [vmem:[#allocation3 + $0x5d8] sm:$0xff] }
 0x10e   :  { %3729 = vmatpush1.bf16.msra.mxu0 %v3728_v7  ;;  %3825 = vmatpush1.bf16.msra.mxu1 %v3824_v38  ;;  %v3844_v7 = vpack.c.bf16 %v359_v21, %v343_v56  ;;  %v3940_v38 = vpack.c.bf16 %v361_v34, %v345_v19  ;;  %v503_v56 = vld [vmem:[#allocation3 + $0x540] sm:$0xff]  ;;  %v505_v19 = vld [vmem:[#allocation3 + $0x550] sm:$0xff] }
 0x10f   :  { %3731 = vmatprep.subr.bf16.mxu0 %v3730_v39  ;;  %3827 = vmatprep.subr.bf16.mxu1 %v3826_v47  ;;  %v3846_v39 = vpack.c.bf16 %v392_v44, %v376_v40  ;;  %v3942_v47 = vpack.c.bf16 %v394_v0, %v378_v4  ;;  %v519_v21 = vld [vmem:[#allocation3 + $0x5c0] sm:$0xff]  ;;  %v521_v34 = vld [vmem:[#allocation3 + $0x5d0] sm:$0xff]  ;;  %v536_v40 = vld [vmem:[#allocation3 + $0x648] sm:$0xff] }
 0x110   :  { %v552_v44 = vld [vmem:[#allocation3 + $0x6c8] sm:$0xff]  ;;  %v538_v4 = vld [vmem:[#allocation3 + $0x658] sm:$0xff] }
 0x111   :  { %v554_v0 = vld [vmem:[#allocation3 + $0x6d8] sm:$0xff] }
 0x112   :  { %3733 = vmatpush1.bf16.msra.mxu0 %v3732_v45  ;;  %3829 = vmatpush1.bf16.msra.mxu1 %v3828_v51  ;;  %v3848_v45 = vpack.c.bf16 %v391_v42, %v375_v41  ;;  %v3944_v51 = vpack.c.bf16 %v393_v48, %v377_v8  ;;  %v535_v41 = vld [vmem:[#allocation3 + $0x640] sm:$0xff]  ;;  %v537_v8 = vld [vmem:[#allocation3 + $0x650] sm:$0xff] }
 0x113   :  { %3735 = vmatprep.subr.bf16.mxu0 %v3734_v60  ;;  %3831 = vmatprep.subr.bf16.mxu1 %v3830_v3  ;;  %v3850_v60 = vpack.c.bf16 %v424_v18, %v408_v22  ;;  %v3946_v3 = vpack.c.bf16 %v426_v57, %v410_v33  ;;  %v551_v42 = vld [vmem:[#allocation3 + $0x6c0] sm:$0xff]  ;;  %v553_v48 = vld [vmem:[#allocation3 + $0x6d0] sm:$0xff]  ;;  %v568_v22 = vld [vmem:[#allocation3 + $0x748] sm:$0xff] }
 0x114   :  { %v584_v18 = vld [vmem:[#allocation3 + $0x7c8] sm:$0xff]  ;;  %v570_v33 = vld [vmem:[#allocation3 + $0x758] sm:$0xff] }
 0x115   :  { %v586_v57 = vld [vmem:[#allocation3 + $0x7d8] sm:$0xff] }
 0x116   :  { %3737 = vmatpush1.bf16.msra.mxu0 %v3736_v11  ;;  %3833 = vmatpush1.bf16.msra.mxu1 %v3832_v36  ;;  %v3852_v11 = vpack.c.bf16 %v423_v61, %v407_v52  ;;  %v3948_v36 = vpack.c.bf16 %v425_v25, %v409_v58  ;;  %v567_v52 = vld [vmem:[#allocation3 + $0x740] sm:$0xff]  ;;  %v569_v58 = vld [vmem:[#allocation3 + $0x750] sm:$0xff] }
 0x117   :  { %3739 = vmatprep.subr.bf16.mxu0 %v3738_v14  ;;  %3835 = vmatprep.subr.bf16.mxu1 %v3834_v15  ;;  %v3854_v14 = vpack.c.bf16 %v456_v63, %v440_v29  ;;  %v3950_v15 = vpack.c.bf16 %v458_v10, %v442_v53  ;;  %v583_v61 = vld [vmem:[#allocation3 + $0x7c0] sm:$0xff]  ;;  %v585_v25 = vld [vmem:[#allocation3 + $0x7d0] sm:$0xff]  ;;  %v600_v29 = vld [vmem:[#allocation3 + $0x848] sm:$0xff] }
 0x118   :  { %v616_v63 = vld [vmem:[#allocation3 + $0x8c8] sm:$0xff]  ;;  %v602_v53 = vld [vmem:[#allocation3 + $0x858] sm:$0xff] }
 0x119   :  { %v618_v10 = vld [vmem:[#allocation3 + $0x8d8] sm:$0xff] }
 0x11a   :  { %3741 = vmatpush1.bf16.msra.mxu0 %v3740_v30  ;;  %3837 = vmatpush1.bf16.msra.mxu1 %v3836_v31  ;;  %v3856_v30 = vpack.c.bf16 %v455_v37, %v439_v62  ;;  %v3952_v31 = vpack.c.bf16 %v457_v17, %v441_v16  ;;  %v599_v62 = vld [vmem:[#allocation3 + $0x840] sm:$0xff]  ;;  %v601_v16 = vld [vmem:[#allocation3 + $0x850] sm:$0xff] }
 0x11b   :  { %3743 = vmatprep.subr.bf16.mxu0 %v3742_v20  ;;  %3839 = vmatprep.subr.bf16.mxu1 %v3838_v26  ;;  %v3858_v20 = vpack.c.bf16 %v488_v35, %v472_v5  ;;  %v3954_v26 = vpack.c.bf16 %v490_v13, %v474_v12  ;;  %v615_v37 = vld [vmem:[#allocation3 + $0x8c0] sm:$0xff]  ;;  %v617_v17 = vld [vmem:[#allocation3 + $0x8d0] sm:$0xff]  ;;  %v632_v5 = vld [vmem:[#allocation3 + $0x948] sm:$0xff] }
 0x11c   :  { %v648_v35 = vld [vmem:[#allocation3 + $0x9c8] sm:$0xff]  ;;  %v634_v12 = vld [vmem:[#allocation3 + $0x958] sm:$0xff] }
 0x11d   :  { %v650_v13 = vld [vmem:[#allocation3 + $0x9d8] sm:$0xff] }
 0x11e   :  { %3745 = vmatpush1.bf16.msra.mxu0 %v3744_v27  ;;  %3841 = vmatpush1.bf16.msra.mxu1 %v3840_v28  ;;  %v3860_v27 = vpack.c.bf16 %v487_v6, %v471_v32  ;;  %v3956_v28 = vpack.c.bf16 %v489_v49, %v473_v59  ;;  %v631_v32 = vld [vmem:[#allocation3 + $0x940] sm:$0xff]  ;;  %v633_v59 = vld [vmem:[#allocation3 + $0x950] sm:$0xff] }
 0x11f   :  { %3843 = vmatprep.subr.bf16.mxu0 %v3842_v1  ;;  %3939 = vmatprep.subr.bf16.mxu1 %v3938_v2  ;;  %v3862_v1 = vpack.c.bf16 %v520_v55, %v504_v54  ;;  %v3958_v2 = vpack.c.bf16 %v522_v23, %v506_v46  ;;  %v647_v6 = vld [vmem:[#allocation3 + $0x9c0] sm:$0xff]  ;;  %v649_v49 = vld [vmem:[#allocation3 + $0x9d0] sm:$0xff]  ;;  %v664_v54 = vld [vmem:[#allocation3 + $0xa48] sm:$0xff] }
 0x120   :  { %v680_v55 = vld [vmem:[#allocation3 + $0xac8] sm:$0xff]  ;;  %v666_v46 = vld [vmem:[#allocation3 + $0xa58] sm:$0xff] }
 0x121   :  { %1607 = vmatmul.mubr.f32.vlgmr.msra.gmra.mrb[2].mxu0 %v5165_v9  ;;  %1749 = vmatmul.mubr.f32.vlgmr.msra.gmra.mrb[2].mxu1 %v5165_v9  ;;  %v682_v23 = vld [vmem:[#allocation3 + $0xad8] sm:$0xff] }
 0x122   :  { %3845 = vmatpush1.bf16.msra.mxu0 %v3844_v7  ;;  %3941 = vmatpush1.bf16.msra.mxu1 %v3940_v38  ;;  %v3864_v7 = vpack.c.bf16 %v519_v21, %v503_v56  ;;  %v3960_v38 = vpack.c.bf16 %v521_v34, %v505_v19  ;;  %v663_v56 = vld [vmem:[#allocation3 + $0xa40] sm:$0xff]  ;;  %v665_v19 = vld [vmem:[#allocation3 + $0xa50] sm:$0xff] }
 0x123   :  { %3847 = vmatprep.subr.bf16.mxu0 %v3846_v39  ;;  %3943 = vmatprep.subr.bf16.mxu1 %v3942_v47  ;;  %v3866_v39 = vpack.c.bf16 %v552_v44, %v536_v40  ;;  %v3962_v47 = vpack.c.bf16 %v554_v0, %v538_v4  ;;  %v679_v21 = vld [vmem:[#allocation3 + $0xac0] sm:$0xff]  ;;  %v681_v34 = vld [vmem:[#allocation3 + $0xad0] sm:$0xff]  ;;  %v696_v40 = vld [vmem:[#allocation3 + $0xb48] sm:$0xff] }
 0x124   :  { %1819 = vmatprep.mubr.f32.mxu0 %v4994_v24  ;;  %1961 = vmatprep.mubr.f32.mxu1 %v4994_v24  ;;  %v712_v44 = vld [vmem:[#allocation3 + $0xbc8] sm:$0xff]  ;;  %v698_v4 = vld [vmem:[#allocation3 + $0xb58] sm:$0xff] }
 0x125   :  { %v714_v0 = vld [vmem:[#allocation3 + $0xbd8] sm:$0xff] }
 0x126   :  { %3849 = vmatpush1.bf16.msra.mxu0 %v3848_v45  ;;  %3945 = vmatpush1.bf16.msra.mxu1 %v3944_v51  ;;  %v3868_v45 = vpack.c.bf16 %v551_v42, %v535_v41  ;;  %v3964_v51 = vpack.c.bf16 %v553_v48, %v537_v8  ;;  %v695_v41 = vld [vmem:[#allocation3 + $0xb40] sm:$0xff]  ;;  %v697_v8 = vld [vmem:[#allocation3 + $0xb50] sm:$0xff] }
 0x127   :  { %3851 = vmatprep.subr.bf16.mxu0 %v3850_v60  ;;  %3947 = vmatprep.subr.bf16.mxu1 %v3946_v3  ;;  %v3870_v60 = vpack.c.bf16 %v584_v18, %v568_v22  ;;  %v3966_v3 = vpack.c.bf16 %v586_v57, %v570_v33  ;;  %v711_v42 = vld [vmem:[#allocation3 + $0xbc0] sm:$0xff]  ;;  %v713_v48 = vld [vmem:[#allocation3 + $0xbd0] sm:$0xff]  ;;  %v728_v22 = vld [vmem:[#allocation3 + $0xc48] sm:$0xff] }
 0x128   :  { %v744_v18 = vld [vmem:[#allocation3 + $0xcc8] sm:$0xff]  ;;  %v730_v33 = vld [vmem:[#allocation3 + $0xc58] sm:$0xff] }
 0x129   :  { %v746_v57 = vld [vmem:[#allocation3 + $0xcd8] sm:$0xff] }
 0x12a   :  { %3853 = vmatpush1.bf16.msra.mxu0 %v3852_v11  ;;  %3949 = vmatpush1.bf16.msra.mxu1 %v3948_v36  ;;  %v3872_v11 = vpack.c.bf16 %v583_v61, %v567_v52  ;;  %v3968_v36 = vpack.c.bf16 %v585_v25, %v569_v58  ;;  %v727_v52 = vld [vmem:[#allocation3 + $0xc40] sm:$0xff]  ;;  %v729_v58 = vld [vmem:[#allocation3 + $0xc50] sm:$0xff] }
 0x12b   :  { %3855 = vmatprep.subr.bf16.mxu0 %v3854_v14  ;;  %3951 = vmatprep.subr.bf16.mxu1 %v3950_v15  ;;  %v3874_v14 = vpack.c.bf16 %v616_v63, %v600_v29  ;;  %v3970_v15 = vpack.c.bf16 %v618_v10, %v602_v53  ;;  %v743_v61 = vld [vmem:[#allocation3 + $0xcc0] sm:$0xff]  ;;  %v745_v25 = vld [vmem:[#allocation3 + $0xcd0] sm:$0xff]  ;;  %v760_v29 = vld [vmem:[#allocation3 + $0xd48] sm:$0xff] }
 0x12c   :  { %v776_v63 = vld [vmem:[#allocation3 + $0xdc8] sm:$0xff]  ;;  %v762_v53 = vld [vmem:[#allocation3 + $0xd58] sm:$0xff] }
 0x12d   :  { %v778_v10 = vld [vmem:[#allocation3 + $0xdd8] sm:$0xff] }
 0x12e   :  { %3857 = vmatpush1.bf16.msra.mxu0 %v3856_v30  ;;  %3953 = vmatpush1.bf16.msra.mxu1 %v3952_v31  ;;  %v3876_v30 = vpack.c.bf16 %v615_v37, %v599_v62  ;;  %v3972_v31 = vpack.c.bf16 %v617_v17, %v601_v16  ;;  %v759_v62 = vld [vmem:[#allocation3 + $0xd40] sm:$0xff]  ;;  %v761_v16 = vld [vmem:[#allocation3 + $0xd50] sm:$0xff] }
 0x12f   :  { %3859 = vmatprep.subr.bf16.mxu0 %v3858_v20  ;;  %3955 = vmatprep.subr.bf16.mxu1 %v3954_v26  ;;  %v3878_v20 = vpack.c.bf16 %v648_v35, %v632_v5  ;;  %v3974_v26 = vpack.c.bf16 %v650_v13, %v634_v12  ;;  %v775_v37 = vld [vmem:[#allocation3 + $0xdc0] sm:$0xff]  ;;  %v777_v17 = vld [vmem:[#allocation3 + $0xdd0] sm:$0xff]  ;;  %v792_v5 = vld [vmem:[#allocation3 + $0xe48] sm:$0xff] }
 0x130   :  { %v808_v35 = vld [vmem:[#allocation3 + $0xec8] sm:$0xff]  ;;  %v794_v12 = vld [vmem:[#allocation3 + $0xe58] sm:$0xff] }
 0x131   :  { %v810_v13 = vld [vmem:[#allocation3 + $0xed8] sm:$0xff] }
 0x132   :  { %3861 = vmatpush1.bf16.msra.mxu0 %v3860_v27  ;;  %3957 = vmatpush1.bf16.msra.mxu1 %v3956_v28  ;;  %v3880_v27 = vpack.c.bf16 %v647_v6, %v631_v32  ;;  %v3976_v28 = vpack.c.bf16 %v649_v49, %v633_v59  ;;  %v791_v32 = vld [vmem:[#allocation3 + $0xe40] sm:$0xff]  ;;  %v793_v59 = vld [vmem:[#allocation3 + $0xe50] sm:$0xff] }
 0x133   :  { %3863 = vmatprep.subr.bf16.mxu0 %v3862_v1  ;;  %3959 = vmatprep.subr.bf16.mxu1 %v3958_v2  ;;  %v3882_v1 = vpack.c.bf16 %v680_v55, %v664_v54  ;;  %v3978_v2 = vpack.c.bf16 %v682_v23, %v666_v46  ;;  %v807_v6 = vld [vmem:[#allocation3 + $0xec0] sm:$0xff]  ;;  %v809_v49 = vld [vmem:[#allocation3 + $0xed0] sm:$0xff]  ;;  %v824_v54 = vld [vmem:[#allocation3 + $0xf48] sm:$0xff] }
 0x134   :  { %v840_v55 = vld [vmem:[#allocation3 + $0xfc8] sm:$0xff]  ;;  %v826_v46 = vld [vmem:[#allocation3 + $0xf58] sm:$0xff] }
 0x135   :  { %v842_v23 = vld [vmem:[#allocation3 + $0xfd8] sm:$0xff] }
 0x136   :  { %3865 = vmatpush1.bf16.msra.mxu0 %v3864_v7  ;;  %3961 = vmatpush1.bf16.msra.mxu1 %v3960_v38  ;;  %v3884_v7 = vpack.c.bf16 %v679_v21, %v663_v56  ;;  %v3980_v38 = vpack.c.bf16 %v681_v34, %v665_v19  ;;  %v823_v56 = vld [vmem:[#allocation3 + $0xf40] sm:$0xff]  ;;  %v825_v19 = vld [vmem:[#allocation3 + $0xf50] sm:$0xff] }
 0x137   :  { %3867 = vmatprep.subr.bf16.mxu0 %v3866_v39  ;;  %3963 = vmatprep.subr.bf16.mxu1 %v3962_v47  ;;  %v3886_v39 = vpack.c.bf16 %v712_v44, %v696_v40  ;;  %v3982_v47 = vpack.c.bf16 %v714_v0, %v698_v4  ;;  %v839_v21 = vld [vmem:[#allocation3 + $0xfc0] sm:$0xff]  ;;  %v841_v34 = vld [vmem:[#allocation3 + $0xfd0] sm:$0xff]  ;;  %v856_v40 = vld [vmem:[#allocation3 + $0x1048] sm:$0xff] }
 0x138   :  { %v872_v44 = vld [vmem:[#allocation3 + $0x10c8] sm:$0xff]  ;;  %v858_v4 = vld [vmem:[#allocation3 + $0x1058] sm:$0xff] }
 0x139   :  { %v874_v0 = vld [vmem:[#allocation3 + $0x10d8] sm:$0xff] }
 0x13a   :  { %3869 = vmatpush1.bf16.msra.mxu0 %v3868_v45  ;;  %3965 = vmatpush1.bf16.msra.mxu1 %v3964_v51  ;;  %v3888_v45 = vpack.c.bf16 %v711_v42, %v695_v41  ;;  %v3984_v51 = vpack.c.bf16 %v713_v48, %v697_v8  ;;  %v855_v41 = vld [vmem:[#allocation3 + $0x1040] sm:$0xff]  ;;  %v857_v8 = vld [vmem:[#allocation3 + $0x1050] sm:$0xff] }
 0x13b   :  { %3871 = vmatprep.subr.bf16.mxu0 %v3870_v60  ;;  %3967 = vmatprep.subr.bf16.mxu1 %v3966_v3  ;;  %v3890_v60 = vpack.c.bf16 %v744_v18, %v728_v22  ;;  %v3986_v3 = vpack.c.bf16 %v746_v57, %v730_v33  ;;  %v871_v42 = vld [vmem:[#allocation3 + $0x10c0] sm:$0xff]  ;;  %v873_v48 = vld [vmem:[#allocation3 + $0x10d0] sm:$0xff]  ;;  %v888_v22 = vld [vmem:[#allocation3 + $0x1148] sm:$0xff] }
 0x13c   :  { %v904_v18 = vld [vmem:[#allocation3 + $0x11c8] sm:$0xff]  ;;  %v890_v33 = vld [vmem:[#allocation3 + $0x1158] sm:$0xff] }
 0x13d   :  { %v906_v57 = vld [vmem:[#allocation3 + $0x11d8] sm:$0xff] }
 0x13e   :  { %3873 = vmatpush1.bf16.msra.mxu0 %v3872_v11  ;;  %3969 = vmatpush1.bf16.msra.mxu1 %v3968_v36  ;;  %v3892_v11 = vpack.c.bf16 %v743_v61, %v727_v52  ;;  %v3988_v36 = vpack.c.bf16 %v745_v25, %v729_v58  ;;  %v887_v52 = vld [vmem:[#allocation3 + $0x1140] sm:$0xff]  ;;  %v889_v58 = vld [vmem:[#allocation3 + $0x1150] sm:$0xff] }
 0x13f   :  { %3875 = vmatprep.subr.bf16.mxu0 %v3874_v14  ;;  %3971 = vmatprep.subr.bf16.mxu1 %v3970_v15  ;;  %v3894_v14 = vpack.c.bf16 %v776_v63, %v760_v29  ;;  %v3990_v15 = vpack.c.bf16 %v778_v10, %v762_v53  ;;  %v903_v61 = vld [vmem:[#allocation3 + $0x11c0] sm:$0xff]  ;;  %v905_v25 = vld [vmem:[#allocation3 + $0x11d0] sm:$0xff]  ;;  %v920_v29 = vld [vmem:[#allocation3 + $0x1248] sm:$0xff] }
 0x140   :  { %v936_v63 = vld [vmem:[#allocation3 + $0x12c8] sm:$0xff]  ;;  %v922_v53 = vld [vmem:[#allocation3 + $0x1258] sm:$0xff] }
 0x141   :  { %v938_v10 = vld [vmem:[#allocation3 + $0x12d8] sm:$0xff] }
 0x142   :  { %3877 = vmatpush1.bf16.msra.mxu0 %v3876_v30  ;;  %3973 = vmatpush1.bf16.msra.mxu1 %v3972_v31  ;;  %v3896_v30 = vpack.c.bf16 %v775_v37, %v759_v62  ;;  %v3992_v31 = vpack.c.bf16 %v777_v17, %v761_v16  ;;  %v919_v62 = vld [vmem:[#allocation3 + $0x1240] sm:$0xff]  ;;  %v921_v16 = vld [vmem:[#allocation3 + $0x1250] sm:$0xff] }
 0x143   :  { %3879 = vmatprep.subr.bf16.mxu0 %v3878_v20  ;;  %3975 = vmatprep.subr.bf16.mxu1 %v3974_v26  ;;  %v3898_v20 = vpack.c.bf16 %v808_v35, %v792_v5  ;;  %v3994_v26 = vpack.c.bf16 %v810_v13, %v794_v12  ;;  %v935_v37 = vld [vmem:[#allocation3 + $0x12c0] sm:$0xff]  ;;  %v937_v17 = vld [vmem:[#allocation3 + $0x12d0] sm:$0xff]  ;;  %v952_v5 = vld [vmem:[#allocation3 + $0x1348] sm:$0xff] }
 0x144   :  { %v968_v35 = vld [vmem:[#allocation3 + $0x13c8] sm:$0xff]  ;;  %v954_v12 = vld [vmem:[#allocation3 + $0x1358] sm:$0xff] }
 0x145   :  { %v970_v13 = vld [vmem:[#allocation3 + $0x13d8] sm:$0xff] }
 0x146   :  { %3881 = vmatpush1.bf16.msra.mxu0 %v3880_v27  ;;  %3977 = vmatpush1.bf16.msra.mxu1 %v3976_v28  ;;  %v3900_v27 = vpack.c.bf16 %v807_v6, %v791_v32  ;;  %v3996_v28 = vpack.c.bf16 %v809_v49, %v793_v59  ;;  %v951_v32 = vld [vmem:[#allocation3 + $0x1340] sm:$0xff]  ;;  %v953_v59 = vld [vmem:[#allocation3 + $0x1350] sm:$0xff] }
 0x147   :  { %3883 = vmatprep.subr.bf16.mxu0 %v3882_v1  ;;  %3979 = vmatprep.subr.bf16.mxu1 %v3978_v2  ;;  %v3902_v1 = vpack.c.bf16 %v840_v55, %v824_v54  ;;  %v3998_v2 = vpack.c.bf16 %v842_v23, %v826_v46  ;;  %v967_v6 = vld [vmem:[#allocation3 + $0x13c0] sm:$0xff]  ;;  %v969_v49 = vld [vmem:[#allocation3 + $0x13d0] sm:$0xff]  ;;  %v984_v54 = vld [vmem:[#allocation3 + $0x1448] sm:$0xff] }
 0x148   :  { %v1000_v55 = vld [vmem:[#allocation3 + $0x14c8] sm:$0xff]  ;;  %v986_v46 = vld [vmem:[#allocation3 + $0x1458] sm:$0xff] }
 0x149   :  { %v1002_v23 = vld [vmem:[#allocation3 + $0x14d8] sm:$0xff] }
 0x14a   :  { %3885 = vmatpush1.bf16.msra.mxu0 %v3884_v7  ;;  %3981 = vmatpush1.bf16.msra.mxu1 %v3980_v38  ;;  %v3904_v7 = vpack.c.bf16 %v839_v21, %v823_v56  ;;  %v4000_v38 = vpack.c.bf16 %v841_v34, %v825_v19  ;;  %v983_v56 = vld [vmem:[#allocation3 + $0x1440] sm:$0xff]  ;;  %v985_v19 = vld [vmem:[#allocation3 + $0x1450] sm:$0xff] }
 0x14b   :  { %3887 = vmatprep.subr.bf16.mxu0 %v3886_v39  ;;  %3983 = vmatprep.subr.bf16.mxu1 %v3982_v47  ;;  %v3906_v39 = vpack.c.bf16 %v872_v44, %v856_v40  ;;  %v4002_v47 = vpack.c.bf16 %v874_v0, %v858_v4  ;;  %v999_v21 = vld [vmem:[#allocation3 + $0x14c0] sm:$0xff]  ;;  %v1001_v34 = vld [vmem:[#allocation3 + $0x14d0] sm:$0xff]  ;;  %v1016_v40 = vld [vmem:[#allocation3 + $0x1548] sm:$0xff] }
 0x14c   :  { %v1032_v44 = vld [vmem:[#allocation3 + $0x15c8] sm:$0xff]  ;;  %v1018_v4 = vld [vmem:[#allocation3 + $0x1558] sm:$0xff] }
 0x14d   :  { %v1034_v0 = vld [vmem:[#allocation3 + $0x15d8] sm:$0xff] }
 0x14e   :  { %3889 = vmatpush1.bf16.msra.mxu0 %v3888_v45  ;;  %3985 = vmatpush1.bf16.msra.mxu1 %v3984_v51  ;;  %v3908_v45 = vpack.c.bf16 %v871_v42, %v855_v41  ;;  %v4004_v51 = vpack.c.bf16 %v873_v48, %v857_v8  ;;  %v1015_v41 = vld [vmem:[#allocation3 + $0x1540] sm:$0xff]  ;;  %v1017_v8 = vld [vmem:[#allocation3 + $0x1550] sm:$0xff] }
 0x14f   :  { %3891 = vmatprep.subr.bf16.mxu0 %v3890_v60  ;;  %3987 = vmatprep.subr.bf16.mxu1 %v3986_v3  ;;  %v3910_v60 = vpack.c.bf16 %v904_v18, %v888_v22  ;;  %v4006_v3 = vpack.c.bf16 %v906_v57, %v890_v33  ;;  %v1031_v42 = vld [vmem:[#allocation3 + $0x15c0] sm:$0xff]  ;;  %v1033_v48 = vld [vmem:[#allocation3 + $0x15d0] sm:$0xff]  ;;  %v1048_v22 = vld [vmem:[#allocation3 + $0x1648] sm:$0xff] }
 0x150   :  { %v1064_v18 = vld [vmem:[#allocation3 + $0x16c8] sm:$0xff]  ;;  %v1050_v33 = vld [vmem:[#allocation3 + $0x1658] sm:$0xff] }
 0x151   :  { %v1066_v57 = vld [vmem:[#allocation3 + $0x16d8] sm:$0xff] }
 0x152   :  { %3893 = vmatpush1.bf16.msra.mxu0 %v3892_v11  ;;  %3989 = vmatpush1.bf16.msra.mxu1 %v3988_v36  ;;  %v3912_v11 = vpack.c.bf16 %v903_v61, %v887_v52  ;;  %v4008_v36 = vpack.c.bf16 %v905_v25, %v889_v58  ;;  %v1047_v52 = vld [vmem:[#allocation3 + $0x1640] sm:$0xff]  ;;  %v1049_v58 = vld [vmem:[#allocation3 + $0x1650] sm:$0xff] }
 0x153   :  { %3895 = vmatprep.subr.bf16.mxu0 %v3894_v14  ;;  %3991 = vmatprep.subr.bf16.mxu1 %v3990_v15  ;;  %v3914_v14 = vpack.c.bf16 %v936_v63, %v920_v29  ;;  %v4010_v15 = vpack.c.bf16 %v938_v10, %v922_v53  ;;  %v1063_v61 = vld [vmem:[#allocation3 + $0x16c0] sm:$0xff]  ;;  %v1065_v25 = vld [vmem:[#allocation3 + $0x16d0] sm:$0xff]  ;;  %v1080_v29 = vld [vmem:[#allocation3 + $0x1748] sm:$0xff] }
 0x154   :  { %v1096_v63 = vld [vmem:[#allocation3 + $0x17c8] sm:$0xff]  ;;  %v1082_v53 = vld [vmem:[#allocation3 + $0x1758] sm:$0xff] }
 0x155   :  { %v1098_v10 = vld [vmem:[#allocation3 + $0x17d8] sm:$0xff] }
 0x156   :  { %3897 = vmatpush1.bf16.msra.mxu0 %v3896_v30  ;;  %3993 = vmatpush1.bf16.msra.mxu1 %v3992_v31  ;;  %v3916_v30 = vpack.c.bf16 %v935_v37, %v919_v62  ;;  %v4012_v31 = vpack.c.bf16 %v937_v17, %v921_v16  ;;  %v1079_v62 = vld [vmem:[#allocation3 + $0x1740] sm:$0xff]  ;;  %v1081_v16 = vld [vmem:[#allocation3 + $0x1750] sm:$0xff] }
 0x157   :  { %3899 = vmatprep.subr.bf16.mxu0 %v3898_v20  ;;  %3995 = vmatprep.subr.bf16.mxu1 %v3994_v26  ;;  %v3918_v20 = vpack.c.bf16 %v968_v35, %v952_v5  ;;  %v4014_v26 = vpack.c.bf16 %v970_v13, %v954_v12  ;;  %v1095_v37 = vld [vmem:[#allocation3 + $0x17c0] sm:$0xff]  ;;  %v1097_v17 = vld [vmem:[#allocation3 + $0x17d0] sm:$0xff]  ;;  %v348_v5 = vld [vmem:[#allocation3 + $0x68] sm:$0xff] }
 0x158   :  { %v364_v35 = vld [vmem:[#allocation3 + $0xe8] sm:$0xff]  ;;  %v350_v12 = vld [vmem:[#allocation3 + $0x78] sm:$0xff] }
 0x159   :  { %v366_v13 = vld [vmem:[#allocation3 + $0xf8] sm:$0xff] }
 0x15a   :  { %3901 = vmatpush1.bf16.msra.mxu0 %v3900_v27  ;;  %3997 = vmatpush1.bf16.msra.mxu1 %v3996_v28  ;;  %v3920_v27 = vpack.c.bf16 %v967_v6, %v951_v32  ;;  %v4016_v28 = vpack.c.bf16 %v969_v49, %v953_v59  ;;  %v347_v32 = vld [vmem:[#allocation3 + $0x60] sm:$0xff]  ;;  %v349_v59 = vld [vmem:[#allocation3 + $0x70] sm:$0xff] }
 0x15b   :  { %3903 = vmatprep.subr.bf16.mxu0 %v3902_v1  ;;  %3999 = vmatprep.subr.bf16.mxu1 %v3998_v2  ;;  %v3922_v1 = vpack.c.bf16 %v1000_v55, %v984_v54  ;;  %v4018_v2 = vpack.c.bf16 %v1002_v23, %v986_v46  ;;  %v363_v6 = vld [vmem:[#allocation3 + $0xe0] sm:$0xff]  ;;  %v365_v49 = vld [vmem:[#allocation3 + $0xf0] sm:$0xff]  ;;  %v380_v54 = vld [vmem:[#allocation3 + $0x168] sm:$0xff] }
 0x15c   :  { %v396_v55 = vld [vmem:[#allocation3 + $0x1e8] sm:$0xff]  ;;  %v382_v46 = vld [vmem:[#allocation3 + $0x178] sm:$0xff] }
 0x15d   :  { %v398_v23 = vld [vmem:[#allocation3 + $0x1f8] sm:$0xff] }
 0x15e   :  { %3905 = vmatpush1.bf16.msra.mxu0 %v3904_v7  ;;  %4001 = vmatpush1.bf16.msra.mxu1 %v4000_v38  ;;  %v3924_v7 = vpack.c.bf16 %v999_v21, %v983_v56  ;;  %v4020_v38 = vpack.c.bf16 %v1001_v34, %v985_v19  ;;  %v379_v56 = vld [vmem:[#allocation3 + $0x160] sm:$0xff]  ;;  %v381_v19 = vld [vmem:[#allocation3 + $0x170] sm:$0xff] }
 0x15f   :  { %3907 = vmatprep.subr.bf16.mxu0 %v3906_v39  ;;  %4003 = vmatprep.subr.bf16.mxu1 %v4002_v47  ;;  %v3926_v39 = vpack.c.bf16 %v1032_v44, %v1016_v40  ;;  %v4022_v47 = vpack.c.bf16 %v1034_v0, %v1018_v4  ;;  %v395_v21 = vld [vmem:[#allocation3 + $0x1e0] sm:$0xff]  ;;  %v397_v34 = vld [vmem:[#allocation3 + $0x1f0] sm:$0xff]  ;;  %v412_v40 = vld [vmem:[#allocation3 + $0x268] sm:$0xff] }
 0x160   :  { %v428_v44 = vld [vmem:[#allocation3 + $0x2e8] sm:$0xff]  ;;  %v414_v4 = vld [vmem:[#allocation3 + $0x278] sm:$0xff] }
 0x161   :  { %1820 = vmatmul.mubr.f32.vlgmr.msra.gmra.mrb[4].mxu0 %v5090_v43  ;;  %1962 = vmatmul.mubr.f32.vlgmr.msra.gmra.mrb[4].mxu1 %v5090_v43  ;;  %v430_v0 = vld [vmem:[#allocation3 + $0x2f8] sm:$0xff] }
 0x162   :  { %3909 = vmatpush1.bf16.msra.mxu0 %v3908_v45  ;;  %4005 = vmatpush1.bf16.msra.mxu1 %v4004_v51  ;;  %v3928_v45 = vpack.c.bf16 %v1031_v42, %v1015_v41  ;;  %v4024_v51 = vpack.c.bf16 %v1033_v48, %v1017_v8  ;;  %v411_v41 = vld [vmem:[#allocation3 + $0x260] sm:$0xff]  ;;  %v413_v8 = vld [vmem:[#allocation3 + $0x270] sm:$0xff] }
 0x163   :  { %3911 = vmatprep.subr.bf16.mxu0 %v3910_v60  ;;  %4007 = vmatprep.subr.bf16.mxu1 %v4006_v3  ;;  %v3930_v60 = vpack.c.bf16 %v1064_v18, %v1048_v22  ;;  %v4026_v3 = vpack.c.bf16 %v1066_v57, %v1050_v33  ;;  %v427_v42 = vld [vmem:[#allocation3 + $0x2e0] sm:$0xff]  ;;  %v429_v48 = vld [vmem:[#allocation3 + $0x2f0] sm:$0xff]  ;;  %v444_v22 = vld [vmem:[#allocation3 + $0x368] sm:$0xff] }
 0x164   :  { %1890 = vmatprep.mubr.f32.mxu0 %v4627_v50  ;;  %2032 = vmatprep.mubr.f32.mxu1 %v4627_v50  ;;  %v460_v18 = vld [vmem:[#allocation3 + $0x3e8] sm:$0xff]  ;;  %v446_v33 = vld [vmem:[#allocation3 + $0x378] sm:$0xff] }
 0x165   :  { %v462_v57 = vld [vmem:[#allocation3 + $0x3f8] sm:$0xff] }
 0x166   :  { %3913 = vmatpush1.bf16.msra.mxu0 %v3912_v11  ;;  %4009 = vmatpush1.bf16.msra.mxu1 %v4008_v36  ;;  %v3932_v11 = vpack.c.bf16 %v1063_v61, %v1047_v52  ;;  %v4028_v36 = vpack.c.bf16 %v1065_v25, %v1049_v58  ;;  %v443_v52 = vld [vmem:[#allocation3 + $0x360] sm:$0xff]  ;;  %v445_v58 = vld [vmem:[#allocation3 + $0x370] sm:$0xff] }
 0x167   :  { %3915 = vmatprep.subr.bf16.mxu0 %v3914_v14  ;;  %4011 = vmatprep.subr.bf16.mxu1 %v4010_v15  ;;  %v3934_v14 = vpack.c.bf16 %v1096_v63, %v1080_v29  ;;  %v4030_v15 = vpack.c.bf16 %v1098_v10, %v1082_v53  ;;  %v459_v61 = vld [vmem:[#allocation3 + $0x3e0] sm:$0xff]  ;;  %v461_v25 = vld [vmem:[#allocation3 + $0x3f0] sm:$0xff]  ;;  %v476_v29 = vld [vmem:[#allocation3 + $0x468] sm:$0xff] }
 0x168   :  { %v492_v63 = vld [vmem:[#allocation3 + $0x4e8] sm:$0xff]  ;;  %v478_v53 = vld [vmem:[#allocation3 + $0x478] sm:$0xff] }
 0x169   :  { %v494_v10 = vld [vmem:[#allocation3 + $0x4f8] sm:$0xff] }
 0x16a   :  { %3917 = vmatpush1.bf16.msra.mxu0 %v3916_v30  ;;  %4013 = vmatpush1.bf16.msra.mxu1 %v4012_v31  ;;  %v3936_v30 = vpack.c.bf16 %v1095_v37, %v1079_v62  ;;  %v4032_v31 = vpack.c.bf16 %v1097_v17, %v1081_v16  ;;  %v491_v62 = vld [vmem:[#allocation3 + $0x4e0] sm:$0xff]  ;;  %v4050_v37 = vpack.c.bf16 %v492_v63, %v476_v29  ;;  %v493_v16 = vld [vmem:[#allocation3 + $0x4f0] sm:$0xff]  ;;  %v508_v17 = vld [vmem:[#allocation3 + $0x568] sm:$0xff] }
 0x16b   :  { %3919 = vmatprep.subr.bf16.mxu0 %v3918_v20  ;;  %4015 = vmatprep.subr.bf16.mxu1 %v4014_v26  ;;  %v4034_v20 = vpack.c.bf16 %v364_v35, %v348_v5  ;;  %v4130_v26 = vpack.c.bf16 %v366_v13, %v350_v12  ;;  %v524_v5 = vld [vmem:[#allocation3 + $0x5e8] sm:$0xff]  ;;  %v510_v35 = vld [vmem:[#allocation3 + $0x578] sm:$0xff]  ;;  %v605_v63 = vld [vmem:[#allocation3 + $0x870] sm:$0xff] }
 0x16c   :  { %v526_v12 = vld [vmem:[#allocation3 + $0x5f8] sm:$0xff] }
 0x16e   :  { %3921 = vmatpush1.bf16.msra.mxu0 %v3920_v27  ;;  %4017 = vmatpush1.bf16.msra.mxu1 %v4016_v28  ;;  %v4036_v27 = vpack.c.bf16 %v363_v6, %v347_v32  ;;  %v4132_v28 = vpack.c.bf16 %v365_v49, %v349_v59  ;;  %v523_v32 = vld [vmem:[#allocation3 + $0x5e0] sm:$0xff]  ;;  %v4054_v6 = vpack.c.bf16 %v524_v5, %v508_v17  ;;  %v525_v59 = vld [vmem:[#allocation3 + $0x5f0] sm:$0xff]  ;;  %v540_v49 = vld [vmem:[#allocation3 + $0x668] sm:$0xff] }
 0x16f   :  { %3923 = vmatprep.subr.bf16.mxu0 %v3922_v1  ;;  %4019 = vmatprep.subr.bf16.mxu1 %v4018_v2  ;;  %v4038_v1 = vpack.c.bf16 %v396_v55, %v380_v54  ;;  %v4134_v2 = vpack.c.bf16 %v398_v23, %v382_v46  ;;  %v556_v54 = vld [vmem:[#allocation3 + $0x6e8] sm:$0xff]  ;;  %v542_v55 = vld [vmem:[#allocation3 + $0x678] sm:$0xff]  ;;  %v637_v5 = vld [vmem:[#allocation3 + $0x970] sm:$0xff] }
 0x170   :  { %v558_v46 = vld [vmem:[#allocation3 + $0x6f8] sm:$0xff] }
 0x172   :  { %3925 = vmatpush1.bf16.msra.mxu0 %v3924_v7  ;;  %4021 = vmatpush1.bf16.msra.mxu1 %v4020_v38  ;;  %v4040_v7 = vpack.c.bf16 %v395_v21, %v379_v56  ;;  %v4136_v38 = vpack.c.bf16 %v397_v34, %v381_v19  ;;  %v555_v56 = vld [vmem:[#allocation3 + $0x6e0] sm:$0xff]  ;;  %v4058_v21 = vpack.c.bf16 %v556_v54, %v540_v49  ;;  %v557_v19 = vld [vmem:[#allocation3 + $0x6f0] sm:$0xff]  ;;  %v572_v34 = vld [vmem:[#allocation3 + $0x768] sm:$0xff] }
 0x173   :  { %3927 = vmatprep.subr.bf16.mxu0 %v3926_v39  ;;  %4023 = vmatprep.subr.bf16.mxu1 %v4022_v47  ;;  %v4042_v39 = vpack.c.bf16 %v428_v44, %v412_v40  ;;  %v4138_v47 = vpack.c.bf16 %v430_v0, %v414_v4  ;;  %v588_v4 = vld [vmem:[#allocation3 + $0x7e8] sm:$0xff]  ;;  %v574_v0 = vld [vmem:[#allocation3 + $0x778] sm:$0xff]  ;;  %v669_v54 = vld [vmem:[#allocation3 + $0xa70] sm:$0xff] }
 0x176   :  { %3929 = vmatpush1.bf16.msra.mxu0 %v3928_v45  ;;  %4025 = vmatpush1.bf16.msra.mxu1 %v4024_v51  ;;  %v4044_v45 = vpack.c.bf16 %v427_v42, %v411_v41  ;;  %v4140_v51 = vpack.c.bf16 %v429_v48, %v413_v8  ;;  %v587_v8 = vld [vmem:[#allocation3 + $0x7e0] sm:$0xff]  ;;  %v4062_v48 = vpack.c.bf16 %v588_v4, %v572_v34  ;;  %v701_v4 = vld [vmem:[#allocation3 + $0xb70] sm:$0xff] }
 0x177   :  { %3931 = vmatprep.subr.bf16.mxu0 %v3930_v60  ;;  %4027 = vmatprep.subr.bf16.mxu1 %v4026_v3  ;;  %v4046_v60 = vpack.c.bf16 %v460_v18, %v444_v22  ;;  %v4142_v3 = vpack.c.bf16 %v462_v57, %v446_v33  ;;  %v573_v18 = vld [vmem:[#allocation3 + $0x770] sm:$0xff]  ;;  %v604_v57 = vld [vmem:[#allocation3 + $0x868] sm:$0xff] }
 0x178   :  { %v589_v33 = vld [vmem:[#allocation3 + $0x7f0] sm:$0xff] }
 0x17a   :  { %3933 = vmatpush1.bf16.msra.mxu0 %v3932_v11  ;;  %4029 = vmatpush1.bf16.msra.mxu1 %v4028_v36  ;;  %v4048_v11 = vpack.c.bf16 %v459_v61, %v443_v52  ;;  %v475_v36 = vld [vmem:[#allocation3 + $0x460] sm:$0xff]  ;;  %v622_v52 = vld [vmem:[#allocation3 + $0x8f8] sm:$0xff] }
 0x17b   :  { %3935 = vmatprep.subr.bf16.mxu0 %v3934_v14  ;;  %4031 = vmatprep.subr.bf16.mxu1 %v4030_v15  ;;  %v4146_v14 = vpack.c.bf16 %v494_v10, %v478_v53  ;;  %v477_v15 = vld [vmem:[#allocation3 + $0x470] sm:$0xff]  ;;  %v4052_v13 = vpack.c.bf16 %v491_v62, %v475_v36  ;;  %v636_v10 = vld [vmem:[#allocation3 + $0x968] sm:$0xff]  ;;  %v654_v36 = vld [vmem:[#allocation3 + $0x9f8] sm:$0xff] }
 0x17c   :  { %v621_v53 = vld [vmem:[#allocation3 + $0x8f0] sm:$0xff] }
 0x17e   :  { %3937 = vmatpush1.bf16.msra.mxu0 %v3936_v30  ;;  %4033 = vmatpush1.bf16.msra.mxu1 %v4032_v31  ;;  %v4148_v30 = vpack.c.bf16 %v493_v16, %v477_v15  ;;  %v507_v31 = vld [vmem:[#allocation3 + $0x560] sm:$0xff] }
 0x17f   :  { %4035 = vmatprep.subr.bf16.mxu0 %v4034_v20  ;;  %4131 = vmatprep.subr.bf16.mxu1 %v4130_v26  ;;  %v4150_v20 = vpack.c.bf16 %v526_v12, %v510_v35  ;;  %v509_v26 = vld [vmem:[#allocation3 + $0x570] sm:$0xff]  ;;  %v4056_v23 = vpack.c.bf16 %v523_v32, %v507_v31  ;;  %v651_v15 = vld [vmem:[#allocation3 + $0x9e0] sm:$0xff]  ;;  %v668_v12 = vld [vmem:[#allocation3 + $0xa68] sm:$0xff] }
 0x180   :  { %v653_v35 = vld [vmem:[#allocation3 + $0x9f0] sm:$0xff]  ;;  %v686_v31 = vld [vmem:[#allocation3 + $0xaf8] sm:$0xff] }
 0x181   :  { %1891 = vmatmul.mubr.f32.vlgmr.msra.gmra.mrb[4].mxu0 %v5165_v9  ;;  %2033 = vmatmul.mubr.f32.vlgmr.msra.gmra.mrb[4].mxu1 %v5165_v9 }
 0x182   :  { %4037 = vmatpush1.bf16.msra.mxu0 %v4036_v27  ;;  %4133 = vmatpush1.bf16.msra.mxu1 %v4132_v28  ;;  %v4152_v27 = vpack.c.bf16 %v525_v59, %v509_v26  ;;  %v539_v28 = vld [vmem:[#allocation3 + $0x660] sm:$0xff] }
 0x183   :  { %4039 = vmatprep.subr.bf16.mxu0 %v4038_v1  ;;  %4135 = vmatprep.subr.bf16.mxu1 %v4134_v2  ;;  %v4154_v1 = vpack.c.bf16 %v558_v46, %v542_v55  ;;  %v541_v2 = vld [vmem:[#allocation3 + $0x670] sm:$0xff]  ;;  %v4060_v42 = vpack.c.bf16 %v555_v56, %v539_v28  ;;  %v683_v26 = vld [vmem:[#allocation3 + $0xae0] sm:$0xff]  ;;  %v700_v46 = vld [vmem:[#allocation3 + $0xb68] sm:$0xff] }
 0x184   :  { %2103 = vmatprep.mubr.f32.mxu0 %v4994_v24  ;;  %2245 = vmatprep.mubr.f32.mxu1 %v4994_v24  ;;  %v4144_v24 = vpack.c.bf16 %v461_v25, %v445_v58  ;;  %v619_v58 = vld [vmem:[#allocation3 + $0x8e0] sm:$0xff]  ;;  %v685_v55 = vld [vmem:[#allocation3 + $0xaf0] sm:$0xff]  ;;  %v718_v28 = vld [vmem:[#allocation3 + $0xbf8] sm:$0xff] }
 0x186   :  { %4041 = vmatpush1.bf16.msra.mxu0 %v4040_v7  ;;  %4137 = vmatpush1.bf16.msra.mxu1 %v4136_v38  ;;  %v590_v7 = vld [vmem:[#allocation3 + $0x7f8] sm:$0xff] }
 0x187   :  { %4043 = vmatprep.subr.bf16.mxu0 %v4042_v39  ;;  %4139 = vmatprep.subr.bf16.mxu1 %v4138_v47  ;;  %v4156_v39 = vpack.c.bf16 %v557_v19, %v541_v2  ;;  %v571_v47 = vld [vmem:[#allocation3 + $0x760] sm:$0xff]  ;;  %v4158_v22 = vpack.c.bf16 %v590_v7, %v574_v0  ;;  %v717_v0 = vld [vmem:[#allocation3 + $0xbf0] sm:$0xff]  ;;  %v732_v7 = vld [vmem:[#allocation3 + $0xc68] sm:$0xff] }
 0x188   :  { %v4064_v61 = vpack.c.bf16 %v587_v8, %v571_v47  ;;  %v715_v2 = vld [vmem:[#allocation3 + $0xbe0] sm:$0xff]  ;;  %v750_v47 = vld [vmem:[#allocation3 + $0xcf8] sm:$0xff] }
 0x18a   :  { %4045 = vmatpush1.bf16.msra.mxu0 %v4044_v45  ;;  %4141 = vmatpush1.bf16.msra.mxu1 %v4140_v51  ;;  %v620_v45 = vld [vmem:[#allocation3 + $0x8e8] sm:$0xff]  ;;  %v606_v51 = vld [vmem:[#allocation3 + $0x878] sm:$0xff] }
 0x18b   :  { %4047 = vmatprep.subr.bf16.mxu0 %v4046_v60  ;;  %4143 = vmatprep.subr.bf16.mxu1 %v4142_v3  ;;  %v4160_v60 = vpack.c.bf16 %v589_v33, %v573_v18  ;;  %v603_v3 = vld [vmem:[#allocation3 + $0x860] sm:$0xff]  ;;  %v4066_v25 = vpack.c.bf16 %v620_v45, %v604_v57  ;;  %v4162_v29 = vpack.c.bf16 %v622_v52, %v606_v51  ;;  %v733_v45 = vld [vmem:[#allocation3 + $0xc70] sm:$0xff]  ;;  %v764_v52 = vld [vmem:[#allocation3 + $0xd68] sm:$0xff] }
 0x18c   :  { %v4068_v62 = vpack.c.bf16 %v619_v58, %v603_v3  ;;  %v747_v18 = vld [vmem:[#allocation3 + $0xce0] sm:$0xff]  ;;  %v749_v51 = vld [vmem:[#allocation3 + $0xcf0] sm:$0xff]  ;;  %v782_v3 = vld [vmem:[#allocation3 + $0xdf8] sm:$0xff] }
 0x18e   :  { %4049 = vmatpush1.bf16.msra.mxu0 %v4048_v11  ;;  %4145 = vmatpush1.bf16.msra.mxu1 %v4144_v24  ;;  %v652_v11 = vld [vmem:[#allocation3 + $0x9e8] sm:$0xff]  ;;  %v638_v24 = vld [vmem:[#allocation3 + $0x978] sm:$0xff] }
 0x18f   :  { %4051 = vmatprep.subr.bf16.mxu0 %v4050_v37  ;;  %4147 = vmatprep.subr.bf16.mxu1 %v4146_v14  ;;  %v4164_v37 = vpack.c.bf16 %v621_v53, %v605_v63  ;;  %v635_v14 = vld [vmem:[#allocation3 + $0x960] sm:$0xff]  ;;  %v4070_v16 = vpack.c.bf16 %v652_v11, %v636_v10  ;;  %v4166_v17 = vpack.c.bf16 %v654_v36, %v638_v24  ;;  %v765_v11 = vld [vmem:[#allocation3 + $0xd70] sm:$0xff]  ;;  %v796_v36 = vld [vmem:[#allocation3 + $0xe68] sm:$0xff] }
 0x190   :  { %v4072_v32 = vpack.c.bf16 %v651_v15, %v635_v14  ;;  %v779_v63 = vld [vmem:[#allocation3 + $0xde0] sm:$0xff]  ;;  %v781_v24 = vld [vmem:[#allocation3 + $0xdf0] sm:$0xff]  ;;  %v814_v14 = vld [vmem:[#allocation3 + $0xef8] sm:$0xff] }
 0x192   :  { %4053 = vmatpush1.bf16.msra.mxu0 %v4052_v13  ;;  %4149 = vmatpush1.bf16.msra.mxu1 %v4148_v30  ;;  %v684_v13 = vld [vmem:[#allocation3 + $0xae8] sm:$0xff]  ;;  %v670_v30 = vld [vmem:[#allocation3 + $0xa78] sm:$0xff] }
 0x193   :  { %4055 = vmatprep.subr.bf16.mxu0 %v4054_v6  ;;  %4151 = vmatprep.subr.bf16.mxu1 %v4150_v20  ;;  %v4168_v6 = vpack.c.bf16 %v653_v35, %v637_v5  ;;  %v667_v20 = vld [vmem:[#allocation3 + $0xa60] sm:$0xff]  ;;  %v4074_v59 = vpack.c.bf16 %v684_v13, %v668_v12  ;;  %v4170_v49 = vpack.c.bf16 %v686_v31, %v670_v30  ;;  %v797_v13 = vld [vmem:[#allocation3 + $0xe70] sm:$0xff]  ;;  %v828_v31 = vld [vmem:[#allocation3 + $0xf68] sm:$0xff] }
 0x194   :  { %v5187_v40 = vpop.f32.mrb[0].mxu0  ;;  %v5189_v44 = vpop.f32.mrb[0].mxu1  ;;  %v4076_v56 = vpack.c.bf16 %v683_v26, %v667_v20  ;;  %v811_v5 = vld [vmem:[#allocation3 + $0xee0] sm:$0xff]  ;;  %v813_v30 = vld [vmem:[#allocation3 + $0xef0] sm:$0xff]  ;;  %v846_v20 = vld [vmem:[#allocation3 + $0xff8] sm:$0xff] }
 0x195   :  { %v5191_v38 = vpop.f32.mrb[1].mxu0  ;;  %v5193_v41 = vpop.f32.mrb[1].mxu1 }
 0x196   :  { %4057 = vmatpush1.bf16.msra.mxu0 %v4056_v23  ;;  %4153 = vmatpush1.bf16.msra.mxu1 %v4152_v27  ;;  %v716_v23 = vld [vmem:[#allocation3 + $0xbe8] sm:$0xff]  ;;  %v702_v27 = vld [vmem:[#allocation3 + $0xb78] sm:$0xff] }
 0x197   :  { %4059 = vmatprep.subr.bf16.mxu0 %v4058_v21  ;;  %4155 = vmatprep.subr.bf16.mxu1 %v4154_v1  ;;  %v4172_v21 = vpack.c.bf16 %v685_v55, %v669_v54  ;;  %v699_v1 = vld [vmem:[#allocation3 + $0xb60] sm:$0xff]  ;;  %v4078_v19 = vpack.c.bf16 %v716_v23, %v700_v46  ;;  %v4174_v34 = vpack.c.bf16 %v718_v28, %v702_v27  ;;  %v829_v23 = vld [vmem:[#allocation3 + $0xf70] sm:$0xff]  ;;  %v860_v28 = vld [vmem:[#allocation3 + $0x1068] sm:$0xff] }
 0x198   :  { %v4080_v8 = vpack.c.bf16 %v715_v2, %v699_v1  ;;  %v843_v54 = vld [vmem:[#allocation3 + $0xfe0] sm:$0xff]  ;;  %v845_v27 = vld [vmem:[#allocation3 + $0xff0] sm:$0xff]  ;;  %v878_v1 = vld [vmem:[#allocation3 + $0x10f8] sm:$0xff] }
 0x19a   :  { %4061 = vmatpush1.bf16.msra.mxu0 %v4060_v42  ;;  %4157 = vmatpush1.bf16.msra.mxu1 %v4156_v39  ;;  %v748_v42 = vld [vmem:[#allocation3 + $0xce8] sm:$0xff]  ;;  %v734_v39 = vld [vmem:[#allocation3 + $0xc78] sm:$0xff] }
 0x19b   :  { %4063 = vmatprep.subr.bf16.mxu0 %v4062_v48  ;;  %4159 = vmatprep.subr.bf16.mxu1 %v4158_v22  ;;  %v4176_v48 = vpack.c.bf16 %v717_v0, %v701_v4  ;;  %v731_v22 = vld [vmem:[#allocation3 + $0xc60] sm:$0xff]  ;;  %v4082_v33 = vpack.c.bf16 %v748_v42, %v732_v7  ;;  %v4178_v57 = vpack.c.bf16 %v750_v47, %v734_v39  ;;  %v861_v42 = vld [vmem:[#allocation3 + $0x1070] sm:$0xff]  ;;  %v892_v47 = vld [vmem:[#allocation3 + $0x1168] sm:$0xff] }
 0x19c   :  { %v4084_v58 = vpack.c.bf16 %v747_v18, %v731_v22  ;;  %v875_v4 = vld [vmem:[#allocation3 + $0x10e0] sm:$0xff]  ;;  %v877_v39 = vld [vmem:[#allocation3 + $0x10f0] sm:$0xff]  ;;  %v910_v22 = vld [vmem:[#allocation3 + $0x11f8] sm:$0xff] }
 0x19e   :  { %4065 = vmatpush1.bf16.msra.mxu0 %v4064_v61  ;;  %4161 = vmatpush1.bf16.msra.mxu1 %v4160_v60  ;;  %v780_v61 = vld [vmem:[#allocation3 + $0xde8] sm:$0xff]  ;;  %v766_v60 = vld [vmem:[#allocation3 + $0xd78] sm:$0xff] }
 0x19f   :  { %4067 = vmatprep.subr.bf16.mxu0 %v4066_v25  ;;  %4163 = vmatprep.subr.bf16.mxu1 %v4162_v29  ;;  %v4180_v25 = vpack.c.bf16 %v749_v51, %v733_v45  ;;  %v763_v29 = vld [vmem:[#allocation3 + $0xd60] sm:$0xff]  ;;  %v4086_v53 = vpack.c.bf16 %v780_v61, %v764_v52  ;;  %v4182_v10 = vpack.c.bf16 %v782_v3, %v766_v60  ;;  %v893_v61 = vld [vmem:[#allocation3 + $0x1170] sm:$0xff]  ;;  %v924_v3 = vld [vmem:[#allocation3 + $0x1268] sm:$0xff] }
 0x1a0   :  { %v4088_v15 = vpack.c.bf16 %v779_v63, %v763_v29  ;;  %v907_v45 = vld [vmem:[#allocation3 + $0x11e0] sm:$0xff]  ;;  %v909_v60 = vld [vmem:[#allocation3 + $0x11f0] sm:$0xff]  ;;  %v942_v29 = vld [vmem:[#allocation3 + $0x12f8] sm:$0xff] }
 0x1a2   :  { %4069 = vmatpush1.bf16.msra.mxu0 %v4068_v62  ;;  %4165 = vmatpush1.bf16.msra.mxu1 %v4164_v37  ;;  %v812_v62 = vld [vmem:[#allocation3 + $0xee8] sm:$0xff]  ;;  %v798_v37 = vld [vmem:[#allocation3 + $0xe78] sm:$0xff] }
 0x1a3   :  { %4071 = vmatprep.subr.bf16.mxu0 %v4070_v16  ;;  %4167 = vmatprep.subr.bf16.mxu1 %v4166_v17  ;;  %v4184_v16 = vpack.c.bf16 %v781_v24, %v765_v11  ;;  %v795_v17 = vld [vmem:[#allocation3 + $0xe60] sm:$0xff]  ;;  %v4090_v35 = vpack.c.bf16 %v812_v62, %v796_v36  ;;  %v4186_v12 = vpack.c.bf16 %v814_v14, %v798_v37  ;;  %v925_v62 = vld [vmem:[#allocation3 + $0x1270] sm:$0xff]  ;;  %v956_v14 = vld [vmem:[#allocation3 + $0x1368] sm:$0xff] }
 0x1a4   :  { %v4092_v26 = vpack.c.bf16 %v811_v5, %v795_v17  ;;  %v939_v11 = vld [vmem:[#allocation3 + $0x12e0] sm:$0xff]  ;;  %v941_v37 = vld [vmem:[#allocation3 + $0x12f0] sm:$0xff]  ;;  %v974_v17 = vld [vmem:[#allocation3 + $0x13f8] sm:$0xff] }
 0x1a5   :  { %v4204_v5 = vpack.c.bf16 %v941_v37, %v925_v62 }
 0x1a6   :  { %4073 = vmatpush1.bf16.msra.mxu0 %v4072_v32  ;;  %4169 = vmatpush1.bf16.msra.mxu1 %v4168_v6  ;;  %v844_v32 = vld [vmem:[#allocation3 + $0xfe8] sm:$0xff]  ;;  %v830_v6 = vld [vmem:[#allocation3 + $0xf78] sm:$0xff] }
 0x1a7   :  { %4075 = vmatprep.subr.bf16.mxu0 %v4074_v59  ;;  %4171 = vmatprep.subr.bf16.mxu1 %v4170_v49  ;;  %v4188_v59 = vpack.c.bf16 %v813_v30, %v797_v13  ;;  %v827_v49 = vld [vmem:[#allocation3 + $0xf60] sm:$0xff]  ;;  %v4094_v55 = vpack.c.bf16 %v844_v32, %v828_v31  ;;  %v4190_v46 = vpack.c.bf16 %v846_v20, %v830_v6  ;;  %v957_v31 = vld [vmem:[#allocation3 + $0x1370] sm:$0xff]  ;;  %v988_v6 = vld [vmem:[#allocation3 + $0x1468] sm:$0xff] }
 0x1a8   :  { %v4096_v2 = vpack.c.bf16 %v843_v54, %v827_v49  ;;  %v973_v32 = vld [vmem:[#allocation3 + $0x13f0] sm:$0xff]  ;;  %v1004_v20 = vld [vmem:[#allocation3 + $0x14e8] sm:$0xff]  ;;  %v987_v54 = vld [vmem:[#allocation3 + $0x1460] sm:$0xff] }
 0x1aa   :  { %4077 = vmatpush1.bf16.msra.mxu0 %v4076_v56  ;;  %4173 = vmatpush1.bf16.msra.mxu1 %v4172_v21  ;;  %v876_v56 = vld [vmem:[#allocation3 + $0x10e8] sm:$0xff]  ;;  %v862_v21 = vld [vmem:[#allocation3 + $0x1078] sm:$0xff] }
 0x1ab   :  { %4079 = vmatprep.subr.bf16.mxu0 %v4078_v19  ;;  %4175 = vmatprep.subr.bf16.mxu1 %v4174_v34  ;;  %v4192_v19 = vpack.c.bf16 %v845_v27, %v829_v23  ;;  %v859_v34 = vld [vmem:[#allocation3 + $0x1060] sm:$0xff]  ;;  %v4098_v0 = vpack.c.bf16 %v876_v56, %v860_v28  ;;  %v4194_v7 = vpack.c.bf16 %v878_v1, %v862_v21  ;;  %v989_v27 = vld [vmem:[#allocation3 + $0x1470] sm:$0xff]  ;;  %v1020_v56 = vld [vmem:[#allocation3 + $0x1568] sm:$0xff]  ;;  %v1107_v21 = vlaneseq }
 0x1ac   :  { %v4100_v18 = vpack.c.bf16 %v875_v4, %v859_v34  ;;  %v1005_v28 = vld [vmem:[#allocation3 + $0x14f0] sm:$0xff]  ;;  %v1036_v1 = vld [vmem:[#allocation3 + $0x15e8] sm:$0xff] }
 0x1ad   :  { %v4212_v4 = vpack.c.bf16 %v1005_v28, %v989_v27  ;;  %v2358_v28 = vld [vmem:[#allocation7 + $0x98] sm:$0xff] }
 0x1ae   :  { %4081 = vmatpush1.bf16.msra.mxu0 %v4080_v8  ;;  %4177 = vmatpush1.bf16.msra.mxu1 %v4176_v48  ;;  %v908_v8 = vld [vmem:[#allocation3 + $0x11e8] sm:$0xff]  ;;  %v894_v48 = vld [vmem:[#allocation3 + $0x1178] sm:$0xff] }
 0x1af   :  { %4083 = vmatprep.subr.bf16.mxu0 %v4082_v33  ;;  %4179 = vmatprep.subr.bf16.mxu1 %v4178_v57  ;;  %v4196_v33 = vpack.c.bf16 %v877_v39, %v861_v42  ;;  %v891_v57 = vld [vmem:[#allocation3 + $0x1160] sm:$0xff]  ;;  %v4102_v51 = vpack.c.bf16 %v908_v8, %v892_v47  ;;  %v4198_v52 = vpack.c.bf16 %v910_v22, %v894_v48  ;;  %v1021_v47 = vld [vmem:[#allocation3 + $0x1570] sm:$0xff]  ;;  %v1052_v48 = vld [vmem:[#allocation3 + $0x1668] sm:$0xff]  ;;  %v5199_v22 = vshrl.u32 %v1107_v21, 7 }
 0x1b0   :  { %v4104_v63 = vpack.c.bf16 %v907_v45, %v891_v57  ;;  %v4118_v42 = vpack.c.bf16 %v1036_v1, %v1020_v56  ;;  %v1037_v8 = vld [vmem:[#allocation3 + $0x15f0] sm:$0xff]  ;;  %v1070_v57 = vld [vmem:[#allocation3 + $0x16f8] sm:$0xff]  ;;  %v2389_v56 = vld [vmem:[#allocation7 + $0x190] sm:$0xff] }
 0x1b1   :  { %v2390_v21 = vld [vmem:[#allocation7 + $0x198] sm:$0xff] }
 0x1b2   :  { %4085 = vmatpush1.bf16.msra.mxu0 %v4084_v58  ;;  %4181 = vmatpush1.bf16.msra.mxu1 %v4180_v25  ;;  %v940_v58 = vld [vmem:[#allocation3 + $0x12e8] sm:$0xff]  ;;  %v926_v25 = vld [vmem:[#allocation3 + $0x1278] sm:$0xff] }
 0x1b3   :  { %4087 = vmatprep.subr.bf16.mxu0 %v4086_v53  ;;  %4183 = vmatprep.subr.bf16.mxu1 %v4182_v10  ;;  %v4200_v53 = vpack.c.bf16 %v909_v60, %v893_v61  ;;  %v923_v10 = vld [vmem:[#allocation3 + $0x1260] sm:$0xff]  ;;  %v4106_v24 = vpack.c.bf16 %v940_v58, %v924_v3  ;;  %v4202_v36 = vpack.c.bf16 %v942_v29, %v926_v25  ;;  %v1053_v58 = vld [vmem:[#allocation3 + $0x1670] sm:$0xff]  ;;  %v1084_v29 = vld [vmem:[#allocation3 + $0x1768] sm:$0xff] }
 0x1b4   :  { %v1067_v61 = vld [vmem:[#allocation3 + $0x16e0] sm:$0xff]  ;;  %v1069_v25 = vld [vmem:[#allocation3 + $0x16f0] sm:$0xff] }
 0x1b5   :  { %v4220_v37 = vpack.c.bf16 %v1069_v25, %v1053_v58  ;;  %v2362_v58 = vld [vmem:[#allocation7 + $0xb8] sm:$0xff]  ;;  %v2393_v25 = vld [vmem:[#allocation7 + $0x1b0] sm:$0xff] }
 0x1b6   :  { %4089 = vmatpush1.bf16.msra.mxu0 %v4088_v15  ;;  %4185 = vmatpush1.bf16.msra.mxu1 %v4184_v16  ;;  %v972_v15 = vld [vmem:[#allocation3 + $0x13e8] sm:$0xff]  ;;  %v958_v16 = vld [vmem:[#allocation3 + $0x1378] sm:$0xff] }
 0x1b7   :  { %4091 = vmatprep.subr.bf16.mxu0 %v4090_v35  ;;  %4187 = vmatprep.subr.bf16.mxu1 %v4186_v12  ;;  %v955_v35 = vld [vmem:[#allocation3 + $0x1360] sm:$0xff]  ;;  %v4110_v13 = vpack.c.bf16 %v972_v15, %v956_v14  ;;  %v4206_v30 = vpack.c.bf16 %v974_v17, %v958_v16 }
 0x1b8   :  { %v971_v12 = vld [vmem:[#allocation3 + $0x13e0] sm:$0xff] }
 0x1b9   :  { %v4112_v49 = vpack.c.bf16 %v971_v12, %v955_v35  ;;  %v1083_v14 = vld [vmem:[#allocation3 + $0x1760] sm:$0xff]  ;;  %v2355_v35 = vld [vmem:[#allocation7 + $0x80] sm:$0xff] }
 0x1ba   :  { %4093 = vmatpush1.bf16.msra.mxu0 %v4092_v26  ;;  %4189 = vmatpush1.bf16.msra.mxu1 %v4188_v59  ;;  %v990_v26 = vld [vmem:[#allocation3 + $0x1478] sm:$0xff]  ;;  %v1099_v15 = vld [vmem:[#allocation3 + $0x17e0] sm:$0xff] }
 0x1bb   :  { %4095 = vmatprep.subr.bf16.mxu0 %v4094_v55  ;;  %4191 = vmatprep.subr.bf16.mxu1 %v4190_v46  ;;  %v1006_v59 = vld [vmem:[#allocation3 + $0x14f8] sm:$0xff]  ;;  %v1003_v55 = vld [vmem:[#allocation3 + $0x14e0] sm:$0xff]  ;;  %v4114_v46 = vpack.c.bf16 %v1004_v20, %v988_v6  ;;  %v4128_v6 = vpack.c.bf16 %v1099_v15, %v1083_v14  ;;  %v2378_v15 = vld [vmem:[#allocation7 + $0x138] sm:$0xff] }
 0x1bc   :  { %v4210_v23 = vpack.c.bf16 %v1006_v59, %v990_v26  ;;  %v4116_v34 = vpack.c.bf16 %v1003_v55, %v987_v54  ;;  %v2371_v55 = vld [vmem:[#allocation7 + $0x100] sm:$0xff] }
 0x1be   :  { %4097 = vmatpush1.bf16.msra.mxu0 %v4096_v2  ;;  %4193 = vmatpush1.bf16.msra.mxu1 %v4192_v19  ;;  %v1022_v2 = vld [vmem:[#allocation3 + $0x1578] sm:$0xff] }
 0x1bf   :  { %4099 = vmatprep.subr.bf16.mxu0 %v4098_v0  ;;  %4195 = vmatprep.subr.bf16.mxu1 %v4194_v7  ;;  %v1038_v19 = vld [vmem:[#allocation3 + $0x15f8] sm:$0xff]  ;;  %v1019_v0 = vld [vmem:[#allocation3 + $0x1560] sm:$0xff] }
 0x1c0   :  { %v1035_v7 = vld [vmem:[#allocation3 + $0x15e0] sm:$0xff]  ;;  %v4214_v39 = vpack.c.bf16 %v1038_v19, %v1022_v2 }
 0x1c1   :  { %2104 = vmatmul.mubr.f32.vlgmr.msra.gmra.mrb[6].mxu0 %v5090_v43  ;;  %2246 = vmatmul.mubr.f32.vlgmr.msra.gmra.mrb[6].mxu1 %v5090_v43  ;;  %v4108_v43 = vpack.c.bf16 %v939_v11, %v923_v10  ;;  %v4120_v45 = vpack.c.bf16 %v1035_v7, %v1019_v0  ;;  %v1086_v10 = vld [vmem:[#allocation3 + $0x1778] sm:$0xff]  ;;  %v2341_v19 = vld [vmem:[#allocation7 + $0x10] sm:$0xff] }
 0x1c2   :  { %4101 = vmatpush1.bf16.msra.mxu0 %v4100_v18  ;;  %4197 = vmatpush1.bf16.msra.mxu1 %v4196_v33  ;;  %v1068_v18 = vld [vmem:[#allocation3 + $0x16e8] sm:$0xff]  ;;  %v1054_v33 = vld [vmem:[#allocation3 + $0x1678] sm:$0xff] }
 0x1c3   :  { %4103 = vmatprep.subr.bf16.mxu0 %v4102_v51  ;;  %4199 = vmatprep.subr.bf16.mxu1 %v4198_v52  ;;  %v4216_v51 = vpack.c.bf16 %v1037_v8, %v1021_v47  ;;  %v1051_v52 = vld [vmem:[#allocation3 + $0x1660] sm:$0xff]  ;;  %v4122_v60 = vpack.c.bf16 %v1068_v18, %v1052_v48  ;;  %v4218_v3 = vpack.c.bf16 %v1070_v57, %v1054_v33  ;;  %v1102_v11 = vld [vmem:[#allocation3 + $0x17f8] sm:$0xff] }
 0x1c4   :  { %2174 = vmatprep.mubr.f32.mxu0 %v4627_v50  ;;  %2316 = vmatprep.mubr.f32.mxu1 %v4627_v50  ;;  %v4208_v50 = vpack.c.bf16 %v973_v32, %v957_v31  ;;  %v4124_v62 = vpack.c.bf16 %v1067_v61, %v1051_v52  ;;  %v4222_v17 = vpack.c.bf16 %v1102_v11, %v1086_v10  ;;  %v2388_v31 = vld [vmem:[#allocation7 + $0x188] sm:$0xff]  ;;  %v2375_v52 = vld [vmem:[#allocation7 + $0x120] sm:$0xff]  ;;  %v2345_v11 = vld [vmem:[#allocation7 + $0x30] sm:$0xff] }
 0x1c5   :  { %v2360_v47 = vld [vmem:[#allocation7 + $0xa8] sm:$0xff] }
 0x1c6   :  { %4105 = vmatpush1.bf16.msra.mxu0 %v4104_v63  ;;  %4201 = vmatpush1.bf16.msra.mxu1 %v4200_v53  ;;  %v1113_v63 = vsub.s32 1, %v5199_v22  ;;  %v1100_v53 = vld [vmem:[#allocation3 + $0x17e8] sm:$0xff]  ;;  %v2392_v48 = vld [vmem:[#allocation7 + $0x1a8] sm:$0xff] }
 0x1c7   :  { %4107 = vmatprep.subr.bf16.mxu0 %v4106_v24  ;;  %4203 = vmatprep.subr.bf16.mxu1 %v4202_v36  ;;  %v5202_v24 = vld [vmem:[#allocation5] sm:$0xff]  ;;  %v1121_v36 = vsub.s32 3, %v5199_v22  ;;  %v4126_v16 = vpack.c.bf16 %v1100_v53, %v1084_v29 }
 0x1c8   :  { %v1114_v12 = vrot.slane %v5202_v24, %v1113_v63 }
 0x1c9   :  { %v1122_v32 = vrot.slane %v5202_v24, %v1121_v36 }
 0x1ca   :  { %4109 = vmatpush1.bf16.msra.mxu0 %v4108_v43  ;;  %4205 = vmatpush1.bf16.msra.mxu1 %v4204_v5  ;;  %v1085_v43 = vld [vmem:[#allocation3 + $0x1770] sm:$0xff]  ;;  %v4483_v54 = vadd.f32 %v5191_v38, %v1114_v12  ;;  %v4262_v38 = vpack.c.bf16 %v2390_v21, %v2389_v56  ;;  %v2381_v56 = vld [vmem:[#allocation7 + $0x150] sm:$0xff] }
 0x1cb   :  { %4111 = vmatprep.subr.bf16.mxu0 %v4110_v13  ;;  %4207 = vmatprep.subr.bf16.mxu1 %v4206_v30  ;;  %v1101_v5 = vld [vmem:[#allocation3 + $0x17f0] sm:$0xff]  ;;  %v2356_v13 = vld [vmem:[#allocation7 + $0x88] sm:$0xff]  ;;  %v4485_v27 = vadd.f32 %v5193_v41, %v1122_v32 }
 0x1cc   :  { %v2387_v30 = vld [vmem:[#allocation7 + $0x180] sm:$0xff]  ;;  %v4224_v20 = vpack.c.bf16 %v1101_v5, %v1085_v43  ;;  %v4226_v26 = vpack.c.bf16 %v2356_v13, %v2355_v35  ;;  %v2324_v0 = vmax.f32 %v4483_v54, 0.0  ;;  %v2396_v5 = vld [vmem:[#allocation7 + $0x1c8] sm:$0xff]  ;;  %v2398_v54 = vld [vmem:[#allocation7 + $0x1d8] sm:$0xff] }
 0x1cd   :  { %v4258_v59 = vpack.c.bf16 %v2388_v31, %v2387_v30  ;;  %v2326_v8 = vmax.f32 %v4485_v27, 0.0  ;;  %v2391_v41 = vld [vmem:[#allocation7 + $0x1a0] sm:$0xff]  ;;  %v2348_v31 = vld [vmem:[#allocation7 + $0x48] sm:$0xff]  ;;  %v2349_v27 = vld [vmem:[#allocation7 + $0x50] sm:$0xff] }
 0x1ce   :  { %4113 = vmatpush1.bf16.msra.mxu0 %v4112_v49  ;;  %4209 = vmatpush1.bf16.msra.mxu1 %v4208_v50  ;;  %v2339_v49 = vld [vmem:[#allocation7] sm:$0xff]  ;;  %v2340_v50 = vld [vmem:[#allocation7 + $0x8] sm:$0xff]  ;;  %v4266_v61 = vpack.c.bf16 %v2392_v48, %v2391_v41  ;;  %v1117_v48 = vsub.s32 2, %v5199_v22 }
 0x1cf   :  { %4115 = vmatprep.subr.bf16.mxu0 %v4114_v46  ;;  %4211 = vmatprep.subr.bf16.mxu1 %v4210_v23  ;;  %v2372_v46 = vld [vmem:[#allocation7 + $0x108] sm:$0xff]  ;;  %v2357_v23 = vld [vmem:[#allocation7 + $0x90] sm:$0xff]  ;;  %v4228_v1 = vpack.c.bf16 %v2340_v50, %v2339_v49  ;;  %v2395_v43 = vld [vmem:[#allocation7 + $0x1c0] sm:$0xff]  ;;  %v1133_v49 = vsub.s32 6, %v5199_v22 }
 0x1d0   :  { %v4260_v2 = vpack.c.bf16 %v2372_v46, %v2371_v55  ;;  %v4230_v7 = vpack.c.bf16 %v2358_v28, %v2357_v23  ;;  %v2347_v30 = vld [vmem:[#allocation7 + $0x40] sm:$0xff]  ;;  %v2397_v50 = vld [vmem:[#allocation7 + $0x1d0] sm:$0xff]  ;;  %v2350_v28 = vld [vmem:[#allocation7 + $0x58] sm:$0xff] }
 0x1d1   :  { %v2379_v32 = vld [vmem:[#allocation7 + $0x140] sm:$0xff]  ;;  %v4244_v55 = vpack.c.bf16 %v2348_v31, %v2347_v30  ;;  %v4278_v21 = vpack.c.bf16 %v2398_v54, %v2397_v50  ;;  %v2452_v30 = vld [vmem:[#allocation7 + $0x388] sm:$0xff] }
 0x1d2   :  { %4117 = vmatpush1.bf16.msra.mxu0 %v4116_v34  ;;  %4213 = vmatpush1.bf16.msra.mxu1 %v4212_v4  ;;  %v2342_v34 = vld [vmem:[#allocation7 + $0x18] sm:$0xff]  ;;  %v2373_v4 = vld [vmem:[#allocation7 + $0x110] sm:$0xff]  ;;  %v2383_v41 = vld [vmem:[#allocation7 + $0x160] sm:$0xff] }
 0x1d3   :  { %4119 = vmatprep.subr.bf16.mxu0 %v4118_v42  ;;  %4215 = vmatprep.subr.bf16.mxu1 %v4214_v39  ;;  %v2374_v42 = vld [vmem:[#allocation7 + $0x118] sm:$0xff]  ;;  %v2359_v39 = vld [vmem:[#allocation7 + $0xa0] sm:$0xff]  ;;  %v4232_v18 = vpack.c.bf16 %v2342_v34, %v2341_v19  ;;  %v2368_v19 = vld [vmem:[#allocation7 + $0xe8] sm:$0xff]  ;;  %v1134_v34 = vrot.slane %v5202_v24, %v1133_v49 }
 0x1d4   :  { %v4264_v33 = vpack.c.bf16 %v2374_v42, %v2373_v4  ;;  %v4234_v57 = vpack.c.bf16 %v2360_v47, %v2359_v39  ;;  %v2399_v4 = vld [vmem:[#allocation7 + $0x1e0] sm:$0xff]  ;;  %v2404_v50 = vld [vmem:[#allocation7 + $0x208] sm:$0xff] }
 0x1d5   :  { %v2351_v47 = vld [vmem:[#allocation7 + $0x60] sm:$0xff] }
 0x1d6   :  { %4121 = vmatpush1.bf16.msra.mxu0 %v4120_v45  ;;  %4217 = vmatpush1.bf16.msra.mxu1 %v4216_v51  ;;  %v2343_v45 = vld [vmem:[#allocation7 + $0x20] sm:$0xff]  ;;  %v2344_v51 = vld [vmem:[#allocation7 + $0x28] sm:$0xff] }
 0x1d7   :  { %4123 = vmatprep.subr.bf16.mxu0 %v4122_v60  ;;  %4219 = vmatprep.subr.bf16.mxu1 %v4218_v3  ;;  %v2376_v60 = vld [vmem:[#allocation7 + $0x128] sm:$0xff]  ;;  %v2361_v3 = vld [vmem:[#allocation7 + $0xb0] sm:$0xff]  ;;  %v4236_v29 = vpack.c.bf16 %v2344_v51, %v2343_v45 }
 0x1d8   :  { %v4268_v53 = vpack.c.bf16 %v2376_v60, %v2375_v52  ;;  %v4238_v10 = vpack.c.bf16 %v2362_v58, %v2361_v3  ;;  %v2384_v45 = vld [vmem:[#allocation7 + $0x168] sm:$0xff]  ;;  %v2369_v51 = vld [vmem:[#allocation7 + $0xf0] sm:$0xff]  ;;  %v2370_v52 = vld [vmem:[#allocation7 + $0xf8] sm:$0xff]  ;;  %v1129_v60 = vsub.s32 5, %v5199_v22 }
 0x1da   :  { %4125 = vmatpush1.bf16.msra.mxu0 %v4124_v62  ;;  %4221 = vmatpush1.bf16.msra.mxu1 %v4220_v37  ;;  %v2346_v62 = vld [vmem:[#allocation7 + $0x38] sm:$0xff]  ;;  %v2377_v37 = vld [vmem:[#allocation7 + $0x130] sm:$0xff] }
 0x1db   :  { %4127 = vmatprep.subr.bf16.mxu0 %v4126_v16  ;;  %4223 = vmatprep.subr.bf16.mxu1 %v4222_v17  ;;  %v2363_v16 = vld [vmem:[#allocation7 + $0xc0] sm:$0xff]  ;;  %v2364_v17 = vld [vmem:[#allocation7 + $0xc8] sm:$0xff]  ;;  %v4240_v35 = vpack.c.bf16 %v2346_v62, %v2345_v11  ;;  %v4272_v12 = vpack.c.bf16 %v2378_v15, %v2377_v37  ;;  %v4284_v11 = vpack.c.bf16 %v2384_v45, %v2383_v41  ;;  %v2353_v37 = vld [vmem:[#allocation7 + $0x70] sm:$0xff] }
 0x1dc   :  { %v4242_v13 = vpack.c.bf16 %v2364_v17, %v2363_v16  ;;  %v4254_v62 = vpack.c.bf16 %v2370_v52, %v2369_v51  ;;  %v2385_v15 = vld [vmem:[#allocation7 + $0x170] sm:$0xff]  ;;  %v1118_v16 = vrot.slane %v5202_v24, %v1117_v48  ;;  %v2456_v45 = vld [vmem:[#allocation7 + $0x3a8] sm:$0xff] }
 0x1de   :  { %4129 = vmatpush1.bf16.msra.mxu0 %v4128_v6  ;;  %4225 = vmatpush1.bf16.msra.mxu1 %v4224_v20  ;;  %v4274_v6 = vpack.c.bf16 %v2396_v5, %v2395_v43  ;;  %v2380_v20 = vld [vmem:[#allocation7 + $0x148] sm:$0xff]  ;;  %v2386_v43 = vld [vmem:[#allocation7 + $0x178] sm:$0xff]  ;;  %v2419_v5 = vld [vmem:[#allocation7 + $0x280] sm:$0xff]  ;;  %v4484_v54 = vadd.f32 %v5189_v44, %v1118_v16 }
 0x1df   :  { %4227 = vmatprep.subr.bf16.mxu0 %v4226_v26  ;;  %4259 = vmatprep.subr.bf16.mxu1 %v4258_v59  ;;  %v2365_v26 = vld [vmem:[#allocation7 + $0xd0] sm:$0xff]  ;;  %v2366_v59 = vld [vmem:[#allocation7 + $0xd8] sm:$0xff]  ;;  %v4276_v46 = vpack.c.bf16 %v2380_v20, %v2379_v32  ;;  %v4288_v20 = vpack.c.bf16 %v2386_v43, %v2385_v15 }
 0x1e0   :  { %v4246_v23 = vpack.c.bf16 %v2366_v59, %v2365_v26  ;;  %v2403_v59 = vld [vmem:[#allocation7 + $0x200] sm:$0xff]  ;;  %v2325_v44 = vmax.f32 %v4484_v54, 0.0  ;;  %v2458_v15 = vld [vmem:[#allocation7 + $0x3b8] sm:$0xff] }
 0x1e1   :  { %2175 = vmatmul.mubr.f32.vlgmr.msra.gmra.mrb[6].mxu0 %v5165_v9  ;;  %2317 = vmatmul.mubr.f32.vlgmr.msra.gmra.mrb[6].mxu1 %v5165_v9  ;;  %v2394_v9 = vld [vmem:[#allocation7 + $0x1b8] sm:$0xff]  ;;  %v2411_v54 = vld [vmem:[#allocation7 + $0x240] sm:$0xff] }
 0x1e2   :  { %4229 = vmatpush3.bf16.msra.mxu0 %v4228_v1  ;;  %2666 = vmatprep.mubr.f32.mxu0 %v2324_v0  ;;  %v4270_v14 = vpack.c.bf16 %v2394_v9, %v2393_v25  ;;  %v2382_v1 = vld [vmem:[#allocation7 + $0x158] sm:$0xff]  ;;  %v2400_v0 = vld [vmem:[#allocation7 + $0x1e8] sm:$0xff]  ;;  %v2401_v25 = vld [vmem:[#allocation7 + $0x1f0] sm:$0xff] }
 0x1e3   :  { %4261 = vmatpush3.bf16.msra.mxu1 %v4260_v2  ;;  %2736 = vmatprep.mubr.f32.mxu1 %v2326_v8  ;;  %v2367_v2 = vld [vmem:[#allocation7 + $0xe0] sm:$0xff]  ;;  %v4280_v42 = vpack.c.bf16 %v2382_v1, %v2381_v56  ;;  %v2352_v8 = vld [vmem:[#allocation7 + $0x68] sm:$0xff]  ;;  %v2402_v9 = vld [vmem:[#allocation7 + $0x1f8] sm:$0xff]  ;;  %v4292_v1 = vpack.c.bf16 %v2404_v50, %v2403_v59 }
 0x1e4   :  { %4231 = vmatprep.subr.bf16.mxu0 %v4230_v7  ;;  %4263 = vmatprep.subr.bf16.mxu1 %v4262_v38  ;;  %v4248_v7 = vpack.c.bf16 %v2350_v28, %v2349_v27  ;;  %v1109_v38 = vsub.s32 0, %v5199_v22  ;;  %v4250_v39 = vpack.c.bf16 %v2368_v19, %v2367_v2  ;;  %v4286_v17 = vpack.c.bf16 %v2402_v9, %v2401_v25  ;;  %v2421_v28 = vld [vmem:[#allocation7 + $0x290] sm:$0xff]  ;;  %v2422_v56 = vld [vmem:[#allocation7 + $0x298] sm:$0xff]  ;;  %v2407_v25 = vld [vmem:[#allocation7 + $0x220] sm:$0xff] }
 0x1e5   :  { %v2453_v2 = vld [vmem:[#allocation7 + $0x390] sm:$0xff]  ;;  %v2408_v9 = vld [vmem:[#allocation7 + $0x228] sm:$0xff] }
 0x1e6   :  { %4233 = vmatpush3.bf16.msra.mxu0 %v4232_v18  ;;  %v4300_v16 = vpack.c.bf16 %v2408_v9, %v2407_v25  ;;  %v2448_v25 = vld [vmem:[#allocation7 + $0x368] sm:$0xff]  ;;  %v2433_v9 = vld [vmem:[#allocation7 + $0x2f0] sm:$0xff] }
 0x1e7   :  { %4265 = vmatpush3.bf16.msra.mxu1 %v4264_v33  ;;  %4235 = vmatprep.subr.bf16.mxu0 %v4234_v57  ;;  %v4282_v57 = vpack.c.bf16 %v2400_v0, %v2399_v4  ;;  %v2405_v4 = vld [vmem:[#allocation7 + $0x210] sm:$0xff]  ;;  %v2406_v0 = vld [vmem:[#allocation7 + $0x218] sm:$0xff] }
 0x1e8   :  { %4267 = vmatprep.subr.bf16.mxu1 %v4266_v61  ;;  %v4296_v52 = vpack.c.bf16 %v2406_v0, %v2405_v4  ;;  %v2414_v4 = vld [vmem:[#allocation7 + $0x258] sm:$0xff]  ;;  %v2445_v0 = vld [vmem:[#allocation7 + $0x350] sm:$0xff] }
 0x1ea   :  { %4237 = vmatpush3.bf16.msra.mxu0 %v4236_v29  ;;  %v1137_v29 = vsub.s32 7, %v5199_v22 }
 0x1eb   :  { %4269 = vmatpush3.bf16.msra.mxu1 %v4268_v53  ;;  %4239 = vmatprep.subr.bf16.mxu0 %v4238_v10  ;;  %v4252_v53 = vpack.c.bf16 %v2352_v8, %v2351_v47  ;;  %v1110_v10 = vrot.slane %v5202_v24, %v1109_v38  ;;  %v2423_v47 = vld [vmem:[#allocation7 + $0x2a0] sm:$0xff]  ;;  %v2424_v8 = vld [vmem:[#allocation7 + $0x2a8] sm:$0xff] }
 0x1ec   :  { %4271 = vmatprep.subr.bf16.mxu1 %v4270_v14  ;;  %v2354_v14 = vld [vmem:[#allocation7 + $0x78] sm:$0xff]  ;;  %v1138_v31 = vrot.slane %v5202_v24, %v1137_v29 }
 0x1ed   :  { %v4256_v32 = vpack.c.bf16 %v2354_v14, %v2353_v37  ;;  %v2426_v37 = vld [vmem:[#allocation7 + $0x2b8] sm:$0xff]  ;;  %v2457_v14 = vld [vmem:[#allocation7 + $0x3b0] sm:$0xff] }
 0x1ee   :  { %4241 = vmatpush3.bf16.msra.mxu0 %v4240_v35  ;;  %v2420_v35 = vld [vmem:[#allocation7 + $0x288] sm:$0xff] }
 0x1ef   :  { %4273 = vmatpush3.bf16.msra.mxu1 %v4272_v12  ;;  %4243 = vmatprep.subr.bf16.mxu0 %v4242_v13  ;;  %v1130_v12 = vrot.slane %v5202_v24, %v1129_v60  ;;  %v2451_v13 = vld [vmem:[#allocation7 + $0x380] sm:$0xff]  ;;  %v4290_v26 = vpack.c.bf16 %v2420_v35, %v2419_v5  ;;  %v2409_v5 = vld [vmem:[#allocation7 + $0x230] sm:$0xff]  ;;  %v2410_v35 = vld [vmem:[#allocation7 + $0x238] sm:$0xff] }
 0x1f0   :  { %4275 = vmatprep.subr.bf16.mxu1 %v4274_v6  ;;  %v4482_v6 = vadd.f32 %v5187_v40, %v1110_v10  ;;  %v2454_v40 = vld [vmem:[#allocation7 + $0x398] sm:$0xff] }
 0x1f2   :  { %4245 = vmatpush3.bf16.msra.mxu0 %v4244_v55  ;;  %v4322_v55 = vpack.c.bf16 %v2452_v30, %v2451_v13  ;;  %v2323_v19 = vmax.f32 %v4482_v6, 0.0  ;;  %v4334_v13 = vpack.c.bf16 %v2458_v15, %v2457_v14  ;;  %v2442_v30 = vld [vmem:[#allocation7 + $0x338] sm:$0xff]  ;;  %v2459_v6 = vld [vmem:[#allocation7 + $0x3c0] sm:$0xff] }
 0x1f3   :  { %4277 = vmatpush3.bf16.msra.mxu1 %v4276_v46  ;;  %4247 = vmatprep.subr.bf16.mxu0 %v4246_v23  ;;  %v2435_v46 = vld [vmem:[#allocation7 + $0x300] sm:$0xff]  ;;  %v2436_v23 = vld [vmem:[#allocation7 + $0x308] sm:$0xff] }
 0x1f4   :  { %v5221_v18 = vpop.f32.mrb[2].mxu0  ;;  %v1750_v33 = vpop.f32.mrb[2].mxu1  ;;  %4279 = vmatprep.subr.bf16.mxu1 %v4278_v21 }
 0x1f5   :  { %v5223_v61 = vadd.f32 %v1750_v33, %v1134_v34  ;;  %v1610_v3 = vpop.f32.mrb[3].mxu0  ;;  %v1752_v58 = vpop.f32.mrb[3].mxu1  ;;  %v4324_v34 = vpack.c.bf16 %v2436_v23, %v2435_v46  ;;  %v4326_v33 = vpack.c.bf16 %v2454_v40, %v2453_v2  ;;  %v2443_v46 = vld [vmem:[#allocation7 + $0x340] sm:$0xff] }
 0x1f6   :  { %4249 = vmatpush3.bf16.msra.mxu0 %v4248_v7  ;;  %v4487_v27 = vadd.f32 %v1610_v3, %v1130_v12  ;;  %v4489_v21 = vadd.f32 %v1752_v58, %v1138_v31  ;;  %v2437_v7 = vld [vmem:[#allocation7 + $0x310] sm:$0xff]  ;;  %v4298_v58 = vpack.c.bf16 %v2424_v8, %v2423_v47  ;;  %v2427_v31 = vld [vmem:[#allocation7 + $0x2c0] sm:$0xff]  ;;  %v2464_v8 = vld [vmem:[#allocation7 + $0x3e8] sm:$0xff] }
 0x1f7   :  { %4281 = vmatpush3.bf16.msra.mxu1 %v4280_v42  ;;  %4251 = vmatprep.subr.bf16.mxu0 %v4250_v39  ;;  %v4294_v42 = vpack.c.bf16 %v2422_v56, %v2421_v28  ;;  %v2438_v39 = vld [vmem:[#allocation7 + $0x318] sm:$0xff]  ;;  %v2441_v12 = vld [vmem:[#allocation7 + $0x330] sm:$0xff]  ;;  %v2463_v47 = vld [vmem:[#allocation7 + $0x3e0] sm:$0xff] }
 0x1f8   :  { %4283 = vmatprep.subr.bf16.mxu1 %v4282_v57  ;;  %v2328_v41 = vmax.f32 %v4487_v27, 0.0  ;;  %v2455_v57 = vld [vmem:[#allocation7 + $0x3a0] sm:$0xff]  ;;  %v2330_v51 = vmax.f32 %v4489_v21, 0.0  ;;  %v4328_v3 = vpack.c.bf16 %v2438_v39, %v2437_v7  ;;  %v4336_v59 = vpack.c.bf16 %v2442_v30, %v2441_v12  ;;  %v2444_v27 = vld [vmem:[#allocation7 + $0x348] sm:$0xff]  ;;  %v2429_v28 = vld [vmem:[#allocation7 + $0x2d0] sm:$0xff] }
 0x1f9   :  { %v4330_v10 = vpack.c.bf16 %v2456_v45, %v2455_v57  ;;  %v2430_v56 = vld [vmem:[#allocation7 + $0x2d8] sm:$0xff]  ;;  %v2461_v21 = vld [vmem:[#allocation7 + $0x3d0] sm:$0xff]  ;;  %v4340_v40 = vpack.c.bf16 %v2444_v27, %v2443_v46  ;;  %v2432_v39 = vld [vmem:[#allocation7 + $0x2e8] sm:$0xff] }
 0x1fa   :  { %4253 = vmatpush3.bf16.msra.mxu0 %v4252_v53  ;;  %v2439_v53 = vld [vmem:[#allocation7 + $0x320] sm:$0xff]  ;;  %v2485_v46 = vld [vmem:[#allocation7 + $0x490] sm:$0xff] }
 0x1fb   :  { %4285 = vmatpush3.bf16.msra.mxu1 %v4284_v11  ;;  %4255 = vmatprep.subr.bf16.mxu0 %v4254_v62  ;;  %v2440_v11 = vld [vmem:[#allocation7 + $0x328] sm:$0xff]  ;;  %v2425_v62 = vld [vmem:[#allocation7 + $0x2b0] sm:$0xff]  ;;  %v2483_v12 = vld [vmem:[#allocation7 + $0x480] sm:$0xff] }
 0x1fc   :  { %4287 = vmatprep.subr.bf16.mxu1 %v4286_v17  ;;  %v4332_v17 = vpack.c.bf16 %v2440_v11, %v2439_v53  ;;  %v4302_v43 = vpack.c.bf16 %v2426_v37, %v2425_v62  ;;  %v2434_v53 = vld [vmem:[#allocation7 + $0x2f8] sm:$0xff]  ;;  %v2515_v30 = vld [vmem:[#allocation7 + $0x580] sm:$0xff]  ;;  %v2517_v27 = vld [vmem:[#allocation7 + $0x590] sm:$0xff] }
 0x1fd   :  { %v2466_v11 = vld [vmem:[#allocation7 + $0x3f8] sm:$0xff]  ;;  %v4318_v15 = vpack.c.bf16 %v2434_v53, %v2433_v9 }
 0x1fe   :  { %4257 = vmatpush3.bf16.msra.mxu0 %v4256_v32  ;;  %v2428_v32 = vld [vmem:[#allocation7 + $0x2c8] sm:$0xff]  ;;  %v2522_v9 = vld [vmem:[#allocation7 + $0x5b8] sm:$0xff] }
 0x1ff   :  { %4289 = vmatpush3.bf16.msra.mxu1 %v4288_v20  ;;  %4291 = vmatprep.subr.bf16.mxu0 %v4290_v26  ;;  %v2460_v20 = vld [vmem:[#allocation7 + $0x3c8] sm:$0xff]  ;;  %v4304_v26 = vpack.c.bf16 %v2410_v35, %v2409_v5  ;;  %v4306_v50 = vpack.c.bf16 %v2428_v32, %v2427_v31  ;;  %v2450_v35 = vld [vmem:[#allocation7 + $0x378] sm:$0xff] }
 0x200   :  { %4323 = vmatprep.subr.bf16.mxu1 %v4322_v55  ;;  %v2412_v55 = vld [vmem:[#allocation7 + $0x248] sm:$0xff]  ;;  %v4338_v23 = vpack.c.bf16 %v2460_v20, %v2459_v6 }
 0x201   :  { %2667 = vmatmul.mubr.f32.vlgmr.msra.gmra.mrb[8].mxu0 %v2323_v19  ;;  %v4308_v2 = vpack.c.bf16 %v2412_v55, %v2411_v54  ;;  %v4310_v19 = vpack.c.bf16 %v2430_v56, %v2429_v28  ;;  %v2516_v31 = vld [vmem:[#allocation7 + $0x588] sm:$0xff]  ;;  %v2518_v28 = vld [vmem:[#allocation7 + $0x598] sm:$0xff] }
 0x202   :  { %2737 = vmatmul.mubr.f32.vlgmr.msra.gmra.mrb[8].mxu1 %v2325_v44  ;;  %4293 = vmatpush3.bf16.msra.mxu0 %v4292_v1  ;;  %v2462_v1 = vld [vmem:[#allocation7 + $0x3d8] sm:$0xff]  ;;  %v4386_v54 = vpack.c.bf16 %v2516_v31, %v2515_v30  ;;  %v2500_v55 = vld [vmem:[#allocation7 + $0x508] sm:$0xff]  ;;  %v2475_v31 = vld [vmem:[#allocation7 + $0x440] sm:$0xff] }
 0x203   :  { %2806 = vmatprep.mubr.f32.mxu0 %v2328_v41  ;;  %4325 = vmatpush3.bf16.msra.mxu1 %v4324_v34  ;;  %v2413_v34 = vld [vmem:[#allocation7 + $0x250] sm:$0xff]  ;;  %v4342_v7 = vpack.c.bf16 %v2462_v1, %v2461_v21  ;;  %v2446_v44 = vld [vmem:[#allocation7 + $0x358] sm:$0xff] }
 0x204   :  { %2876 = vmatprep.mubr.f32.mxu1 %v2330_v51  ;;  %4295 = vmatprep.subr.bf16.mxu0 %v4294_v42  ;;  %v2431_v42 = vld [vmem:[#allocation7 + $0x2e0] sm:$0xff]  ;;  %v4312_v41 = vpack.c.bf16 %v2414_v4, %v2413_v34  ;;  %v4344_v57 = vpack.c.bf16 %v2446_v44, %v2445_v0  ;;  %v2329_v34 = vmax.f32 %v5223_v61, 0.0  ;;  %v4390_v4 = vpack.c.bf16 %v2518_v28, %v2517_v27  ;;  %v2502_v0 = vld [vmem:[#allocation7 + $0x518] sm:$0xff]  ;;  %v2488_v44 = vld [vmem:[#allocation7 + $0x4a8] sm:$0xff] }
 0x205   :  { %4327 = vmatprep.subr.bf16.mxu1 %v4326_v33  ;;  %v1125_v33 = vsub.s32 4, %v5199_v22  ;;  %v4314_v45 = vpack.c.bf16 %v2432_v39, %v2431_v42  ;;  %v2415_v51 = vld [vmem:[#allocation7 + $0x260] sm:$0xff]  ;;  %v2520_v39 = vld [vmem:[#allocation7 + $0x5a8] sm:$0xff]  ;;  %v2477_v27 = vld [vmem:[#allocation7 + $0x450] sm:$0xff] }
 0x206   :  { %4297 = vmatpush3.bf16.msra.mxu0 %v4296_v52  ;;  %v2416_v52 = vld [vmem:[#allocation7 + $0x268] sm:$0xff]  ;;  %v2519_v42 = vld [vmem:[#allocation7 + $0x5a0] sm:$0xff]  ;;  %v2478_v28 = vld [vmem:[#allocation7 + $0x458] sm:$0xff] }
 0x207   :  { %4329 = vmatpush3.bf16.msra.mxu1 %v4328_v3  ;;  %4299 = vmatprep.subr.bf16.mxu0 %v4298_v58  ;;  %v2447_v3 = vld [vmem:[#allocation7 + $0x360] sm:$0xff]  ;;  %v4346_v58 = vpack.c.bf16 %v2464_v8, %v2463_v47  ;;  %v4316_v62 = vpack.c.bf16 %v2416_v52, %v2415_v51  ;;  %v1126_v37 = vrot.slane %v5202_v24, %v1125_v33  ;;  %v2504_v52 = vld [vmem:[#allocation7 + $0x528] sm:$0xff] }
 0x208   :  { %4331 = vmatprep.subr.bf16.mxu1 %v4330_v10  ;;  %v2465_v10 = vld [vmem:[#allocation7 + $0x3f0] sm:$0xff]  ;;  %v4348_v14 = vpack.c.bf16 %v2448_v25, %v2447_v3  ;;  %v2503_v51 = vld [vmem:[#allocation7 + $0x520] sm:$0xff]  ;;  %v4394_v61 = vpack.c.bf16 %v2520_v39, %v2519_v42 }
 0x209   :  { %v4350_v5 = vpack.c.bf16 %v2466_v11, %v2465_v10  ;;  %v4486_v6 = vadd.f32 %v5221_v18, %v1126_v37  ;;  %v2489_v3 = vld [vmem:[#allocation7 + $0x4b0] sm:$0xff]  ;;  %v4396_v10 = vpack.c.bf16 %v2504_v52, %v2503_v51  ;;  %v2474_v37 = vld [vmem:[#allocation7 + $0x438] sm:$0xff]  ;;  %v2511_v42 = vld [vmem:[#allocation7 + $0x560] sm:$0xff] }
 0x20a   :  { %4301 = vmatpush3.bf16.msra.mxu0 %v4300_v16  ;;  %v2417_v16 = vld [vmem:[#allocation7 + $0x270] sm:$0xff] }
 0x20b   :  { %4333 = vmatpush3.bf16.msra.mxu1 %v4332_v17  ;;  %4303 = vmatprep.subr.bf16.mxu0 %v4302_v43  ;;  %v2418_v17 = vld [vmem:[#allocation7 + $0x278] sm:$0xff]  ;;  %v2449_v43 = vld [vmem:[#allocation7 + $0x370] sm:$0xff]  ;;  %v2327_v21 = vmax.f32 %v4486_v6, 0.0  ;;  %v2507_v6 = vld [vmem:[#allocation7 + $0x540] sm:$0xff] }
 0x20c   :  { %4335 = vmatprep.subr.bf16.mxu1 %v4334_v13  ;;  %v2484_v13 = vld [vmem:[#allocation7 + $0x488] sm:$0xff]  ;;  %v4320_v32 = vpack.c.bf16 %v2418_v17, %v2417_v16  ;;  %v4352_v24 = vpack.c.bf16 %v2450_v35, %v2449_v43  ;;  %v2521_v25 = vld [vmem:[#allocation7 + $0x5b0] sm:$0xff]  ;;  %v2506_v16 = vld [vmem:[#allocation7 + $0x538] sm:$0xff] }
 0x20d   :  { %v4354_v20 = vpack.c.bf16 %v2484_v13, %v2483_v12  ;;  %v2491_v17 = vld [vmem:[#allocation7 + $0x4c0] sm:$0xff]  ;;  %v2492_v43 = vld [vmem:[#allocation7 + $0x4c8] sm:$0xff] }
 0x20e   :  { %4305 = vmatpush3.bf16.msra.mxu0 %v4304_v26  ;;  %v2467_v26 = vld [vmem:[#allocation7 + $0x400] sm:$0xff]  ;;  %v2524_v35 = vld [vmem:[#allocation7 + $0x5c8] sm:$0xff]  ;;  %v4370_v30 = vpack.c.bf16 %v2492_v43, %v2491_v17  ;;  %v5247_v43 = vld [vmem:[#allocation5 + $0x8] sm:$0xff] }
 0x20f   :  { %4337 = vmatpush3.bf16.msra.mxu1 %v4336_v59  ;;  %4307 = vmatprep.subr.bf16.mxu0 %v4306_v50  ;;  %v2468_v59 = vld [vmem:[#allocation7 + $0x408] sm:$0xff]  ;;  %v2499_v50 = vld [vmem:[#allocation7 + $0x500] sm:$0xff] }
 0x210   :  { %4339 = vmatprep.subr.bf16.mxu1 %v4338_v23  ;;  %v2486_v23 = vld [vmem:[#allocation7 + $0x498] sm:$0xff]  ;;  %v4356_v56 = vpack.c.bf16 %v2468_v59, %v2467_v26  ;;  %v4388_v18 = vpack.c.bf16 %v2500_v55, %v2499_v50  ;;  %v2493_v26 = vld [vmem:[#allocation7 + $0x4d0] sm:$0xff] }
 0x211   :  { %v4358_v1 = vpack.c.bf16 %v2486_v23, %v2485_v46  ;;  %v2494_v59 = vld [vmem:[#allocation7 + $0x4d8] sm:$0xff]  ;;  %v2525_v50 = vld [vmem:[#allocation7 + $0x5d0] sm:$0xff] }
 0x212   :  { %4309 = vmatpush3.bf16.msra.mxu0 %v4308_v2  ;;  %v2469_v2 = vld [vmem:[#allocation7 + $0x410] sm:$0xff]  ;;  %v4374_v23 = vpack.c.bf16 %v2494_v59, %v2493_v26  ;;  %v2563_v59 = vld [vmem:[#allocation7 + $0x700] sm:$0xff] }
 0x213   :  { %4341 = vmatpush3.bf16.msra.mxu1 %v4340_v40  ;;  %4311 = vmatprep.subr.bf16.mxu0 %v4310_v19  ;;  %v2470_v40 = vld [vmem:[#allocation7 + $0x418] sm:$0xff]  ;;  %v2501_v19 = vld [vmem:[#allocation7 + $0x510] sm:$0xff] }
 0x214   :  { %4343 = vmatprep.subr.bf16.mxu1 %v4342_v7  ;;  %v2487_v7 = vld [vmem:[#allocation7 + $0x4a0] sm:$0xff]  ;;  %v4360_v47 = vpack.c.bf16 %v2470_v40, %v2469_v2  ;;  %v4392_v8 = vpack.c.bf16 %v2502_v0, %v2501_v19  ;;  %v2496_v2 = vld [vmem:[#allocation7 + $0x4e8] sm:$0xff] }
 0x215   :  { %v2527_v40 = vld [vmem:[#allocation7 + $0x5e0] sm:$0xff]  ;;  %v2528_v19 = vld [vmem:[#allocation7 + $0x5e8] sm:$0xff] }
 0x216   :  { %4313 = vmatpush3.bf16.msra.mxu0 %v4312_v41  ;;  %v4362_v41 = vpack.c.bf16 %v2488_v44, %v2487_v7  ;;  %v2479_v7 = vld [vmem:[#allocation7 + $0x460] sm:$0xff]  ;;  %v2480_v44 = vld [vmem:[#allocation7 + $0x468] sm:$0xff]  ;;  %v4410_v39 = vpack.c.bf16 %v2528_v19, %v2527_v40 }
 0x217   :  { %4345 = vmatpush3.bf16.msra.mxu1 %v4344_v57  ;;  %4315 = vmatprep.subr.bf16.mxu0 %v4314_v45  ;;  %v2471_v57 = vld [vmem:[#allocation7 + $0x420] sm:$0xff]  ;;  %v2472_v45 = vld [vmem:[#allocation7 + $0x428] sm:$0xff]  ;;  %v4380_v51 = vpack.c.bf16 %v2480_v44, %v2479_v7 }
 0x218   :  { %4347 = vmatprep.subr.bf16.mxu1 %v4346_v58  ;;  %v2490_v58 = vld [vmem:[#allocation7 + $0x4b8] sm:$0xff]  ;;  %v4364_v53 = vpack.c.bf16 %v2472_v45, %v2471_v57  ;;  %v2529_v57 = vld [vmem:[#allocation7 + $0x5f0] sm:$0xff]  ;;  %v2552_v7 = vld [vmem:[#allocation7 + $0x6a8] sm:$0xff] }
 0x219   :  { %v4366_v11 = vpack.c.bf16 %v2490_v58, %v2489_v3  ;;  %v2530_v45 = vld [vmem:[#allocation7 + $0x5f8] sm:$0xff]  ;;  %v2481_v3 = vld [vmem:[#allocation7 + $0x470] sm:$0xff]  ;;  %v2583_v44 = vld [vmem:[#allocation7 + $0x7a0] sm:$0xff] }
 0x21a   :  { %4317 = vmatpush3.bf16.msra.mxu0 %v4316_v62  ;;  %v2473_v62 = vld [vmem:[#allocation7 + $0x430] sm:$0xff]  ;;  %v2482_v58 = vld [vmem:[#allocation7 + $0x478] sm:$0xff] }
 0x21b   :  { %4349 = vmatpush3.bf16.msra.mxu1 %v4348_v14  ;;  %4319 = vmatprep.subr.bf16.mxu0 %v4318_v15  ;;  %v2505_v14 = vld [vmem:[#allocation7 + $0x530] sm:$0xff]  ;;  %v4398_v15 = vpack.c.bf16 %v2522_v9, %v2521_v25  ;;  %v4368_v12 = vpack.c.bf16 %v2474_v37, %v2473_v62  ;;  %v4414_v9 = vpack.c.bf16 %v2530_v45, %v2529_v57  ;;  %v2579_v62 = vld [vmem:[#allocation7 + $0x780] sm:$0xff]  ;;  %v2580_v37 = vld [vmem:[#allocation7 + $0x788] sm:$0xff] }
 0x21c   :  { %4351 = vmatprep.subr.bf16.mxu1 %v4350_v5  ;;  %v2523_v5 = vld [vmem:[#allocation7 + $0x5c0] sm:$0xff]  ;;  %v4400_v13 = vpack.c.bf16 %v2506_v16, %v2505_v14  ;;  %v2513_v25 = vld [vmem:[#allocation7 + $0x570] sm:$0xff]  ;;  %v4384_v14 = vpack.c.bf16 %v2482_v58, %v2481_v3  ;;  %v4450_v17 = vpack.c.bf16 %v2580_v37, %v2579_v62  ;;  %v2554_v3 = vld [vmem:[#allocation7 + $0x6b8] sm:$0xff] }
 0x21d   :  { %v2585_v58 = vld [vmem:[#allocation7 + $0x7b0] sm:$0xff] }
 0x21e   :  { %4321 = vmatpush3.bf16.msra.mxu0 %v4320_v32  ;;  %v2476_v32 = vld [vmem:[#allocation7 + $0x448] sm:$0xff] }
 0x21f   :  { %4353 = vmatpush3.bf16.msra.mxu1 %v4352_v24  ;;  %4355 = vmatprep.subr.bf16.mxu0 %v4354_v20  ;;  %v4402_v24 = vpack.c.bf16 %v2524_v35, %v2523_v5  ;;  %v2508_v20 = vld [vmem:[#allocation7 + $0x548] sm:$0xff]  ;;  %v4372_v55 = vpack.c.bf16 %v2476_v32, %v2475_v31  ;;  %v1142_v5 = vrot.slane %v5247_v43, %v1109_v38  ;;  %v2531_v32 = vld [vmem:[#allocation7 + $0x600] sm:$0xff] }
 0x220   :  { %4387 = vmatprep.subr.bf16.mxu1 %v4386_v54  ;;  %v2526_v54 = vld [vmem:[#allocation7 + $0x5d8] sm:$0xff]  ;;  %v4404_v46 = vpack.c.bf16 %v2508_v20, %v2507_v6  ;;  %v1150_v35 = vrot.slane %v5247_v43, %v1117_v48  ;;  %v2532_v6 = vld [vmem:[#allocation7 + $0x608] sm:$0xff] }
 0x221   :  { %2807 = vmatmul.mubr.f32.vlgmr.msra.gmra.mrb[10].mxu0 %v2327_v21  ;;  %v4406_v21 = vpack.c.bf16 %v2526_v54, %v2525_v50  ;;  %v2564_v50 = vld [vmem:[#allocation7 + $0x708] sm:$0xff]  ;;  %v2549_v54 = vld [vmem:[#allocation7 + $0x690] sm:$0xff] }
 0x222   :  { %2877 = vmatmul.mubr.f32.vlgmr.msra.gmra.mrb[10].mxu1 %v2329_v34  ;;  %4357 = vmatpush3.bf16.msra.mxu0 %v4356_v56  ;;  %v2509_v56 = vld [vmem:[#allocation7 + $0x550] sm:$0xff]  ;;  %v4376_v34 = vpack.c.bf16 %v2478_v28, %v2477_v27 }
 0x223   :  { %4389 = vmatpush3.bf16.msra.mxu1 %v4388_v18  ;;  %4359 = vmatprep.subr.bf16.mxu0 %v4358_v1  ;;  %v2510_v18 = vld [vmem:[#allocation7 + $0x558] sm:$0xff]  ;;  %v2495_v1 = vld [vmem:[#allocation7 + $0x4e0] sm:$0xff] }
 0x224   :  { %4391 = vmatprep.subr.bf16.mxu1 %v4390_v4  ;;  %v4408_v4 = vpack.c.bf16 %v2510_v18, %v2509_v56  ;;  %v4378_v0 = vpack.c.bf16 %v2496_v2, %v2495_v1  ;;  %v4420_v56 = vpack.c.bf16 %v2532_v6, %v2531_v32  ;;  %v2534_v18 = vld [vmem:[#allocation7 + $0x618] sm:$0xff] }
 0x226   :  { %4361 = vmatpush3.bf16.msra.mxu0 %v4360_v47  ;;  %v2512_v47 = vld [vmem:[#allocation7 + $0x568] sm:$0xff] }
 0x227   :  { %4393 = vmatpush3.bf16.msra.mxu1 %v4392_v8  ;;  %4363 = vmatprep.subr.bf16.mxu0 %v4362_v41  ;;  %v2497_v8 = vld [vmem:[#allocation7 + $0x4f0] sm:$0xff]  ;;  %v2498_v41 = vld [vmem:[#allocation7 + $0x4f8] sm:$0xff] }
 0x228   :  { %4395 = vmatprep.subr.bf16.mxu1 %v4394_v61  ;;  %v4412_v61 = vpack.c.bf16 %v2512_v47, %v2511_v42  ;;  %v4382_v52 = vpack.c.bf16 %v2498_v41, %v2497_v8  ;;  %v2584_v42 = vld [vmem:[#allocation7 + $0x7a8] sm:$0xff]  ;;  %v2535_v8 = vld [vmem:[#allocation7 + $0x620] sm:$0xff] }
 0x229   :  { %v2536_v41 = vld [vmem:[#allocation7 + $0x628] sm:$0xff]  ;;  %v4458_v45 = vpack.c.bf16 %v2584_v42, %v2583_v44  ;;  %v2561_v44 = vld [vmem:[#allocation7 + $0x6f0] sm:$0xff]  ;;  %v2562_v42 = vld [vmem:[#allocation7 + $0x6f8] sm:$0xff] }
 0x22a   :  { %4365 = vmatpush3.bf16.msra.mxu0 %v4364_v53  ;;  %v2514_v53 = vld [vmem:[#allocation7 + $0x578] sm:$0xff] }
 0x22b   :  { %4397 = vmatpush3.bf16.msra.mxu1 %v4396_v10  ;;  %4367 = vmatprep.subr.bf16.mxu0 %v4366_v11  ;;  %v2547_v10 = vld [vmem:[#allocation7 + $0x680] sm:$0xff]  ;;  %v2548_v11 = vld [vmem:[#allocation7 + $0x688] sm:$0xff] }
 0x22c   :  { %4399 = vmatprep.subr.bf16.mxu1 %v4398_v15  ;;  %v4416_v15 = vpack.c.bf16 %v2514_v53, %v2513_v25  ;;  %v4418_v16 = vpack.c.bf16 %v2548_v11, %v2547_v10  ;;  %v2586_v25 = vld [vmem:[#allocation7 + $0x7b8] sm:$0xff]  ;;  %v2537_v10 = vld [vmem:[#allocation7 + $0x630] sm:$0xff] }
 0x22d   :  { %v2538_v11 = vld [vmem:[#allocation7 + $0x638] sm:$0xff]  ;;  %v4462_v37 = vpack.c.bf16 %v2586_v25, %v2585_v58 }
 0x22e   :  { %4369 = vmatpush3.bf16.msra.mxu0 %v4368_v12  ;;  %v1146_v12 = vrot.slane %v5247_v43, %v1113_v63  ;;  %v2582_v63 = vld [vmem:[#allocation7 + $0x798] sm:$0xff] }
 0x22f   :  { %4401 = vmatpush3.bf16.msra.mxu1 %v4400_v13  ;;  %4371 = vmatprep.subr.bf16.mxu0 %v4370_v30  ;;  %v1154_v13 = vrot.slane %v5247_v43, %v1121_v36  ;;  %v4452_v36 = vpack.c.bf16 %v2564_v50, %v2563_v59  ;;  %v2589_v59 = vld [vmem:[#allocation7 + $0x7d0] sm:$0xff]  ;;  %v2590_v50 = vld [vmem:[#allocation7 + $0x7d8] sm:$0xff] }
 0x230   :  { %4403 = vmatprep.subr.bf16.mxu1 %v4402_v24 }
 0x232   :  { %4373 = vmatpush3.bf16.msra.mxu0 %v4372_v55 }
 0x233   :  { %4405 = vmatpush3.bf16.msra.mxu1 %v4404_v46  ;;  %4375 = vmatprep.subr.bf16.mxu0 %v4374_v23  ;;  %v2550_v46 = vld [vmem:[#allocation7 + $0x698] sm:$0xff]  ;;  %v2581_v23 = vld [vmem:[#allocation7 + $0x790] sm:$0xff] }
 0x234   :  { %4407 = vmatprep.subr.bf16.mxu1 %v4406_v21  ;;  %v2533_v21 = vld [vmem:[#allocation7 + $0x610] sm:$0xff]  ;;  %v4422_v40 = vpack.c.bf16 %v2550_v46, %v2549_v54  ;;  %v4454_v19 = vpack.c.bf16 %v2582_v63, %v2581_v23  ;;  %v2542_v46 = vld [vmem:[#allocation7 + $0x658] sm:$0xff]  ;;  %v4470_v63 = vpack.c.bf16 %v2590_v50, %v2589_v59 }
 0x236   :  { %4377 = vmatpush3.bf16.msra.mxu0 %v4376_v34  ;;  %v2565_v34 = vld [vmem:[#allocation7 + $0x710] sm:$0xff] }
 0x237   :  { %4409 = vmatpush3.bf16.msra.mxu1 %v4408_v4  ;;  %4379 = vmatprep.subr.bf16.mxu0 %v4378_v0  ;;  %v2566_v4 = vld [vmem:[#allocation7 + $0x718] sm:$0xff]  ;;  %v2551_v0 = vld [vmem:[#allocation7 + $0x6a0] sm:$0xff] }
 0x238   :  { %4411 = vmatprep.subr.bf16.mxu1 %v4410_v39  ;;  %v4424_v39 = vpack.c.bf16 %v2534_v18, %v2533_v21  ;;  %v4456_v47 = vpack.c.bf16 %v2566_v4, %v2565_v34  ;;  %v4426_v57 = vpack.c.bf16 %v2552_v7, %v2551_v0  ;;  %v2591_v21 = vld [vmem:[#allocation7 + $0x7e0] sm:$0xff]  ;;  %v2592_v18 = vld [vmem:[#allocation7 + $0x7e8] sm:$0xff] }
 0x239   :  { %v4474_v4 = vpack.c.bf16 %v2592_v18, %v2591_v21  ;;  %v2575_v0 = vld [vmem:[#allocation7 + $0x760] sm:$0xff]  ;;  %v2576_v7 = vld [vmem:[#allocation7 + $0x768] sm:$0xff] }
 0x23a   :  { %4381 = vmatpush3.bf16.msra.mxu0 %v4380_v51  ;;  %v2567_v51 = vld [vmem:[#allocation7 + $0x720] sm:$0xff] }
 0x23b   :  { %4413 = vmatpush3.bf16.msra.mxu1 %v4412_v61  ;;  %4383 = vmatprep.subr.bf16.mxu0 %v4382_v52  ;;  %v2568_v61 = vld [vmem:[#allocation7 + $0x728] sm:$0xff]  ;;  %v2553_v52 = vld [vmem:[#allocation7 + $0x6b0] sm:$0xff] }
 0x23c   :  { %4415 = vmatprep.subr.bf16.mxu1 %v4414_v9  ;;  %v4428_v9 = vpack.c.bf16 %v2536_v41, %v2535_v8  ;;  %v4460_v53 = vpack.c.bf16 %v2568_v61, %v2567_v51  ;;  %v4430_v62 = vpack.c.bf16 %v2554_v3, %v2553_v52  ;;  %v4476_v41 = vpack.c.bf16 %v2576_v7, %v2575_v0  ;;  %v2546_v61 = vld [vmem:[#allocation7 + $0x678] sm:$0xff]  ;;  %v2577_v52 = vld [vmem:[#allocation7 + $0x770] sm:$0xff] }
 0x23d   :  { %v2578_v3 = vld [vmem:[#allocation7 + $0x778] sm:$0xff] }
 0x23e   :  { %4385 = vmatpush3.bf16.msra.mxu0 %v4384_v14  ;;  %v2569_v14 = vld [vmem:[#allocation7 + $0x730] sm:$0xff]  ;;  %v4480_v25 = vpack.c.bf16 %v2578_v3, %v2577_v52 }
 0x23f   :  { %4417 = vmatpush3.bf16.msra.mxu1 %v4416_v15  ;;  %4419 = vmatprep.subr.bf16.mxu0 %v4418_v16  ;;  %v2570_v15 = vld [vmem:[#allocation7 + $0x738] sm:$0xff]  ;;  %v2555_v16 = vld [vmem:[#allocation7 + $0x6c0] sm:$0xff] }
 0x240   :  { %4451 = vmatprep.subr.bf16.mxu1 %v4450_v17  ;;  %v2556_v17 = vld [vmem:[#allocation7 + $0x6c8] sm:$0xff] }
 0x241   :  { %v4434_v32 = vpack.c.bf16 %v2556_v17, %v2555_v16 }
 0x254   :  { %v1892_v30 = vpop.f32.mrb[4].mxu0  ;;  %v2034_v31 = vpop.f32.mrb[4].mxu1 }
 0x255   :  { %v4490_v24 = vadd.f32 %v1892_v30, %v1142_v5  ;;  %v4492_v20 = vadd.f32 %v2034_v31, %v1150_v35  ;;  %v1894_v26 = vpop.f32.mrb[5].mxu0  ;;  %v2036_v38 = vpop.f32.mrb[5].mxu1  ;;  %v2587_v5 = vld [vmem:[#allocation7 + $0x7c0] sm:$0xff]  ;;  %v2588_v35 = vld [vmem:[#allocation7 + $0x7c8] sm:$0xff] }
 0x256   :  { %v4491_v48 = vadd.f32 %v1894_v26, %v1146_v12  ;;  %v4493_v55 = vadd.f32 %v2036_v38, %v1154_v13  ;;  %v4432_v12 = vpack.c.bf16 %v2538_v11, %v2537_v10  ;;  %v4464_v13 = vpack.c.bf16 %v2570_v15, %v2569_v14  ;;  %v2539_v30 = vld [vmem:[#allocation7 + $0x640] sm:$0xff]  ;;  %v2540_v31 = vld [vmem:[#allocation7 + $0x648] sm:$0xff]  ;;  %v2557_v26 = vld [vmem:[#allocation7 + $0x6d0] sm:$0xff] }
 0x257   :  { %v2331_v1 = vmax.f32 %v4490_v24, 0.0  ;;  %v2333_v2 = vmax.f32 %v4492_v20, 0.0  ;;  %v4466_v6 = vpack.c.bf16 %v2588_v35, %v2587_v5  ;;  %v2571_v24 = vld [vmem:[#allocation7 + $0x740] sm:$0xff]  ;;  %v2572_v20 = vld [vmem:[#allocation7 + $0x748] sm:$0xff]  ;;  %v2558_v38 = vld [vmem:[#allocation7 + $0x6d8] sm:$0xff]  ;;  %v4436_v54 = vpack.c.bf16 %v2540_v31, %v2539_v30 }
 0x258   :  { %v2332_v27 = vmax.f32 %v4491_v48, 0.0  ;;  %v2334_v28 = vmax.f32 %v4493_v55, 0.0  ;;  %v4468_v48 = vpack.c.bf16 %v2572_v20, %v2571_v24  ;;  %v2541_v55 = vld [vmem:[#allocation7 + $0x650] sm:$0xff]  ;;  %v4438_v23 = vpack.c.bf16 %v2558_v38, %v2557_v26  ;;  %v3176_v30 = vld [vmem:[#allocation8] ss:$0 sm:$0xff] }
 0x259   :  { %v1162_v10 = vrot.slane %v5247_v43, %v1129_v60  ;;  %v1170_v11 = vrot.slane %v5247_v43, %v1137_v29 }
 0x25a   :  { %2946 = vmatprep.mubr.f32.mxu0 %v2332_v27  ;;  %3016 = vmatprep.mubr.f32.mxu1 %v2334_v28  ;;  %v2573_v27 = vld [vmem:[#allocation7 + $0x750] sm:$0xff]  ;;  %v2574_v28 = vld [vmem:[#allocation7 + $0x758] sm:$0xff] }
 0x25b   :  { %2947 = vmatmul.mubr.f32.vlgmr.msra.gmra.mrb[12].mxu0 %v2331_v1  ;;  %3017 = vmatmul.mubr.f32.vlgmr.msra.gmra.mrb[12].mxu1 %v2333_v2  ;;  %v4440_v1 = vpack.c.bf16 %v2542_v46, %v2541_v55  ;;  %v4472_v2 = vpack.c.bf16 %v2574_v28, %v2573_v27 }
 0x25c   :  { %4421 = vmatpush3.bf16.msra.mxu0 %v4420_v56  ;;  %4453 = vmatpush3.bf16.msra.mxu1 %v4452_v36  ;;  %v2559_v56 = vld [vmem:[#allocation7 + $0x6e0] sm:$0xff]  ;;  %v2560_v36 = vld [vmem:[#allocation7 + $0x6e8] sm:$0xff] }
 0x25d   :  { %4423 = vmatprep.subr.bf16.mxu0 %v4422_v40  ;;  %4455 = vmatprep.subr.bf16.mxu1 %v4454_v19  ;;  %v2543_v40 = vld [vmem:[#allocation7 + $0x660] sm:$0xff]  ;;  %v2544_v19 = vld [vmem:[#allocation7 + $0x668] sm:$0xff]  ;;  %v4442_v34 = vpack.c.bf16 %v2560_v36, %v2559_v56 }
 0x25e   :  { %v4444_v8 = vpack.c.bf16 %v2544_v19, %v2543_v40 }
 0x260   :  { %4425 = vmatpush3.bf16.msra.mxu0 %v4424_v39  ;;  %4457 = vmatpush3.bf16.msra.mxu1 %v4456_v47  ;;  %v2593_v39 = vld [vmem:[#allocation7 + $0x7f0] sm:$0xff]  ;;  %v2594_v47 = vld [vmem:[#allocation7 + $0x7f8] sm:$0xff] }
 0x261   :  { %4427 = vmatprep.subr.bf16.mxu0 %v4426_v57  ;;  %4459 = vmatprep.subr.bf16.mxu1 %v4458_v45  ;;  %v2545_v57 = vld [vmem:[#allocation7 + $0x670] sm:$0xff]  ;;  %v4446_v45 = vpack.c.bf16 %v2562_v42, %v2561_v44  ;;  %v4478_v51 = vpack.c.bf16 %v2594_v47, %v2593_v39 }
 0x262   :  { %v4448_v58 = vpack.c.bf16 %v2546_v61, %v2545_v57 }
 0x264   :  { %4429 = vmatpush3.bf16.msra.mxu0 %v4428_v9  ;;  %4461 = vmatpush3.bf16.msra.mxu1 %v4460_v53  ;;  %v1158_v9 = vrot.slane %v5247_v43, %v1125_v33  ;;  %v1166_v53 = vrot.slane %v5247_v43, %v1133_v49 }
 0x265   :  { %4431 = vmatprep.subr.bf16.mxu0 %v4430_v62  ;;  %4463 = vmatprep.subr.bf16.mxu1 %v4462_v37 }
 0x268   :  { %4433 = vmatpush3.bf16.msra.mxu0 %v4432_v12  ;;  %4465 = vmatpush3.bf16.msra.mxu1 %v4464_v13 }
 0x269   :  { %4435 = vmatprep.subr.bf16.mxu0 %v4434_v32  ;;  %4467 = vmatprep.subr.bf16.mxu1 %v4466_v6 }
 0x26c   :  { %4437 = vmatpush3.bf16.msra.mxu0 %v4436_v54  ;;  %4469 = vmatpush3.bf16.msra.mxu1 %v4468_v48 }
 0x26d   :  { %4439 = vmatprep.subr.bf16.mxu0 %v4438_v23  ;;  %4471 = vmatprep.subr.bf16.mxu1 %v4470_v63 }
 0x270   :  { %4441 = vmatpush3.bf16.msra.mxu0 %v4440_v1  ;;  %4473 = vmatpush3.bf16.msra.mxu1 %v4472_v2 }
 0x271   :  { %4443 = vmatprep.subr.bf16.mxu0 %v4442_v34  ;;  %4475 = vmatprep.subr.bf16.mxu1 %v4474_v4 }
 0x274   :  { %4445 = vmatpush3.bf16.msra.mxu0 %v4444_v8  ;;  %4477 = vmatpush3.bf16.msra.mxu1 %v4476_v41 }
 0x275   :  { %4447 = vmatprep.subr.bf16.mxu0 %v4446_v45  ;;  %4479 = vmatprep.subr.bf16.mxu1 %v4478_v51 }
 0x278   :  { %4449 = vmatpush3.bf16.msra.mxu0 %v4448_v58  ;;  %4481 = vmatpush3.bf16.msra.mxu1 %v4480_v25 }
 0x2b4   :  { %v2176_v62 = vpop.f32.mrb[6].mxu0  ;;  %v2318_v37 = vpop.f32.mrb[6].mxu1 }
 0x2b5   :  { %v4494_v14 = vadd.f32 %v2176_v62, %v1158_v9  ;;  %v4496_v15 = vadd.f32 %v2318_v37, %v1166_v53  ;;  %v2178_v16 = vpop.f32.mrb[7].mxu0  ;;  %v2320_v17 = vpop.f32.mrb[7].mxu1 }
 0x2b6   :  { %v4495_v5 = vadd.f32 %v2178_v16, %v1162_v10  ;;  %v4497_v33 = vadd.f32 %v2320_v17, %v1170_v11 }
 0x2b7   :  { %v2335_v13 = vmax.f32 %v4494_v14, 0.0  ;;  %v2337_v49 = vmax.f32 %v4496_v15, 0.0 }
 0x2b8   :  { %v2336_v35 = vmax.f32 %v4495_v5, 0.0  ;;  %v2338_v12 = vmax.f32 %v4497_v33, 0.0 }
 0x2ba   :  { %3086 = vmatprep.mubr.f32.mxu0 %v2336_v35  ;;  %3156 = vmatprep.mubr.f32.mxu1 %v2338_v12 }
 0x2bb   :  { %3087 = vmatmul.mubr.f32.vlgmr.msra.gmra.mrb[14].mxu0 %v2335_v13  ;;  %3157 = vmatmul.mubr.f32.vlgmr.msra.gmra.mrb[14].mxu1 %v2337_v49 }
 0x2d4   :  { %v3210_v60 = vpop.f32.mrb[8].mxu0 }
 0x2d5   :  { %v3245_v22 = vpop.f32.mrb[8].mxu1  ;;  %v3211_v29 = vpop.f32.mrb[9].mxu0 }
 0x2d6   :  { %v3212_v43 = vadd.f32 %v3211_v29, %v3210_v60  ;;  %v3246_v31 = vpop.f32.mrb[9].mxu1 }
 0x2d7   :  { %v3247_v32 = vadd.f32 %v3246_v31, %v3245_v22 }
 0x2d8   :  { %v2669_v6 = vadd.f32 %v3212_v43, %v3176_v30 }
 0x2da   :  { %v2739_v24 = vadd.f32 %v3247_v32, %v2669_v6 }
 0x2f4   :  { %v3280_v20 = vpop.f32.mrb[10].mxu0 }
 0x2f5   :  { %v3315_v26 = vpop.f32.mrb[10].mxu1  ;;  %v3281_v38 = vpop.f32.mrb[11].mxu0 }
 0x2f6   :  { %v3282_v59 = vadd.f32 %v3281_v38, %v3280_v20  ;;  %v3316_v50 = vpop.f32.mrb[11].mxu1 }
 0x2f7   :  { %v3317_v54 = vadd.f32 %v3316_v50, %v3315_v26 }
 0x2f8   :  { %v2809_v48 = vadd.f32 %v3282_v59, %v2739_v24 }
 0x2fa   :  { %v2879_v55 = vadd.f32 %v3317_v54, %v2809_v48 }
 0x32e   :  { %v3350_v46 = vpop.f32.mrb[12].mxu0  ;;  %v3385_v23 = vpop.f32.mrb[12].mxu1 }
 0x32f   :  { %v3351_v63 = vpop.f32.mrb[13].mxu0  ;;  %v3386_v27 = vpop.f32.mrb[13].mxu1 }
 0x330   :  { %v3352_v28 = vadd.f32 %v3351_v63, %v3350_v46  ;;  %v3387_v56 = vadd.f32 %v3386_v27, %v3385_v23 }
 0x332   :  { %v2949_v36 = vadd.f32 %v3352_v28, %v2879_v55 }
 0x334   :  { %v3019_v21 = vadd.f32 %v3387_v56, %v2949_v36 }
 0x38e   :  { %v3420_v18 = vpop.f32.mrb[14].mxu0  ;;  %v3455_v1 = vpop.f32.mrb[14].mxu1 }
 0x38f   :  { %v3421_v2 = vpop.f32.mrb[15].mxu0  ;;  %v3456_v40 = vpop.f32.mrb[15].mxu1 }
 0x390   :  { %v3422_v19 = vadd.f32 %v3421_v2, %v3420_v18  ;;  %v3457_v34 = vadd.f32 %v3456_v40, %v3455_v1 }
 0x392   :  { %v3089_v4 = vadd.f32 %v3422_v19, %v3019_v21 }
 0x394   :  { %v3159_v0 = vadd.f32 %v3457_v34, %v3089_v4 }
 0x396   :  { %v3177_v7 = vmul.f32 -1.442695, %v3159_v0 }
 0x398   :  { %4522 = vpow2.f32 %v3177_v7 }
 0x3a2   :  { %v4523_v44 = vpop.eup %4522 }
 0x3a3   :  { %v3165_v42 = vadd.f32 1.0, %v4523_v44 }
 0x3a5   :  { %4524 = vrcp.f32 %v3165_v42 }
 0x3af   :  { %v4525_v39 = vpop.eup %4524 }
 0x3b0   :  { %3168 = vst [vmem:[%s5281_s5] sm:$0xff] %v4525_v39 }
 0x3b1   :  { %3173 = vsyncpa [#allocation4], 1 }
 0x3b2   :  { %3174 = vsyncpa [#allocation6], 1 }
 0x3b3   :  { %3175 = vsyncpa [#allocation9], 1 }

</bundles_post_ra>
